<compile_context>
chip_gen: v7x
topology: tpu7x:2x2x1
jax: 0.10.0
libtpu: 0.0.40
codegen_flags: <defaults>
</compile_context>

<pallas_src>
import jax
import jax.numpy as jnp
from jax.experimental import pallas as pl
from jax.experimental.pallas import tpu as pltpu

# ---- small hyperparameters, structurally consistent with the module ----
B = 2            # batch size
T = 8            # max sequence length
VOCAB = 50       # vocab_size
E = 32           # embedding_dim
P = 95           # pretrained_embedding_dim (word2vec dim)
F = 1            # flag_size
D_IN = E + P + F # = 128, BiLSTM input size (char emb + word2vec + flag)
H = 32           # hidden_dim (per LSTM direction)
H2 = 2 * H       # BiLSTM output size
H4 = 4 * H       # gate width per direction / self.linear output size
H8 = 8 * H       # both directions' gates, lane-stacked
TAGS = 16        # tags_size
LN_EPS = 1e-5    # nn.LayerNorm default eps
TB = T * B


def charw2vflag_kernel(emb_ref, w2v_ref, flag_ref, valid_ref, tagmask_ref,
                       ln_g_ref, ln_b_ref,
                       wih_emb_ref, wih_w2v_ref, wih_flag_ref, bih_ref,
                       whh_f_ref, whh_b_ref,
                       w1_ref, b1_ref, w2_ref, b2_ref,
                       out_ref,
                       pre_ref, y_ref):
    # ---- LayerNorm(char embedding) ----
    emb = emb_ref[...]                                           # (TB, E)
    mu = jnp.mean(emb, axis=-1, keepdims=True)
    var = jnp.mean((emb - mu) ** 2, axis=-1, keepdims=True)
    emb_n = (emb - mu) * jax.lax.rsqrt(var + LN_EPS)
    emb_n = emb_n * ln_g_ref[...] + ln_b_ref[...]
    # dropout (p=0.3) is identity at inference time

    # ---- hoisted input projection for BOTH directions, one batched matmul ----
    # lane layout of pre: [i_f f_f g_f o_f | i_b f_b g_b o_b], each H lanes.
    # (split by input row-block instead of lane-concatenating xs)
    pre = (jnp.dot(emb_n, wih_emb_ref[...], preferred_element_type=jnp.float32)
           + jnp.dot(w2v_ref[...], wih_w2v_ref[...],
                     preferred_element_type=jnp.float32)
           + flag_ref[...] * wih_flag_ref[...]
           + bih_ref[...])                                       # bias folded in
    pre_ref[...] = pre                                           # (TB, 8H)

    whh_f = whh_f_ref[...]
    whh_b = whh_b_ref[...]

    def cell(pre_t, h, c, whh):
        # PyTorch LSTM cell, gate order (i, f, g, o); input projection + bias
        # already folded into pre_t.
        gates = pre_t + jnp.dot(h, whh, preferred_element_type=jnp.float32)
        i_g = jax.nn.sigmoid(gates[:, 0 * H:1 * H])
        f_g = jax.nn.sigmoid(gates[:, 1 * H:2 * H])
        g_g = jnp.tanh(gates[:, 2 * H:3 * H])
        o_g = jax.nn.sigmoid(gates[:, 3 * H:4 * H])
        c_new = f_g * c + i_g * g_g
        h_new = o_g * jnp.tanh(c_new)
        return h_new, c_new

    z2 = jnp.zeros((B, H), jnp.float32)
    h_f, c_f, h_b, c_b = z2, z2, z2, z2

    # ---- fused, statically unrolled bidirectional recurrence (T small) ----
    for i in range(T):
        tf = i                     # forward direction timestep
        tb = T - 1 - i             # backward direction timestep
        rf0, rf1 = tf * B, (tf + 1) * B
        rb0, rb1 = tb * B, (tb + 1) * B

        m_f = valid_ref[rf0:rf1, :]                              # (B, 1)
        m_b = valid_ref[rb0:rb1, :]

        hf_new, cf_new = cell(pre_ref[rf0:rf1, 0:H4], h_f, c_f, whh_f)
        hb_new, cb_new = cell(pre_ref[rb0:rb1, H4:H8], h_b, c_b, whh_b)

        # packed-sequence semantics: padded steps emit zeros, state is frozen
        y_ref[rf0:rf1, 0:H] = m_f * hf_new
        y_ref[rb0:rb1, H:H2] = m_b * hb_new

        h_f = m_f * hf_new + (1.0 - m_f) * h_f
        c_f = m_f * cf_new + (1.0 - m_f) * c_f
        h_b = m_b * hb_new + (1.0 - m_b) * h_b
        c_b = m_b * cb_new + (1.0 - m_b) * c_b

    # ---- batched head: Linear(2H->4H) -> ReLU -> Linear(4H->TAGS) ----
    y = y_ref[...]                                               # (TB, 2H)
    z = jnp.maximum(
        jnp.dot(y, w1_ref[...], preferred_element_type=jnp.float32)
        + b1_ref[...], 0.0)
    logits = (jnp.dot(z, w2_ref[...], preferred_element_type=jnp.float32)
              + b2_ref[...])
    # pad_packed_sequence zeroes padded rows; then mask bias is added
    tag_bias = (1.0 - tagmask_ref[...]) * (-100000.0)            # (TB, TAGS)
    out_ref[...] = logits * valid_ref[...] + tag_bias


def charw2vflag_forward(params, char_ids, word2vecs, flag, tag_mask, seq_lens):
    # embedding lookup is glue (XLA gather); everything else is in the kernel
    char_emb = jnp.take(params['emb'], char_ids, axis=0)                # (B,T,E)
    valid = (jnp.arange(T)[None, :] < seq_lens[:, None]).astype(jnp.float32)

    to_rows = lambda x: jnp.transpose(x, (1, 0, 2)).reshape(TB, -1)     # r=t*B+b
    emb_rows = to_rows(char_emb)                                        # (TB, E)
    w2v_rows = to_rows(word2vecs.astype(jnp.float32))                   # (TB, P)
    flag_rows = jnp.transpose(flag.astype(jnp.float32), (1, 0)).reshape(TB, 1)
    valid_rows = jnp.transpose(valid, (1, 0)).reshape(TB, 1)
    mask_rows = jnp.tile(tag_mask.astype(jnp.float32), (T, 1))          # (TB, TAGS)

    # lane-stack the two directions' input weights, then split by input block
    wih = jnp.concatenate([params['wih_f'], params['wih_b']], axis=1)   # (D_IN,8H)
    b_ih = jnp.concatenate([params['b_f'], params['b_b']], axis=1)      # (1, 8H)
    wih_emb = wih[:E]                                                   # (E, 8H)
    wih_w2v = wih[E:E + P]                                              # (P, 8H)
    wih_flag = wih[E + P:E + P + F]                                     # (1, 8H)

    ins = (emb_rows, w2v_rows, flag_rows, valid_rows, mask_rows,
           params['ln_g'], params['ln_b'],
           wih_emb, wih_w2v, wih_flag, b_ih,
           params['whh_f'], params['whh_b'],
           params['w1'], params['b1'], params['w2'], params['b2'])

    vmem = pl.BlockSpec(memory_space=pltpu.MemorySpace.VMEM)
    out = pl.pallas_call(
        charw2vflag_kernel,
        out_shape=jax.ShapeDtypeStruct((TB, TAGS), jnp.float32),
        in_specs=[vmem] * len(ins),
        out_specs=vmem,
        scratch_shapes=[pltpu.VMEM((TB, H8), jnp.float32),   # gate pre-activations
                        pltpu.VMEM((TB, H2), jnp.float32)],  # BiLSTM outputs
    )(*ins)
    return jnp.transpose(out.reshape(T, B, TAGS), (1, 0, 2))            # (B,T,TAGS)


def init_params(key):
    ks = jax.random.split(key, 13)
    u = lambda k, shape, s: jax.random.uniform(k, shape, jnp.float32, -s, s)
    kh = 1.0 / (H ** 0.5)
    return dict(
        emb=jax.random.normal(ks[0], (VOCAB, E), jnp.float32),
        ln_g=1.0 + 0.1 * jax.random.normal(ks[11], (1, E), jnp.float32),
        ln_b=0.1 * jax.random.normal(ks[12], (1, E), jnp.float32),
        # LSTM weights pre-transposed to [in, 4H]; b = b_ih + b_hh combined
        wih_f=u(ks[1], (D_IN, H4), kh), whh_f=u(ks[2], (H, H4), kh),
        b_f=u(ks[3], (1, H4), kh),
        wih_b=u(ks[4], (D_IN, H4), kh), whh_b=u(ks[5], (H, H4), kh),
        b_b=u(ks[6], (1, H4), kh),
        w1=u(ks[7], (H2, H4), 1.0 / (H2 ** 0.5)),
        b1=u(ks[8], (1, H4), 1.0 / (H2 ** 0.5)),
        w2=u(ks[9], (H4, TAGS), 1.0 / (H4 ** 0.5)),
        b2=u(ks[10], (1, TAGS), 1.0 / (H4 ** 0.5)),
    )


def reference_forward(params, char_ids, word2vecs, flag, tag_mask, seq_lens):
    """Pure-JAX reference with identical semantics (for verification)."""
    hi = jax.lax.Precision.HIGHEST
    emb = jnp.take(params['emb'], char_ids, axis=0)
    mu = emb.mean(-1, keepdims=True)
    var = ((emb - mu) ** 2).mean(-1, keepdims=True)
    embn = (emb - mu) / jnp.sqrt(var + LN_EPS) * params['ln_g'][0] + params['ln_b'][0]
    x = jnp.concatenate([embn, word2vecs.astype(jnp.float32),
                         flag.astype(jnp.float32)[..., None]], axis=-1)
    valid = (jnp.arange(T)[None, :] < seq_lens[:, None]).astype(jnp.float32)

    def run_dir(wih, whh, b, reverse):
        h = jnp.zeros((B, H)); c = jnp.zeros((B, H))
        outs = [None] * T
        ts = range(T - 1, -1, -1) if reverse else range(T)
        for t in ts:
            m = valid[:, t][:, None]
            gates = (jnp.dot(x[:, t], wih, precision=hi)
                     + jnp.dot(h, whh, precision=hi) + b)
            i = jax.nn.sigmoid(gates[:, :H])
            f = jax.nn.sigmoid(gates[:, H:2 * H])
            g = jnp.tanh(gates[:, 2 * H:3 * H])
            o = jax.nn.sigmoid(gates[:, 3 * H:])
            c_new = f * c + i * g
            h_new = o * jnp.tanh(c_new)
            outs[t] = m * h_new
            h = m * h_new + (1 - m) * h
            c = m * c_new + (1 - m) * c
        return jnp.stack(outs, axis=1)

    yf = run_dir(params['wih_f'], params['whh_f'], params['b_f'][0], False)
    yb = run_dir(params['wih_b'], params['whh_b'], params['b_b'][0], True)
    y = jnp.concatenate([yf, yb], axis=-1)
    z = jnp.maximum(
        jnp.einsum('btd,dk->btk', y, params['w1'], precision=hi) + params['b1'][0], 0.0)
    logits = jnp.einsum('btd,dk->btk', z, params['w2'], precision=hi) + params['b2'][0]
    logits = logits * valid[..., None]
    return logits + ((1.0 - tag_mask.astype(jnp.float32)) * -100000.0)[:, None, :]


if __name__ == "__main__":
    key = jax.random.PRNGKey(0)
    kp, k1, k2, k3, k4 = jax.random.split(key, 5)
    params = init_params(kp)

    char_ids = jax.random.randint(k1, (B, T), 0, VOCAB)               # inputs['char']
    word2vecs = jax.random.normal(k2, (B, T, P), jnp.float32)         # inputs['word2vecs']
    flag = jax.random.bernoulli(k3, 0.5, (B, T)).astype(jnp.float32)  # inputs['flag']
    tag_mask = jax.random.bernoulli(k4, 0.5, (B, TAGS)).astype(jnp.float32)  # inputs['mask']
    # pack_padded_sequence (enforce_sorted=True) requires descending lengths
    seq_lens = jnp.array([T, 5], dtype=jnp.int32)

    y = charw2vflag_forward(params, char_ids, word2vecs, flag, tag_mask, seq_lens)
    jax.block_until_ready(y)

    y_ref = reference_forward(params, char_ids, word2vecs, flag, tag_mask, seq_lens)
    assert y.shape == (B, T, TAGS)
    assert bool(jnp.allclose(y, y_ref, rtol=2e-2, atol=2e-2)), "kernel vs reference mismatch"
    print("KERNEL_OK")
</pallas_src>

<mosaic_0001>
module attributes {stable_mosaic.version = 11 : i64} {
  func.func @charw2vflag_kernel(%arg0: memref<16x32xf32, #tpu.memory_space<vmem>>, %arg1: memref<16x95xf32, #tpu.memory_space<vmem>>, %arg2: memref<16x1xf32, #tpu.memory_space<vmem>>, %arg3: memref<16x1xf32, #tpu.memory_space<vmem>>, %arg4: memref<16x16xf32, #tpu.memory_space<vmem>>, %arg5: memref<1x32xf32, #tpu.memory_space<vmem>>, %arg6: memref<1x32xf32, #tpu.memory_space<vmem>>, %arg7: memref<32x256xf32, #tpu.memory_space<vmem>>, %arg8: memref<95x256xf32, #tpu.memory_space<vmem>>, %arg9: memref<1x256xf32, #tpu.memory_space<vmem>>, %arg10: memref<1x256xf32, #tpu.memory_space<vmem>>, %arg11: memref<32x128xf32, #tpu.memory_space<vmem>>, %arg12: memref<32x128xf32, #tpu.memory_space<vmem>>, %arg13: memref<64x128xf32, #tpu.memory_space<vmem>>, %arg14: memref<1x128xf32, #tpu.memory_space<vmem>>, %arg15: memref<128x16xf32, #tpu.memory_space<vmem>>, %arg16: memref<1x16xf32, #tpu.memory_space<vmem>>, %arg17: memref<16x16xf32, #tpu.memory_space<vmem>>, %arg18: memref<16x256xf32, #tpu.memory_space<vmem>>, %arg19: memref<16x64xf32, #tpu.memory_space<vmem>>) attributes {dimension_semantics = [], scalar_prefetch = 0 : i64, scratch_operands = 2 : i64, tpu.core_type = #tpu.core_type<tc>} {
    %c0 = arith.constant 0 : index
    %c0_0 = arith.constant 0 : index
    %0 = vector.load %arg0[%c0, %c0_0] : memref<16x32xf32, #tpu.memory_space<vmem>>, vector<16x32xf32>
    %cst = arith.constant dense<0.000000e+00> : vector<16xf32>
    %1 = vector.multi_reduction <add>, %0, %cst [1] : vector<16x32xf32> to vector<16xf32>
    %2 = vector.shape_cast %1 : vector<16xf32> to vector<16x1xf32>
    %cst_1 = arith.constant 3.200000e+01 : f32
    %3 = vector.broadcast %cst_1 : f32 to vector<16x1xf32>
    %4 = arith.divf %2, %3 : vector<16x1xf32>
    %5 = vector.broadcast %4 : vector<16x1xf32> to vector<16x32xf32>
    %6 = arith.subf %0, %5 : vector<16x32xf32>
    %7 = arith.mulf %6, %6 : vector<16x32xf32>
    %cst_2 = arith.constant dense<0.000000e+00> : vector<16xf32>
    %8 = vector.multi_reduction <add>, %7, %cst_2 [1] : vector<16x32xf32> to vector<16xf32>
    %9 = vector.shape_cast %8 : vector<16xf32> to vector<16x1xf32>
    %cst_3 = arith.constant 3.200000e+01 : f32
    %10 = vector.broadcast %cst_3 : f32 to vector<16x1xf32>
    %11 = arith.divf %9, %10 : vector<16x1xf32>
    %12 = vector.broadcast %4 : vector<16x1xf32> to vector<16x32xf32>
    %13 = arith.subf %0, %12 : vector<16x32xf32>
    %cst_4 = arith.constant 9.99999974E-6 : f32
    %14 = vector.broadcast %cst_4 : f32 to vector<16x1xf32>
    %15 = arith.addf %11, %14 : vector<16x1xf32>
    %16 = math.rsqrt %15 : vector<16x1xf32>
    %17 = vector.broadcast %16 : vector<16x1xf32> to vector<16x32xf32>
    %18 = arith.mulf %13, %17 : vector<16x32xf32>
    %c0_5 = arith.constant 0 : index
    %c0_6 = arith.constant 0 : index
    %19 = vector.load %arg5[%c0_5, %c0_6] : memref<1x32xf32, #tpu.memory_space<vmem>>, vector<1x32xf32>
    %20 = vector.broadcast %19 : vector<1x32xf32> to vector<16x32xf32>
    %21 = arith.mulf %18, %20 : vector<16x32xf32>
    %c0_7 = arith.constant 0 : index
    %c0_8 = arith.constant 0 : index
    %22 = vector.load %arg6[%c0_7, %c0_8] : memref<1x32xf32, #tpu.memory_space<vmem>>, vector<1x32xf32>
    %23 = vector.broadcast %22 : vector<1x32xf32> to vector<16x32xf32>
    %24 = arith.addf %21, %23 : vector<16x32xf32>
    %c0_9 = arith.constant 0 : index
    %c0_10 = arith.constant 0 : index
    %25 = vector.load %arg7[%c0_9, %c0_10] : memref<32x256xf32, #tpu.memory_space<vmem>>, vector<32x256xf32>
    %cst_11 = arith.constant dense<0.000000e+00> : vector<16x256xf32>
    %26 = tpu.matmul %24, %25, %cst_11 {dimension_numbers = #tpu.dot_dimension_numbers<[1], [0], [0], [1], [0, 0, 1, 1], [], []>} : vector<16x32xf32>, vector<32x256xf32>, vector<16x256xf32> -> vector<16x256xf32>
    %c0_12 = arith.constant 0 : index
    %c0_13 = arith.constant 0 : index
    %27 = vector.load %arg1[%c0_12, %c0_13] : memref<16x95xf32, #tpu.memory_space<vmem>>, vector<16x95xf32>
    %c0_14 = arith.constant 0 : index
    %c0_15 = arith.constant 0 : index
    %28 = vector.load %arg8[%c0_14, %c0_15] : memref<95x256xf32, #tpu.memory_space<vmem>>, vector<95x256xf32>
    %cst_16 = arith.constant dense<0.000000e+00> : vector<16x256xf32>
    %29 = tpu.matmul %27, %28, %cst_16 {dimension_numbers = #tpu.dot_dimension_numbers<[1], [0], [0], [1], [0, 0, 1, 1], [], []>} : vector<16x95xf32>, vector<95x256xf32>, vector<16x256xf32> -> vector<16x256xf32>
    %30 = arith.addf %26, %29 : vector<16x256xf32>
    %c0_17 = arith.constant 0 : index
    %c0_18 = arith.constant 0 : index
    %31 = vector.load %arg2[%c0_17, %c0_18] : memref<16x1xf32, #tpu.memory_space<vmem>>, vector<16x1xf32>
    %c0_19 = arith.constant 0 : index
    %c0_20 = arith.constant 0 : index
    %32 = vector.load %arg9[%c0_19, %c0_20] : memref<1x256xf32, #tpu.memory_space<vmem>>, vector<1x256xf32>
    %33 = vector.broadcast %31 : vector<16x1xf32> to vector<16x256xf32>
    %34 = vector.broadcast %32 : vector<1x256xf32> to vector<16x256xf32>
    %35 = arith.mulf %33, %34 : vector<16x256xf32>
    %36 = arith.addf %30, %35 : vector<16x256xf32>
    %c0_21 = arith.constant 0 : index
    %c0_22 = arith.constant 0 : index
    %37 = vector.load %arg10[%c0_21, %c0_22] : memref<1x256xf32, #tpu.memory_space<vmem>>, vector<1x256xf32>
    %38 = vector.broadcast %37 : vector<1x256xf32> to vector<16x256xf32>
    %39 = arith.addf %36, %38 : vector<16x256xf32>
    %c0_23 = arith.constant 0 : index
    %c0_24 = arith.constant 0 : index
    %40 = vector.load %arg18[%c0_23, %c0_24] : memref<16x256xf32, #tpu.memory_space<vmem>>, vector<16x256xf32>
    tpu.vector_store %arg18[%c0_23, %c0_24], %39 {strides = array<i32>} : memref<16x256xf32, #tpu.memory_space<vmem>>, vector<16x256xf32>,
    %c0_25 = arith.constant 0 : index
    %c0_26 = arith.constant 0 : index
    %41 = vector.load %arg11[%c0_25, %c0_26] : memref<32x128xf32, #tpu.memory_space<vmem>>, vector<32x128xf32>
    %c0_27 = arith.constant 0 : index
    %c0_28 = arith.constant 0 : index
    %42 = vector.load %arg12[%c0_27, %c0_28] : memref<32x128xf32, #tpu.memory_space<vmem>>, vector<32x128xf32>
    %cst_29 = arith.constant 0.000000e+00 : f32
    %43 = vector.broadcast %cst_29 : f32 to vector<2x32xf32>
    %c0_30 = arith.constant 0 : index
    %c0_31 = arith.constant 0 : index
    %44 = vector.load %arg3[%c0_30, %c0_31] : memref<16x1xf32, #tpu.memory_space<vmem>>, vector<2x1xf32>
    %c14 = arith.constant 14 : index
    %c0_32 = arith.constant 0 : index
    %45 = vector.load %arg3[%c14, %c0_32] : memref<16x1xf32, #tpu.memory_space<vmem>>, vector<2x1xf32>
    %c0_33 = arith.constant 0 : index
    %c0_34 = arith.constant 0 : index
    %46 = vector.load %arg18[%c0_33, %c0_34] : memref<16x256xf32, #tpu.memory_space<vmem>>, vector<2x128xf32>
    %cst_35 = arith.constant dense<0.000000e+00> : vector<2x128xf32>
    %47 = tpu.matmul %43, %41, %cst_35 {dimension_numbers = #tpu.dot_dimension_numbers<[1], [0], [0], [1], [0, 0, 1, 1], [], []>} : vector<2x32xf32>, vector<32x128xf32>, vector<2x128xf32> -> vector<2x128xf32>
    %48 = arith.addf %46, %47 : vector<2x128xf32>
    %49 = vector.extract_strided_slice %48 {offsets = [0, 0], sizes = [2, 32], strides = [1, 1]} : vector<2x128xf32> to vector<2x32xf32>
    %50 = arith.negf %49 : vector<2x32xf32>
    %51 = math.exp %50 : vector<2x32xf32>
    %cst_36 = arith.constant 1.000000e+00 : f32
    %52 = vector.broadcast %cst_36 : f32 to vector<2x32xf32>
    %53 = arith.addf %52, %51 : vector<2x32xf32>
    %54 = arith.divf %52, %53 : vector<2x32xf32>
    %55 = vector.extract_strided_slice %48 {offsets = [0, 32], sizes = [2, 32], strides = [1, 1]} : vector<2x128xf32> to vector<2x32xf32>
    %56 = arith.negf %55 : vector<2x32xf32>
    %57 = math.exp %56 : vector<2x32xf32>
    %cst_37 = arith.constant 1.000000e+00 : f32
    %58 = vector.broadcast %cst_37 : f32 to vector<2x32xf32>
    %59 = arith.addf %58, %57 : vector<2x32xf32>
    %60 = arith.divf %58, %59 : vector<2x32xf32>
    %61 = vector.extract_strided_slice %48 {offsets = [0, 64], sizes = [2, 32], strides = [1, 1]} : vector<2x128xf32> to vector<2x32xf32>
    %62 = math.tanh %61 : vector<2x32xf32>
    %63 = vector.extract_strided_slice %48 {offsets = [0, 96], sizes = [2, 32], strides = [1, 1]} : vector<2x128xf32> to vector<2x32xf32>
    %64 = arith.negf %63 : vector<2x32xf32>
    %65 = math.exp %64 : vector<2x32xf32>
    %cst_38 = arith.constant 1.000000e+00 : f32
    %66 = vector.broadcast %cst_38 : f32 to vector<2x32xf32>
    %67 = arith.addf %66, %65 : vector<2x32xf32>
    %68 = arith.divf %66, %67 : vector<2x32xf32>
    %69 = arith.mulf %60, %43 : vector<2x32xf32>
    %70 = arith.mulf %54, %62 : vector<2x32xf32>
    %71 = arith.addf %69, %70 : vector<2x32xf32>
    %72 = math.tanh %71 : vector<2x32xf32>
    %73 = arith.mulf %68, %72 : vector<2x32xf32>
    %c14_39 = arith.constant 14 : index
    %c128 = arith.constant 128 : index
    %74 = vector.load %arg18[%c14_39, %c128] : memref<16x256xf32, #tpu.memory_space<vmem>>, vector<2x128xf32>
    %cst_40 = arith.constant dense<0.000000e+00> : vector<2x128xf32>
    %75 = tpu.matmul %43, %42, %cst_40 {dimension_numbers = #tpu.dot_dimension_numbers<[1], [0], [0], [1], [0, 0, 1, 1], [], []>} : vector<2x32xf32>, vector<32x128xf32>, vector<2x128xf32> -> vector<2x128xf32>
    %76 = arith.addf %74, %75 : vector<2x128xf32>
    %77 = vector.extract_strided_slice %76 {offsets = [0, 0], sizes = [2, 32], strides = [1, 1]} : vector<2x128xf32> to vector<2x32xf32>
    %78 = arith.negf %77 : vector<2x32xf32>
    %79 = math.exp %78 : vector<2x32xf32>
    %cst_41 = arith.constant 1.000000e+00 : f32
    %80 = vector.broadcast %cst_41 : f32 to vector<2x32xf32>
    %81 = arith.addf %80, %79 : vector<2x32xf32>
    %82 = arith.divf %80, %81 : vector<2x32xf32>
    %83 = vector.extract_strided_slice %76 {offsets = [0, 32], sizes = [2, 32], strides = [1, 1]} : vector<2x128xf32> to vector<2x32xf32>
    %84 = arith.negf %83 : vector<2x32xf32>
    %85 = math.exp %84 : vector<2x32xf32>
    %cst_42 = arith.constant 1.000000e+00 : f32
    %86 = vector.broadcast %cst_42 : f32 to vector<2x32xf32>
    %87 = arith.addf %86, %85 : vector<2x32xf32>
    %88 = arith.divf %86, %87 : vector<2x32xf32>
    %89 = vector.extract_strided_slice %76 {offsets = [0, 64], sizes = [2, 32], strides = [1, 1]} : vector<2x128xf32> to vector<2x32xf32>
    %90 = math.tanh %89 : vector<2x32xf32>
    %91 = vector.extract_strided_slice %76 {offsets = [0, 96], sizes = [2, 32], strides = [1, 1]} : vector<2x128xf32> to vector<2x32xf32>
    %92 = arith.negf %91 : vector<2x32xf32>
    %93 = math.exp %92 : vector<2x32xf32>
    %cst_43 = arith.constant 1.000000e+00 : f32
    %94 = vector.broadcast %cst_43 : f32 to vector<2x32xf32>
    %95 = arith.addf %94, %93 : vector<2x32xf32>
    %96 = arith.divf %94, %95 : vector<2x32xf32>
    %97 = arith.mulf %88, %43 : vector<2x32xf32>
    %98 = arith.mulf %82, %90 : vector<2x32xf32>
    %99 = arith.addf %97, %98 : vector<2x32xf32>
    %100 = math.tanh %99 : vector<2x32xf32>
    %101 = arith.mulf %96, %100 : vector<2x32xf32>
    %102 = vector.broadcast %44 : vector<2x1xf32> to vector<2x32xf32>
    %103 = arith.mulf %102, %73 : vector<2x32xf32>
    %c0_44 = arith.constant 0 : index
    %c0_45 = arith.constant 0 : index
    %104 = vector.load %arg19[%c0_44, %c0_45] : memref<16x64xf32, #tpu.memory_space<vmem>>, vector<2x32xf32>
    tpu.vector_store %arg19[%c0_44, %c0_45], %103 {strides = array<i32>} : memref<16x64xf32, #tpu.memory_space<vmem>>, vector<2x32xf32>,
    %105 = vector.broadcast %45 : vector<2x1xf32> to vector<2x32xf32>
    %106 = arith.mulf %105, %101 : vector<2x32xf32>
    %c14_46 = arith.constant 14 : index
    %c32 = arith.constant 32 : index
    %107 = vector.load %arg19[%c14_46, %c32] : memref<16x64xf32, #tpu.memory_space<vmem>>, vector<2x32xf32>
    tpu.vector_store %arg19[%c14_46, %c32], %106 {strides = array<i32>} : memref<16x64xf32, #tpu.memory_space<vmem>>, vector<2x32xf32>,
    %108 = vector.broadcast %44 : vector<2x1xf32> to vector<2x32xf32>
    %109 = arith.mulf %108, %73 : vector<2x32xf32>
    %cst_47 = arith.constant 1.000000e+00 : f32
    %110 = vector.broadcast %cst_47 : f32 to vector<2x1xf32>
    %111 = arith.subf %110, %44 : vector<2x1xf32>
    %112 = vector.broadcast %111 : vector<2x1xf32> to vector<2x32xf32>
    %113 = arith.mulf %112, %43 : vector<2x32xf32>
    %114 = arith.addf %109, %113 : vector<2x32xf32>
    %115 = vector.broadcast %44 : vector<2x1xf32> to vector<2x32xf32>
    %116 = arith.mulf %115, %71 : vector<2x32xf32>
    %cst_48 = arith.constant 1.000000e+00 : f32
    %117 = vector.broadcast %cst_48 : f32 to vector<2x1xf32>
    %118 = arith.subf %117, %44 : vector<2x1xf32>
    %119 = vector.broadcast %118 : vector<2x1xf32> to vector<2x32xf32>
    %120 = arith.mulf %119, %43 : vector<2x32xf32>
    %121 = arith.addf %116, %120 : vector<2x32xf32>
    %122 = vector.broadcast %45 : vector<2x1xf32> to vector<2x32xf32>
    %123 = arith.mulf %122, %101 : vector<2x32xf32>
    %cst_49 = arith.constant 1.000000e+00 : f32
    %124 = vector.broadcast %cst_49 : f32 to vector<2x1xf32>
    %125 = arith.subf %124, %45 : vector<2x1xf32>
    %126 = vector.broadcast %125 : vector<2x1xf32> to vector<2x32xf32>
    %127 = arith.mulf %126, %43 : vector<2x32xf32>
    %128 = arith.addf %123, %127 : vector<2x32xf32>
    %129 = vector.broadcast %45 : vector<2x1xf32> to vector<2x32xf32>
    %130 = arith.mulf %129, %99 : vector<2x32xf32>
    %cst_50 = arith.constant 1.000000e+00 : f32
    %131 = vector.broadcast %cst_50 : f32 to vector<2x1xf32>
    %132 = arith.subf %131, %45 : vector<2x1xf32>
    %133 = vector.broadcast %132 : vector<2x1xf32> to vector<2x32xf32>
    %134 = arith.mulf %133, %43 : vector<2x32xf32>
    %135 = arith.addf %130, %134 : vector<2x32xf32>
    %c2 = arith.constant 2 : index
    %c0_51 = arith.constant 0 : index
    %136 = vector.load %arg3[%c2, %c0_51] : memref<16x1xf32, #tpu.memory_space<vmem>>, vector<2x1xf32>
    %c12 = arith.constant 12 : index
    %c0_52 = arith.constant 0 : index
    %137 = vector.load %arg3[%c12, %c0_52] : memref<16x1xf32, #tpu.memory_space<vmem>>, vector<2x1xf32>
    %c2_53 = arith.constant 2 : index
    %c0_54 = arith.constant 0 : index
    %138 = vector.load %arg18[%c2_53, %c0_54] : memref<16x256xf32, #tpu.memory_space<vmem>>, vector<2x128xf32>
    %cst_55 = arith.constant dense<0.000000e+00> : vector<2x128xf32>
    %139 = tpu.matmul %114, %41, %cst_55 {dimension_numbers = #tpu.dot_dimension_numbers<[1], [0], [0], [1], [0, 0, 1, 1], [], []>} : vector<2x32xf32>, vector<32x128xf32>, vector<2x128xf32> -> vector<2x128xf32>
    %140 = arith.addf %138, %139 : vector<2x128xf32>
    %141 = vector.extract_strided_slice %140 {offsets = [0, 0], sizes = [2, 32], strides = [1, 1]} : vector<2x128xf32> to vector<2x32xf32>
    %142 = arith.negf %141 : vector<2x32xf32>
    %143 = math.exp %142 : vector<2x32xf32>
    %cst_56 = arith.constant 1.000000e+00 : f32
    %144 = vector.broadcast %cst_56 : f32 to vector<2x32xf32>
    %145 = arith.addf %144, %143 : vector<2x32xf32>
    %146 = arith.divf %144, %145 : vector<2x32xf32>
    %147 = vector.extract_strided_slice %140 {offsets = [0, 32], sizes = [2, 32], strides = [1, 1]} : vector<2x128xf32> to vector<2x32xf32>
    %148 = arith.negf %147 : vector<2x32xf32>
    %149 = math.exp %148 : vector<2x32xf32>
    %cst_57 = arith.constant 1.000000e+00 : f32
    %150 = vector.broadcast %cst_57 : f32 to vector<2x32xf32>
    %151 = arith.addf %150, %149 : vector<2x32xf32>
    %152 = arith.divf %150, %151 : vector<2x32xf32>
    %153 = vector.extract_strided_slice %140 {offsets = [0, 64], sizes = [2, 32], strides = [1, 1]} : vector<2x128xf32> to vector<2x32xf32>
    %154 = math.tanh %153 : vector<2x32xf32>
    %155 = vector.extract_strided_slice %140 {offsets = [0, 96], sizes = [2, 32], strides = [1, 1]} : vector<2x128xf32> to vector<2x32xf32>
    %156 = arith.negf %155 : vector<2x32xf32>
    %157 = math.exp %156 : vector<2x32xf32>
    %cst_58 = arith.constant 1.000000e+00 : f32
    %158 = vector.broadcast %cst_58 : f32 to vector<2x32xf32>
    %159 = arith.addf %158, %157 : vector<2x32xf32>
    %160 = arith.divf %158, %159 : vector<2x32xf32>
    %161 = arith.mulf %152, %121 : vector<2x32xf32>
    %162 = arith.mulf %146, %154 : vector<2x32xf32>
    %163 = arith.addf %161, %162 : vector<2x32xf32>
    %164 = math.tanh %163 : vector<2x32xf32>
    %165 = arith.mulf %160, %164 : vector<2x32xf32>
    %c12_59 = arith.constant 12 : index
    %c128_60 = arith.constant 128 : index
    %166 = vector.load %arg18[%c12_59, %c128_60] : memref<16x256xf32, #tpu.memory_space<vmem>>, vector<2x128xf32>
    %cst_61 = arith.constant dense<0.000000e+00> : vector<2x128xf32>
    %167 = tpu.matmul %128, %42, %cst_61 {dimension_numbers = #tpu.dot_dimension_numbers<[1], [0], [0], [1], [0, 0, 1, 1], [], []>} : vector<2x32xf32>, vector<32x128xf32>, vector<2x128xf32> -> vector<2x128xf32>
    %168 = arith.addf %166, %167 : vector<2x128xf32>
    %169 = vector.extract_strided_slice %168 {offsets = [0, 0], sizes = [2, 32], strides = [1, 1]} : vector<2x128xf32> to vector<2x32xf32>
    %170 = arith.negf %169 : vector<2x32xf32>
    %171 = math.exp %170 : vector<2x32xf32>
    %cst_62 = arith.constant 1.000000e+00 : f32
    %172 = vector.broadcast %cst_62 : f32 to vector<2x32xf32>
    %173 = arith.addf %172, %171 : vector<2x32xf32>
    %174 = arith.divf %172, %173 : vector<2x32xf32>
    %175 = vector.extract_strided_slice %168 {offsets = [0, 32], sizes = [2, 32], strides = [1, 1]} : vector<2x128xf32> to vector<2x32xf32>
    %176 = arith.negf %175 : vector<2x32xf32>
    %177 = math.exp %176 : vector<2x32xf32>
    %cst_63 = arith.constant 1.000000e+00 : f32
    %178 = vector.broadcast %cst_63 : f32 to vector<2x32xf32>
    %179 = arith.addf %178, %177 : vector<2x32xf32>
    %180 = arith.divf %178, %179 : vector<2x32xf32>
    %181 = vector.extract_strided_slice %168 {offsets = [0, 64], sizes = [2, 32], strides = [1, 1]} : vector<2x128xf32> to vector<2x32xf32>
    %182 = math.tanh %181 : vector<2x32xf32>
    %183 = vector.extract_strided_slice %168 {offsets = [0, 96], sizes = [2, 32], strides = [1, 1]} : vector<2x128xf32> to vector<2x32xf32>
    %184 = arith.negf %183 : vector<2x32xf32>
    %185 = math.exp %184 : vector<2x32xf32>
    %cst_64 = arith.constant 1.000000e+00 : f32
    %186 = vector.broadcast %cst_64 : f32 to vector<2x32xf32>
    %187 = arith.addf %186, %185 : vector<2x32xf32>
    %188 = arith.divf %186, %187 : vector<2x32xf32>
    %189 = arith.mulf %180, %135 : vector<2x32xf32>
    %190 = arith.mulf %174, %182 : vector<2x32xf32>
    %191 = arith.addf %189, %190 : vector<2x32xf32>
    %192 = math.tanh %191 : vector<2x32xf32>
    %193 = arith.mulf %188, %192 : vector<2x32xf32>
    %194 = vector.broadcast %136 : vector<2x1xf32> to vector<2x32xf32>
    %195 = arith.mulf %194, %165 : vector<2x32xf32>
    %c2_65 = arith.constant 2 : index
    %c0_66 = arith.constant 0 : index
    %196 = vector.load %arg19[%c2_65, %c0_66] : memref<16x64xf32, #tpu.memory_space<vmem>>, vector<2x32xf32>
    tpu.vector_store %arg19[%c2_65, %c0_66], %195 {strides = array<i32>} : memref<16x64xf32, #tpu.memory_space<vmem>>, vector<2x32xf32>,
    %197 = vector.broadcast %137 : vector<2x1xf32> to vector<2x32xf32>
    %198 = arith.mulf %197, %193 : vector<2x32xf32>
    %c12_67 = arith.constant 12 : index
    %c32_68 = arith.constant 32 : index
    %199 = vector.load %arg19[%c12_67, %c32_68] : memref<16x64xf32, #tpu.memory_space<vmem>>, vector<2x32xf32>
    tpu.vector_store %arg19[%c12_67, %c32_68], %198 {strides = array<i32>} : memref<16x64xf32, #tpu.memory_space<vmem>>, vector<2x32xf32>,
    %200 = vector.broadcast %136 : vector<2x1xf32> to vector<2x32xf32>
    %201 = arith.mulf %200, %165 : vector<2x32xf32>
    %cst_69 = arith.constant 1.000000e+00 : f32
    %202 = vector.broadcast %cst_69 : f32 to vector<2x1xf32>
    %203 = arith.subf %202, %136 : vector<2x1xf32>
    %204 = vector.broadcast %203 : vector<2x1xf32> to vector<2x32xf32>
    %205 = arith.mulf %204, %114 : vector<2x32xf32>
    %206 = arith.addf %201, %205 : vector<2x32xf32>
    %207 = vector.broadcast %136 : vector<2x1xf32> to vector<2x32xf32>
    %208 = arith.mulf %207, %163 : vector<2x32xf32>
    %cst_70 = arith.constant 1.000000e+00 : f32
    %209 = vector.broadcast %cst_70 : f32 to vector<2x1xf32>
    %210 = arith.subf %209, %136 : vector<2x1xf32>
    %211 = vector.broadcast %210 : vector<2x1xf32> to vector<2x32xf32>
    %212 = arith.mulf %211, %121 : vector<2x32xf32>
    %213 = arith.addf %208, %212 : vector<2x32xf32>
    %214 = vector.broadcast %137 : vector<2x1xf32> to vector<2x32xf32>
    %215 = arith.mulf %214, %193 : vector<2x32xf32>
    %cst_71 = arith.constant 1.000000e+00 : f32
    %216 = vector.broadcast %cst_71 : f32 to vector<2x1xf32>
    %217 = arith.subf %216, %137 : vector<2x1xf32>
    %218 = vector.broadcast %217 : vector<2x1xf32> to vector<2x32xf32>
    %219 = arith.mulf %218, %128 : vector<2x32xf32>
    %220 = arith.addf %215, %219 : vector<2x32xf32>
    %221 = vector.broadcast %137 : vector<2x1xf32> to vector<2x32xf32>
    %222 = arith.mulf %221, %191 : vector<2x32xf32>
    %cst_72 = arith.constant 1.000000e+00 : f32
    %223 = vector.broadcast %cst_72 : f32 to vector<2x1xf32>
    %224 = arith.subf %223, %137 : vector<2x1xf32>
    %225 = vector.broadcast %224 : vector<2x1xf32> to vector<2x32xf32>
    %226 = arith.mulf %225, %135 : vector<2x32xf32>
    %227 = arith.addf %222, %226 : vector<2x32xf32>
    %c4 = arith.constant 4 : index
    %c0_73 = arith.constant 0 : index
    %228 = vector.load %arg3[%c4, %c0_73] : memref<16x1xf32, #tpu.memory_space<vmem>>, vector<2x1xf32>
    %c10 = arith.constant 10 : index
    %c0_74 = arith.constant 0 : index
    %229 = vector.load %arg3[%c10, %c0_74] : memref<16x1xf32, #tpu.memory_space<vmem>>, vector<2x1xf32>
    %c4_75 = arith.constant 4 : index
    %c0_76 = arith.constant 0 : index
    %230 = vector.load %arg18[%c4_75, %c0_76] : memref<16x256xf32, #tpu.memory_space<vmem>>, vector<2x128xf32>
    %cst_77 = arith.constant dense<0.000000e+00> : vector<2x128xf32>
    %231 = tpu.matmul %206, %41, %cst_77 {dimension_numbers = #tpu.dot_dimension_numbers<[1], [0], [0], [1], [0, 0, 1, 1], [], []>} : vector<2x32xf32>, vector<32x128xf32>, vector<2x128xf32> -> vector<2x128xf32>
    %232 = arith.addf %230, %231 : vector<2x128xf32>
    %233 = vector.extract_strided_slice %232 {offsets = [0, 0], sizes = [2, 32], strides = [1, 1]} : vector<2x128xf32> to vector<2x32xf32>
    %234 = arith.negf %233 : vector<2x32xf32>
    %235 = math.exp %234 : vector<2x32xf32>
    %cst_78 = arith.constant 1.000000e+00 : f32
    %236 = vector.broadcast %cst_78 : f32 to vector<2x32xf32>
    %237 = arith.addf %236, %235 : vector<2x32xf32>
    %238 = arith.divf %236, %237 : vector<2x32xf32>
    %239 = vector.extract_strided_slice %232 {offsets = [0, 32], sizes = [2, 32], strides = [1, 1]} : vector<2x128xf32> to vector<2x32xf32>
    %240 = arith.negf %239 : vector<2x32xf32>
    %241 = math.exp %240 : vector<2x32xf32>
    %cst_79 = arith.constant 1.000000e+00 : f32
    %242 = vector.broadcast %cst_79 : f32 to vector<2x32xf32>
    %243 = arith.addf %242, %241 : vector<2x32xf32>
    %244 = arith.divf %242, %243 : vector<2x32xf32>
    %245 = vector.extract_strided_slice %232 {offsets = [0, 64], sizes = [2, 32], strides = [1, 1]} : vector<2x128xf32> to vector<2x32xf32>
    %246 = math.tanh %245 : vector<2x32xf32>
    %247 = vector.extract_strided_slice %232 {offsets = [0, 96], sizes = [2, 32], strides = [1, 1]} : vector<2x128xf32> to vector<2x32xf32>
    %248 = arith.negf %247 : vector<2x32xf32>
    %249 = math.exp %248 : vector<2x32xf32>
    %cst_80 = arith.constant 1.000000e+00 : f32
    %250 = vector.broadcast %cst_80 : f32 to vector<2x32xf32>
    %251 = arith.addf %250, %249 : vector<2x32xf32>
    %252 = arith.divf %250, %251 : vector<2x32xf32>
    %253 = arith.mulf %244, %213 : vector<2x32xf32>
    %254 = arith.mulf %238, %246 : vector<2x32xf32>
    %255 = arith.addf %253, %254 : vector<2x32xf32>
    %256 = math.tanh %255 : vector<2x32xf32>
    %257 = arith.mulf %252, %256 : vector<2x32xf32>
    %c10_81 = arith.constant 10 : index
    %c128_82 = arith.constant 128 : index
    %258 = vector.load %arg18[%c10_81, %c128_82] : memref<16x256xf32, #tpu.memory_space<vmem>>, vector<2x128xf32>
    %cst_83 = arith.constant dense<0.000000e+00> : vector<2x128xf32>
    %259 = tpu.matmul %220, %42, %cst_83 {dimension_numbers = #tpu.dot_dimension_numbers<[1], [0], [0], [1], [0, 0, 1, 1], [], []>} : vector<2x32xf32>, vector<32x128xf32>, vector<2x128xf32> -> vector<2x128xf32>
    %260 = arith.addf %258, %259 : vector<2x128xf32>
    %261 = vector.extract_strided_slice %260 {offsets = [0, 0], sizes = [2, 32], strides = [1, 1]} : vector<2x128xf32> to vector<2x32xf32>
    %262 = arith.negf %261 : vector<2x32xf32>
    %263 = math.exp %262 : vector<2x32xf32>
    %cst_84 = arith.constant 1.000000e+00 : f32
    %264 = vector.broadcast %cst_84 : f32 to vector<2x32xf32>
    %265 = arith.addf %264, %263 : vector<2x32xf32>
    %266 = arith.divf %264, %265 : vector<2x32xf32>
    %267 = vector.extract_strided_slice %260 {offsets = [0, 32], sizes = [2, 32], strides = [1, 1]} : vector<2x128xf32> to vector<2x32xf32>
    %268 = arith.negf %267 : vector<2x32xf32>
    %269 = math.exp %268 : vector<2x32xf32>
    %cst_85 = arith.constant 1.000000e+00 : f32
    %270 = vector.broadcast %cst_85 : f32 to vector<2x32xf32>
    %271 = arith.addf %270, %269 : vector<2x32xf32>
    %272 = arith.divf %270, %271 : vector<2x32xf32>
    %273 = vector.extract_strided_slice %260 {offsets = [0, 64], sizes = [2, 32], strides = [1, 1]} : vector<2x128xf32> to vector<2x32xf32>
    %274 = math.tanh %273 : vector<2x32xf32>
    %275 = vector.extract_strided_slice %260 {offsets = [0, 96], sizes = [2, 32], strides = [1, 1]} : vector<2x128xf32> to vector<2x32xf32>
    %276 = arith.negf %275 : vector<2x32xf32>
    %277 = math.exp %276 : vector<2x32xf32>
    %cst_86 = arith.constant 1.000000e+00 : f32
    %278 = vector.broadcast %cst_86 : f32 to vector<2x32xf32>
    %279 = arith.addf %278, %277 : vector<2x32xf32>
    %280 = arith.divf %278, %279 : vector<2x32xf32>
    %281 = arith.mulf %272, %227 : vector<2x32xf32>
    %282 = arith.mulf %266, %274 : vector<2x32xf32>
    %283 = arith.addf %281, %282 : vector<2x32xf32>
    %284 = math.tanh %283 : vector<2x32xf32>
    %285 = arith.mulf %280, %284 : vector<2x32xf32>
    %286 = vector.broadcast %228 : vector<2x1xf32> to vector<2x32xf32>
    %287 = arith.mulf %286, %257 : vector<2x32xf32>
    %c4_87 = arith.constant 4 : index
    %c0_88 = arith.constant 0 : index
    %288 = vector.load %arg19[%c4_87, %c0_88] : memref<16x64xf32, #tpu.memory_space<vmem>>, vector<2x32xf32>
    tpu.vector_store %arg19[%c4_87, %c0_88], %287 {strides = array<i32>} : memref<16x64xf32, #tpu.memory_space<vmem>>, vector<2x32xf32>,
    %289 = vector.broadcast %229 : vector<2x1xf32> to vector<2x32xf32>
    %290 = arith.mulf %289, %285 : vector<2x32xf32>
    %c10_89 = arith.constant 10 : index
    %c32_90 = arith.constant 32 : index
    %291 = vector.load %arg19[%c10_89, %c32_90] : memref<16x64xf32, #tpu.memory_space<vmem>>, vector<2x32xf32>
    tpu.vector_store %arg19[%c10_89, %c32_90], %290 {strides = array<i32>} : memref<16x64xf32, #tpu.memory_space<vmem>>, vector<2x32xf32>,
    %292 = vector.broadcast %228 : vector<2x1xf32> to vector<2x32xf32>
    %293 = arith.mulf %292, %257 : vector<2x32xf32>
    %cst_91 = arith.constant 1.000000e+00 : f32
    %294 = vector.broadcast %cst_91 : f32 to vector<2x1xf32>
    %295 = arith.subf %294, %228 : vector<2x1xf32>
    %296 = vector.broadcast %295 : vector<2x1xf32> to vector<2x32xf32>
    %297 = arith.mulf %296, %206 : vector<2x32xf32>
    %298 = arith.addf %293, %297 : vector<2x32xf32>
    %299 = vector.broadcast %228 : vector<2x1xf32> to vector<2x32xf32>
    %300 = arith.mulf %299, %255 : vector<2x32xf32>
    %cst_92 = arith.constant 1.000000e+00 : f32
    %301 = vector.broadcast %cst_92 : f32 to vector<2x1xf32>
    %302 = arith.subf %301, %228 : vector<2x1xf32>
    %303 = vector.broadcast %302 : vector<2x1xf32> to vector<2x32xf32>
    %304 = arith.mulf %303, %213 : vector<2x32xf32>
    %305 = arith.addf %300, %304 : vector<2x32xf32>
    %306 = vector.broadcast %229 : vector<2x1xf32> to vector<2x32xf32>
    %307 = arith.mulf %306, %285 : vector<2x32xf32>
    %cst_93 = arith.constant 1.000000e+00 : f32
    %308 = vector.broadcast %cst_93 : f32 to vector<2x1xf32>
    %309 = arith.subf %308, %229 : vector<2x1xf32>
    %310 = vector.broadcast %309 : vector<2x1xf32> to vector<2x32xf32>
    %311 = arith.mulf %310, %220 : vector<2x32xf32>
    %312 = arith.addf %307, %311 : vector<2x32xf32>
    %313 = vector.broadcast %229 : vector<2x1xf32> to vector<2x32xf32>
    %314 = arith.mulf %313, %283 : vector<2x32xf32>
    %cst_94 = arith.constant 1.000000e+00 : f32
    %315 = vector.broadcast %cst_94 : f32 to vector<2x1xf32>
    %316 = arith.subf %315, %229 : vector<2x1xf32>
    %317 = vector.broadcast %316 : vector<2x1xf32> to vector<2x32xf32>
    %318 = arith.mulf %317, %227 : vector<2x32xf32>
    %319 = arith.addf %314, %318 : vector<2x32xf32>
    %c6 = arith.constant 6 : index
    %c0_95 = arith.constant 0 : index
    %320 = vector.load %arg3[%c6, %c0_95] : memref<16x1xf32, #tpu.memory_space<vmem>>, vector<2x1xf32>
    %c8 = arith.constant 8 : index
    %c0_96 = arith.constant 0 : index
    %321 = vector.load %arg3[%c8, %c0_96] : memref<16x1xf32, #tpu.memory_space<vmem>>, vector<2x1xf32>
    %c6_97 = arith.constant 6 : index
    %c0_98 = arith.constant 0 : index
    %322 = vector.load %arg18[%c6_97, %c0_98] : memref<16x256xf32, #tpu.memory_space<vmem>>, vector<2x128xf32>
    %cst_99 = arith.constant dense<0.000000e+00> : vector<2x128xf32>
    %323 = tpu.matmul %298, %41, %cst_99 {dimension_numbers = #tpu.dot_dimension_numbers<[1], [0], [0], [1], [0, 0, 1, 1], [], []>} : vector<2x32xf32>, vector<32x128xf32>, vector<2x128xf32> -> vector<2x128xf32>
    %324 = arith.addf %322, %323 : vector<2x128xf32>
    %325 = vector.extract_strided_slice %324 {offsets = [0, 0], sizes = [2, 32], strides = [1, 1]} : vector<2x128xf32> to vector<2x32xf32>
    %326 = arith.negf %325 : vector<2x32xf32>
    %327 = math.exp %326 : vector<2x32xf32>
    %cst_100 = arith.constant 1.000000e+00 : f32
    %328 = vector.broadcast %cst_100 : f32 to vector<2x32xf32>
    %329 = arith.addf %328, %327 : vector<2x32xf32>
    %330 = arith.divf %328, %329 : vector<2x32xf32>
    %331 = vector.extract_strided_slice %324 {offsets = [0, 32], sizes = [2, 32], strides = [1, 1]} : vector<2x128xf32> to vector<2x32xf32>
    %332 = arith.negf %331 : vector<2x32xf32>
    %333 = math.exp %332 : vector<2x32xf32>
    %cst_101 = arith.constant 1.000000e+00 : f32
    %334 = vector.broadcast %cst_101 : f32 to vector<2x32xf32>
    %335 = arith.addf %334, %333 : vector<2x32xf32>
    %336 = arith.divf %334, %335 : vector<2x32xf32>
    %337 = vector.extract_strided_slice %324 {offsets = [0, 64], sizes = [2, 32], strides = [1, 1]} : vector<2x128xf32> to vector<2x32xf32>
    %338 = math.tanh %337 : vector<2x32xf32>
    %339 = vector.extract_strided_slice %324 {offsets = [0, 96], sizes = [2, 32], strides = [1, 1]} : vector<2x128xf32> to vector<2x32xf32>
    %340 = arith.negf %339 : vector<2x32xf32>
    %341 = math.exp %340 : vector<2x32xf32>
    %cst_102 = arith.constant 1.000000e+00 : f32
    %342 = vector.broadcast %cst_102 : f32 to vector<2x32xf32>
    %343 = arith.addf %342, %341 : vector<2x32xf32>
    %344 = arith.divf %342, %343 : vector<2x32xf32>
    %345 = arith.mulf %336, %305 : vector<2x32xf32>
    %346 = arith.mulf %330, %338 : vector<2x32xf32>
    %347 = arith.addf %345, %346 : vector<2x32xf32>
    %348 = math.tanh %347 : vector<2x32xf32>
    %349 = arith.mulf %344, %348 : vector<2x32xf32>
    %c8_103 = arith.constant 8 : index
    %c128_104 = arith.constant 128 : index
    %350 = vector.load %arg18[%c8_103, %c128_104] : memref<16x256xf32, #tpu.memory_space<vmem>>, vector<2x128xf32>
    %cst_105 = arith.constant dense<0.000000e+00> : vector<2x128xf32>
    %351 = tpu.matmul %312, %42, %cst_105 {dimension_numbers = #tpu.dot_dimension_numbers<[1], [0], [0], [1], [0, 0, 1, 1], [], []>} : vector<2x32xf32>, vector<32x128xf32>, vector<2x128xf32> -> vector<2x128xf32>
    %352 = arith.addf %350, %351 : vector<2x128xf32>
    %353 = vector.extract_strided_slice %352 {offsets = [0, 0], sizes = [2, 32], strides = [1, 1]} : vector<2x128xf32> to vector<2x32xf32>
    %354 = arith.negf %353 : vector<2x32xf32>
    %355 = math.exp %354 : vector<2x32xf32>
    %cst_106 = arith.constant 1.000000e+00 : f32
    %356 = vector.broadcast %cst_106 : f32 to vector<2x32xf32>
    %357 = arith.addf %356, %355 : vector<2x32xf32>
    %358 = arith.divf %356, %357 : vector<2x32xf32>
    %359 = vector.extract_strided_slice %352 {offsets = [0, 32], sizes = [2, 32], strides = [1, 1]} : vector<2x128xf32> to vector<2x32xf32>
    %360 = arith.negf %359 : vector<2x32xf32>
    %361 = math.exp %360 : vector<2x32xf32>
    %cst_107 = arith.constant 1.000000e+00 : f32
    %362 = vector.broadcast %cst_107 : f32 to vector<2x32xf32>
    %363 = arith.addf %362, %361 : vector<2x32xf32>
    %364 = arith.divf %362, %363 : vector<2x32xf32>
    %365 = vector.extract_strided_slice %352 {offsets = [0, 64], sizes = [2, 32], strides = [1, 1]} : vector<2x128xf32> to vector<2x32xf32>
    %366 = math.tanh %365 : vector<2x32xf32>
    %367 = vector.extract_strided_slice %352 {offsets = [0, 96], sizes = [2, 32], strides = [1, 1]} : vector<2x128xf32> to vector<2x32xf32>
    %368 = arith.negf %367 : vector<2x32xf32>
    %369 = math.exp %368 : vector<2x32xf32>
    %cst_108 = arith.constant 1.000000e+00 : f32
    %370 = vector.broadcast %cst_108 : f32 to vector<2x32xf32>
    %371 = arith.addf %370, %369 : vector<2x32xf32>
    %372 = arith.divf %370, %371 : vector<2x32xf32>
    %373 = arith.mulf %364, %319 : vector<2x32xf32>
    %374 = arith.mulf %358, %366 : vector<2x32xf32>
    %375 = arith.addf %373, %374 : vector<2x32xf32>
    %376 = math.tanh %375 : vector<2x32xf32>
    %377 = arith.mulf %372, %376 : vector<2x32xf32>
    %378 = vector.broadcast %320 : vector<2x1xf32> to vector<2x32xf32>
    %379 = arith.mulf %378, %349 : vector<2x32xf32>
    %c6_109 = arith.constant 6 : index
    %c0_110 = arith.constant 0 : index
    %380 = vector.load %arg19[%c6_109, %c0_110] : memref<16x64xf32, #tpu.memory_space<vmem>>, vector<2x32xf32>
    tpu.vector_store %arg19[%c6_109, %c0_110], %379 {strides = array<i32>} : memref<16x64xf32, #tpu.memory_space<vmem>>, vector<2x32xf32>,
    %381 = vector.broadcast %321 : vector<2x1xf32> to vector<2x32xf32>
    %382 = arith.mulf %381, %377 : vector<2x32xf32>
    %c8_111 = arith.constant 8 : index
    %c32_112 = arith.constant 32 : index
    %383 = vector.load %arg19[%c8_111, %c32_112] : memref<16x64xf32, #tpu.memory_space<vmem>>, vector<2x32xf32>
    tpu.vector_store %arg19[%c8_111, %c32_112], %382 {strides = array<i32>} : memref<16x64xf32, #tpu.memory_space<vmem>>, vector<2x32xf32>,
    %384 = vector.broadcast %320 : vector<2x1xf32> to vector<2x32xf32>
    %385 = arith.mulf %384, %349 : vector<2x32xf32>
    %cst_113 = arith.constant 1.000000e+00 : f32
    %386 = vector.broadcast %cst_113 : f32 to vector<2x1xf32>
    %387 = arith.subf %386, %320 : vector<2x1xf32>
    %388 = vector.broadcast %387 : vector<2x1xf32> to vector<2x32xf32>
    %389 = arith.mulf %388, %298 : vector<2x32xf32>
    %390 = arith.addf %385, %389 : vector<2x32xf32>
    %391 = vector.broadcast %320 : vector<2x1xf32> to vector<2x32xf32>
    %392 = arith.mulf %391, %347 : vector<2x32xf32>
    %cst_114 = arith.constant 1.000000e+00 : f32
    %393 = vector.broadcast %cst_114 : f32 to vector<2x1xf32>
    %394 = arith.subf %393, %320 : vector<2x1xf32>
    %395 = vector.broadcast %394 : vector<2x1xf32> to vector<2x32xf32>
    %396 = arith.mulf %395, %305 : vector<2x32xf32>
    %397 = arith.addf %392, %396 : vector<2x32xf32>
    %398 = vector.broadcast %321 : vector<2x1xf32> to vector<2x32xf32>
    %399 = arith.mulf %398, %377 : vector<2x32xf32>
    %cst_115 = arith.constant 1.000000e+00 : f32
    %400 = vector.broadcast %cst_115 : f32 to vector<2x1xf32>
    %401 = arith.subf %400, %321 : vector<2x1xf32>
    %402 = vector.broadcast %401 : vector<2x1xf32> to vector<2x32xf32>
    %403 = arith.mulf %402, %312 : vector<2x32xf32>
    %404 = arith.addf %399, %403 : vector<2x32xf32>
    %405 = vector.broadcast %321 : vector<2x1xf32> to vector<2x32xf32>
    %406 = arith.mulf %405, %375 : vector<2x32xf32>
    %cst_116 = arith.constant 1.000000e+00 : f32
    %407 = vector.broadcast %cst_116 : f32 to vector<2x1xf32>
    %408 = arith.subf %407, %321 : vector<2x1xf32>
    %409 = vector.broadcast %408 : vector<2x1xf32> to vector<2x32xf32>
    %410 = arith.mulf %409, %319 : vector<2x32xf32>
    %411 = arith.addf %406, %410 : vector<2x32xf32>
    %c8_117 = arith.constant 8 : index
    %c0_118 = arith.constant 0 : index
    %412 = vector.load %arg3[%c8_117, %c0_118] : memref<16x1xf32, #tpu.memory_space<vmem>>, vector<2x1xf32>
    %c6_119 = arith.constant 6 : index
    %c0_120 = arith.constant 0 : index
    %413 = vector.load %arg3[%c6_119, %c0_120] : memref<16x1xf32, #tpu.memory_space<vmem>>, vector<2x1xf32>
    %c8_121 = arith.constant 8 : index
    %c0_122 = arith.constant 0 : index
    %414 = vector.load %arg18[%c8_121, %c0_122] : memref<16x256xf32, #tpu.memory_space<vmem>>, vector<2x128xf32>
    %cst_123 = arith.constant dense<0.000000e+00> : vector<2x128xf32>
    %415 = tpu.matmul %390, %41, %cst_123 {dimension_numbers = #tpu.dot_dimension_numbers<[1], [0], [0], [1], [0, 0, 1, 1], [], []>} : vector<2x32xf32>, vector<32x128xf32>, vector<2x128xf32> -> vector<2x128xf32>
    %416 = arith.addf %414, %415 : vector<2x128xf32>
    %417 = vector.extract_strided_slice %416 {offsets = [0, 0], sizes = [2, 32], strides = [1, 1]} : vector<2x128xf32> to vector<2x32xf32>
    %418 = arith.negf %417 : vector<2x32xf32>
    %419 = math.exp %418 : vector<2x32xf32>
    %cst_124 = arith.constant 1.000000e+00 : f32
    %420 = vector.broadcast %cst_124 : f32 to vector<2x32xf32>
    %421 = arith.addf %420, %419 : vector<2x32xf32>
    %422 = arith.divf %420, %421 : vector<2x32xf32>
    %423 = vector.extract_strided_slice %416 {offsets = [0, 32], sizes = [2, 32], strides = [1, 1]} : vector<2x128xf32> to vector<2x32xf32>
    %424 = arith.negf %423 : vector<2x32xf32>
    %425 = math.exp %424 : vector<2x32xf32>
    %cst_125 = arith.constant 1.000000e+00 : f32
    %426 = vector.broadcast %cst_125 : f32 to vector<2x32xf32>
    %427 = arith.addf %426, %425 : vector<2x32xf32>
    %428 = arith.divf %426, %427 : vector<2x32xf32>
    %429 = vector.extract_strided_slice %416 {offsets = [0, 64], sizes = [2, 32], strides = [1, 1]} : vector<2x128xf32> to vector<2x32xf32>
    %430 = math.tanh %429 : vector<2x32xf32>
    %431 = vector.extract_strided_slice %416 {offsets = [0, 96], sizes = [2, 32], strides = [1, 1]} : vector<2x128xf32> to vector<2x32xf32>
    %432 = arith.negf %431 : vector<2x32xf32>
    %433 = math.exp %432 : vector<2x32xf32>
    %cst_126 = arith.constant 1.000000e+00 : f32
    %434 = vector.broadcast %cst_126 : f32 to vector<2x32xf32>
    %435 = arith.addf %434, %433 : vector<2x32xf32>
    %436 = arith.divf %434, %435 : vector<2x32xf32>
    %437 = arith.mulf %428, %397 : vector<2x32xf32>
    %438 = arith.mulf %422, %430 : vector<2x32xf32>
    %439 = arith.addf %437, %438 : vector<2x32xf32>
    %440 = math.tanh %439 : vector<2x32xf32>
    %441 = arith.mulf %436, %440 : vector<2x32xf32>
    %c6_127 = arith.constant 6 : index
    %c128_128 = arith.constant 128 : index
    %442 = vector.load %arg18[%c6_127, %c128_128] : memref<16x256xf32, #tpu.memory_space<vmem>>, vector<2x128xf32>
    %cst_129 = arith.constant dense<0.000000e+00> : vector<2x128xf32>
    %443 = tpu.matmul %404, %42, %cst_129 {dimension_numbers = #tpu.dot_dimension_numbers<[1], [0], [0], [1], [0, 0, 1, 1], [], []>} : vector<2x32xf32>, vector<32x128xf32>, vector<2x128xf32> -> vector<2x128xf32>
    %444 = arith.addf %442, %443 : vector<2x128xf32>
    %445 = vector.extract_strided_slice %444 {offsets = [0, 0], sizes = [2, 32], strides = [1, 1]} : vector<2x128xf32> to vector<2x32xf32>
    %446 = arith.negf %445 : vector<2x32xf32>
    %447 = math.exp %446 : vector<2x32xf32>
    %cst_130 = arith.constant 1.000000e+00 : f32
    %448 = vector.broadcast %cst_130 : f32 to vector<2x32xf32>
    %449 = arith.addf %448, %447 : vector<2x32xf32>
    %450 = arith.divf %448, %449 : vector<2x32xf32>
    %451 = vector.extract_strided_slice %444 {offsets = [0, 32], sizes = [2, 32], strides = [1, 1]} : vector<2x128xf32> to vector<2x32xf32>
    %452 = arith.negf %451 : vector<2x32xf32>
    %453 = math.exp %452 : vector<2x32xf32>
    %cst_131 = arith.constant 1.000000e+00 : f32
    %454 = vector.broadcast %cst_131 : f32 to vector<2x32xf32>
    %455 = arith.addf %454, %453 : vector<2x32xf32>
    %456 = arith.divf %454, %455 : vector<2x32xf32>
    %457 = vector.extract_strided_slice %444 {offsets = [0, 64], sizes = [2, 32], strides = [1, 1]} : vector<2x128xf32> to vector<2x32xf32>
    %458 = math.tanh %457 : vector<2x32xf32>
    %459 = vector.extract_strided_slice %444 {offsets = [0, 96], sizes = [2, 32], strides = [1, 1]} : vector<2x128xf32> to vector<2x32xf32>
    %460 = arith.negf %459 : vector<2x32xf32>
    %461 = math.exp %460 : vector<2x32xf32>
    %cst_132 = arith.constant 1.000000e+00 : f32
    %462 = vector.broadcast %cst_132 : f32 to vector<2x32xf32>
    %463 = arith.addf %462, %461 : vector<2x32xf32>
    %464 = arith.divf %462, %463 : vector<2x32xf32>
    %465 = arith.mulf %456, %411 : vector<2x32xf32>
    %466 = arith.mulf %450, %458 : vector<2x32xf32>
    %467 = arith.addf %465, %466 : vector<2x32xf32>
    %468 = math.tanh %467 : vector<2x32xf32>
    %469 = arith.mulf %464, %468 : vector<2x32xf32>
    %470 = vector.broadcast %412 : vector<2x1xf32> to vector<2x32xf32>
    %471 = arith.mulf %470, %441 : vector<2x32xf32>
    %c8_133 = arith.constant 8 : index
    %c0_134 = arith.constant 0 : index
    %472 = vector.load %arg19[%c8_133, %c0_134] : memref<16x64xf32, #tpu.memory_space<vmem>>, vector<2x32xf32>
    tpu.vector_store %arg19[%c8_133, %c0_134], %471 {strides = array<i32>} : memref<16x64xf32, #tpu.memory_space<vmem>>, vector<2x32xf32>,
    %473 = vector.broadcast %413 : vector<2x1xf32> to vector<2x32xf32>
    %474 = arith.mulf %473, %469 : vector<2x32xf32>
    %c6_135 = arith.constant 6 : index
    %c32_136 = arith.constant 32 : index
    %475 = vector.load %arg19[%c6_135, %c32_136] : memref<16x64xf32, #tpu.memory_space<vmem>>, vector<2x32xf32>
    tpu.vector_store %arg19[%c6_135, %c32_136], %474 {strides = array<i32>} : memref<16x64xf32, #tpu.memory_space<vmem>>, vector<2x32xf32>,
    %476 = vector.broadcast %412 : vector<2x1xf32> to vector<2x32xf32>
    %477 = arith.mulf %476, %441 : vector<2x32xf32>
    %cst_137 = arith.constant 1.000000e+00 : f32
    %478 = vector.broadcast %cst_137 : f32 to vector<2x1xf32>
    %479 = arith.subf %478, %412 : vector<2x1xf32>
    %480 = vector.broadcast %479 : vector<2x1xf32> to vector<2x32xf32>
    %481 = arith.mulf %480, %390 : vector<2x32xf32>
    %482 = arith.addf %477, %481 : vector<2x32xf32>
    %483 = vector.broadcast %412 : vector<2x1xf32> to vector<2x32xf32>
    %484 = arith.mulf %483, %439 : vector<2x32xf32>
    %cst_138 = arith.constant 1.000000e+00 : f32
    %485 = vector.broadcast %cst_138 : f32 to vector<2x1xf32>
    %486 = arith.subf %485, %412 : vector<2x1xf32>
    %487 = vector.broadcast %486 : vector<2x1xf32> to vector<2x32xf32>
    %488 = arith.mulf %487, %397 : vector<2x32xf32>
    %489 = arith.addf %484, %488 : vector<2x32xf32>
    %490 = vector.broadcast %413 : vector<2x1xf32> to vector<2x32xf32>
    %491 = arith.mulf %490, %469 : vector<2x32xf32>
    %cst_139 = arith.constant 1.000000e+00 : f32
    %492 = vector.broadcast %cst_139 : f32 to vector<2x1xf32>
    %493 = arith.subf %492, %413 : vector<2x1xf32>
    %494 = vector.broadcast %493 : vector<2x1xf32> to vector<2x32xf32>
    %495 = arith.mulf %494, %404 : vector<2x32xf32>
    %496 = arith.addf %491, %495 : vector<2x32xf32>
    %497 = vector.broadcast %413 : vector<2x1xf32> to vector<2x32xf32>
    %498 = arith.mulf %497, %467 : vector<2x32xf32>
    %cst_140 = arith.constant 1.000000e+00 : f32
    %499 = vector.broadcast %cst_140 : f32 to vector<2x1xf32>
    %500 = arith.subf %499, %413 : vector<2x1xf32>
    %501 = vector.broadcast %500 : vector<2x1xf32> to vector<2x32xf32>
    %502 = arith.mulf %501, %411 : vector<2x32xf32>
    %503 = arith.addf %498, %502 : vector<2x32xf32>
    %c10_141 = arith.constant 10 : index
    %c0_142 = arith.constant 0 : index
    %504 = vector.load %arg3[%c10_141, %c0_142] : memref<16x1xf32, #tpu.memory_space<vmem>>, vector<2x1xf32>
    %c4_143 = arith.constant 4 : index
    %c0_144 = arith.constant 0 : index
    %505 = vector.load %arg3[%c4_143, %c0_144] : memref<16x1xf32, #tpu.memory_space<vmem>>, vector<2x1xf32>
    %c10_145 = arith.constant 10 : index
    %c0_146 = arith.constant 0 : index
    %506 = vector.load %arg18[%c10_145, %c0_146] : memref<16x256xf32, #tpu.memory_space<vmem>>, vector<2x128xf32>
    %cst_147 = arith.constant dense<0.000000e+00> : vector<2x128xf32>
    %507 = tpu.matmul %482, %41, %cst_147 {dimension_numbers = #tpu.dot_dimension_numbers<[1], [0], [0], [1], [0, 0, 1, 1], [], []>} : vector<2x32xf32>, vector<32x128xf32>, vector<2x128xf32> -> vector<2x128xf32>
    %508 = arith.addf %506, %507 : vector<2x128xf32>
    %509 = vector.extract_strided_slice %508 {offsets = [0, 0], sizes = [2, 32], strides = [1, 1]} : vector<2x128xf32> to vector<2x32xf32>
    %510 = arith.negf %509 : vector<2x32xf32>
    %511 = math.exp %510 : vector<2x32xf32>
    %cst_148 = arith.constant 1.000000e+00 : f32
    %512 = vector.broadcast %cst_148 : f32 to vector<2x32xf32>
    %513 = arith.addf %512, %511 : vector<2x32xf32>
    %514 = arith.divf %512, %513 : vector<2x32xf32>
    %515 = vector.extract_strided_slice %508 {offsets = [0, 32], sizes = [2, 32], strides = [1, 1]} : vector<2x128xf32> to vector<2x32xf32>
    %516 = arith.negf %515 : vector<2x32xf32>
    %517 = math.exp %516 : vector<2x32xf32>
    %cst_149 = arith.constant 1.000000e+00 : f32
    %518 = vector.broadcast %cst_149 : f32 to vector<2x32xf32>
    %519 = arith.addf %518, %517 : vector<2x32xf32>
    %520 = arith.divf %518, %519 : vector<2x32xf32>
    %521 = vector.extract_strided_slice %508 {offsets = [0, 64], sizes = [2, 32], strides = [1, 1]} : vector<2x128xf32> to vector<2x32xf32>
    %522 = math.tanh %521 : vector<2x32xf32>
    %523 = vector.extract_strided_slice %508 {offsets = [0, 96], sizes = [2, 32], strides = [1, 1]} : vector<2x128xf32> to vector<2x32xf32>
    %524 = arith.negf %523 : vector<2x32xf32>
    %525 = math.exp %524 : vector<2x32xf32>
    %cst_150 = arith.constant 1.000000e+00 : f32
    %526 = vector.broadcast %cst_150 : f32 to vector<2x32xf32>
    %527 = arith.addf %526, %525 : vector<2x32xf32>
    %528 = arith.divf %526, %527 : vector<2x32xf32>
    %529 = arith.mulf %520, %489 : vector<2x32xf32>
    %530 = arith.mulf %514, %522 : vector<2x32xf32>
    %531 = arith.addf %529, %530 : vector<2x32xf32>
    %532 = math.tanh %531 : vector<2x32xf32>
    %533 = arith.mulf %528, %532 : vector<2x32xf32>
    %c4_151 = arith.constant 4 : index
    %c128_152 = arith.constant 128 : index
    %534 = vector.load %arg18[%c4_151, %c128_152] : memref<16x256xf32, #tpu.memory_space<vmem>>, vector<2x128xf32>
    %cst_153 = arith.constant dense<0.000000e+00> : vector<2x128xf32>
    %535 = tpu.matmul %496, %42, %cst_153 {dimension_numbers = #tpu.dot_dimension_numbers<[1], [0], [0], [1], [0, 0, 1, 1], [], []>} : vector<2x32xf32>, vector<32x128xf32>, vector<2x128xf32> -> vector<2x128xf32>
    %536 = arith.addf %534, %535 : vector<2x128xf32>
    %537 = vector.extract_strided_slice %536 {offsets = [0, 0], sizes = [2, 32], strides = [1, 1]} : vector<2x128xf32> to vector<2x32xf32>
    %538 = arith.negf %537 : vector<2x32xf32>
    %539 = math.exp %538 : vector<2x32xf32>
    %cst_154 = arith.constant 1.000000e+00 : f32
    %540 = vector.broadcast %cst_154 : f32 to vector<2x32xf32>
    %541 = arith.addf %540, %539 : vector<2x32xf32>
    %542 = arith.divf %540, %541 : vector<2x32xf32>
    %543 = vector.extract_strided_slice %536 {offsets = [0, 32], sizes = [2, 32], strides = [1, 1]} : vector<2x128xf32> to vector<2x32xf32>
    %544 = arith.negf %543 : vector<2x32xf32>
    %545 = math.exp %544 : vector<2x32xf32>
    %cst_155 = arith.constant 1.000000e+00 : f32
    %546 = vector.broadcast %cst_155 : f32 to vector<2x32xf32>
    %547 = arith.addf %546, %545 : vector<2x32xf32>
    %548 = arith.divf %546, %547 : vector<2x32xf32>
    %549 = vector.extract_strided_slice %536 {offsets = [0, 64], sizes = [2, 32], strides = [1, 1]} : vector<2x128xf32> to vector<2x32xf32>
    %550 = math.tanh %549 : vector<2x32xf32>
    %551 = vector.extract_strided_slice %536 {offsets = [0, 96], sizes = [2, 32], strides = [1, 1]} : vector<2x128xf32> to vector<2x32xf32>
    %552 = arith.negf %551 : vector<2x32xf32>
    %553 = math.exp %552 : vector<2x32xf32>
    %cst_156 = arith.constant 1.000000e+00 : f32
    %554 = vector.broadcast %cst_156 : f32 to vector<2x32xf32>
    %555 = arith.addf %554, %553 : vector<2x32xf32>
    %556 = arith.divf %554, %555 : vector<2x32xf32>
    %557 = arith.mulf %548, %503 : vector<2x32xf32>
    %558 = arith.mulf %542, %550 : vector<2x32xf32>
    %559 = arith.addf %557, %558 : vector<2x32xf32>
    %560 = math.tanh %559 : vector<2x32xf32>
    %561 = arith.mulf %556, %560 : vector<2x32xf32>
    %562 = vector.broadcast %504 : vector<2x1xf32> to vector<2x32xf32>
    %563 = arith.mulf %562, %533 : vector<2x32xf32>
    %c10_157 = arith.constant 10 : index
    %c0_158 = arith.constant 0 : index
    %564 = vector.load %arg19[%c10_157, %c0_158] : memref<16x64xf32, #tpu.memory_space<vmem>>, vector<2x32xf32>
    tpu.vector_store %arg19[%c10_157, %c0_158], %563 {strides = array<i32>} : memref<16x64xf32, #tpu.memory_space<vmem>>, vector<2x32xf32>,
    %565 = vector.broadcast %505 : vector<2x1xf32> to vector<2x32xf32>
    %566 = arith.mulf %565, %561 : vector<2x32xf32>
    %c4_159 = arith.constant 4 : index
    %c32_160 = arith.constant 32 : index
    %567 = vector.load %arg19[%c4_159, %c32_160] : memref<16x64xf32, #tpu.memory_space<vmem>>, vector<2x32xf32>
    tpu.vector_store %arg19[%c4_159, %c32_160], %566 {strides = array<i32>} : memref<16x64xf32, #tpu.memory_space<vmem>>, vector<2x32xf32>,
    %568 = vector.broadcast %504 : vector<2x1xf32> to vector<2x32xf32>
    %569 = arith.mulf %568, %533 : vector<2x32xf32>
    %cst_161 = arith.constant 1.000000e+00 : f32
    %570 = vector.broadcast %cst_161 : f32 to vector<2x1xf32>
    %571 = arith.subf %570, %504 : vector<2x1xf32>
    %572 = vector.broadcast %571 : vector<2x1xf32> to vector<2x32xf32>
    %573 = arith.mulf %572, %482 : vector<2x32xf32>
    %574 = arith.addf %569, %573 : vector<2x32xf32>
    %575 = vector.broadcast %504 : vector<2x1xf32> to vector<2x32xf32>
    %576 = arith.mulf %575, %531 : vector<2x32xf32>
    %cst_162 = arith.constant 1.000000e+00 : f32
    %577 = vector.broadcast %cst_162 : f32 to vector<2x1xf32>
    %578 = arith.subf %577, %504 : vector<2x1xf32>
    %579 = vector.broadcast %578 : vector<2x1xf32> to vector<2x32xf32>
    %580 = arith.mulf %579, %489 : vector<2x32xf32>
    %581 = arith.addf %576, %580 : vector<2x32xf32>
    %582 = vector.broadcast %505 : vector<2x1xf32> to vector<2x32xf32>
    %583 = arith.mulf %582, %561 : vector<2x32xf32>
    %cst_163 = arith.constant 1.000000e+00 : f32
    %584 = vector.broadcast %cst_163 : f32 to vector<2x1xf32>
    %585 = arith.subf %584, %505 : vector<2x1xf32>
    %586 = vector.broadcast %585 : vector<2x1xf32> to vector<2x32xf32>
    %587 = arith.mulf %586, %496 : vector<2x32xf32>
    %588 = arith.addf %583, %587 : vector<2x32xf32>
    %589 = vector.broadcast %505 : vector<2x1xf32> to vector<2x32xf32>
    %590 = arith.mulf %589, %559 : vector<2x32xf32>
    %cst_164 = arith.constant 1.000000e+00 : f32
    %591 = vector.broadcast %cst_164 : f32 to vector<2x1xf32>
    %592 = arith.subf %591, %505 : vector<2x1xf32>
    %593 = vector.broadcast %592 : vector<2x1xf32> to vector<2x32xf32>
    %594 = arith.mulf %593, %503 : vector<2x32xf32>
    %595 = arith.addf %590, %594 : vector<2x32xf32>
    %c12_165 = arith.constant 12 : index
    %c0_166 = arith.constant 0 : index
    %596 = vector.load %arg3[%c12_165, %c0_166] : memref<16x1xf32, #tpu.memory_space<vmem>>, vector<2x1xf32>
    %c2_167 = arith.constant 2 : index
    %c0_168 = arith.constant 0 : index
    %597 = vector.load %arg3[%c2_167, %c0_168] : memref<16x1xf32, #tpu.memory_space<vmem>>, vector<2x1xf32>
    %c12_169 = arith.constant 12 : index
    %c0_170 = arith.constant 0 : index
    %598 = vector.load %arg18[%c12_169, %c0_170] : memref<16x256xf32, #tpu.memory_space<vmem>>, vector<2x128xf32>
    %cst_171 = arith.constant dense<0.000000e+00> : vector<2x128xf32>
    %599 = tpu.matmul %574, %41, %cst_171 {dimension_numbers = #tpu.dot_dimension_numbers<[1], [0], [0], [1], [0, 0, 1, 1], [], []>} : vector<2x32xf32>, vector<32x128xf32>, vector<2x128xf32> -> vector<2x128xf32>
    %600 = arith.addf %598, %599 : vector<2x128xf32>
    %601 = vector.extract_strided_slice %600 {offsets = [0, 0], sizes = [2, 32], strides = [1, 1]} : vector<2x128xf32> to vector<2x32xf32>
    %602 = arith.negf %601 : vector<2x32xf32>
    %603 = math.exp %602 : vector<2x32xf32>
    %cst_172 = arith.constant 1.000000e+00 : f32
    %604 = vector.broadcast %cst_172 : f32 to vector<2x32xf32>
    %605 = arith.addf %604, %603 : vector<2x32xf32>
    %606 = arith.divf %604, %605 : vector<2x32xf32>
    %607 = vector.extract_strided_slice %600 {offsets = [0, 32], sizes = [2, 32], strides = [1, 1]} : vector<2x128xf32> to vector<2x32xf32>
    %608 = arith.negf %607 : vector<2x32xf32>
    %609 = math.exp %608 : vector<2x32xf32>
    %cst_173 = arith.constant 1.000000e+00 : f32
    %610 = vector.broadcast %cst_173 : f32 to vector<2x32xf32>
    %611 = arith.addf %610, %609 : vector<2x32xf32>
    %612 = arith.divf %610, %611 : vector<2x32xf32>
    %613 = vector.extract_strided_slice %600 {offsets = [0, 64], sizes = [2, 32], strides = [1, 1]} : vector<2x128xf32> to vector<2x32xf32>
    %614 = math.tanh %613 : vector<2x32xf32>
    %615 = vector.extract_strided_slice %600 {offsets = [0, 96], sizes = [2, 32], strides = [1, 1]} : vector<2x128xf32> to vector<2x32xf32>
    %616 = arith.negf %615 : vector<2x32xf32>
    %617 = math.exp %616 : vector<2x32xf32>
    %cst_174 = arith.constant 1.000000e+00 : f32
    %618 = vector.broadcast %cst_174 : f32 to vector<2x32xf32>
    %619 = arith.addf %618, %617 : vector<2x32xf32>
    %620 = arith.divf %618, %619 : vector<2x32xf32>
    %621 = arith.mulf %612, %581 : vector<2x32xf32>
    %622 = arith.mulf %606, %614 : vector<2x32xf32>
    %623 = arith.addf %621, %622 : vector<2x32xf32>
    %624 = math.tanh %623 : vector<2x32xf32>
    %625 = arith.mulf %620, %624 : vector<2x32xf32>
    %c2_175 = arith.constant 2 : index
    %c128_176 = arith.constant 128 : index
    %626 = vector.load %arg18[%c2_175, %c128_176] : memref<16x256xf32, #tpu.memory_space<vmem>>, vector<2x128xf32>
    %cst_177 = arith.constant dense<0.000000e+00> : vector<2x128xf32>
    %627 = tpu.matmul %588, %42, %cst_177 {dimension_numbers = #tpu.dot_dimension_numbers<[1], [0], [0], [1], [0, 0, 1, 1], [], []>} : vector<2x32xf32>, vector<32x128xf32>, vector<2x128xf32> -> vector<2x128xf32>
    %628 = arith.addf %626, %627 : vector<2x128xf32>
    %629 = vector.extract_strided_slice %628 {offsets = [0, 0], sizes = [2, 32], strides = [1, 1]} : vector<2x128xf32> to vector<2x32xf32>
    %630 = arith.negf %629 : vector<2x32xf32>
    %631 = math.exp %630 : vector<2x32xf32>
    %cst_178 = arith.constant 1.000000e+00 : f32
    %632 = vector.broadcast %cst_178 : f32 to vector<2x32xf32>
    %633 = arith.addf %632, %631 : vector<2x32xf32>
    %634 = arith.divf %632, %633 : vector<2x32xf32>
    %635 = vector.extract_strided_slice %628 {offsets = [0, 32], sizes = [2, 32], strides = [1, 1]} : vector<2x128xf32> to vector<2x32xf32>
    %636 = arith.negf %635 : vector<2x32xf32>
    %637 = math.exp %636 : vector<2x32xf32>
    %cst_179 = arith.constant 1.000000e+00 : f32
    %638 = vector.broadcast %cst_179 : f32 to vector<2x32xf32>
    %639 = arith.addf %638, %637 : vector<2x32xf32>
    %640 = arith.divf %638, %639 : vector<2x32xf32>
    %641 = vector.extract_strided_slice %628 {offsets = [0, 64], sizes = [2, 32], strides = [1, 1]} : vector<2x128xf32> to vector<2x32xf32>
    %642 = math.tanh %641 : vector<2x32xf32>
    %643 = vector.extract_strided_slice %628 {offsets = [0, 96], sizes = [2, 32], strides = [1, 1]} : vector<2x128xf32> to vector<2x32xf32>
    %644 = arith.negf %643 : vector<2x32xf32>
    %645 = math.exp %644 : vector<2x32xf32>
    %cst_180 = arith.constant 1.000000e+00 : f32
    %646 = vector.broadcast %cst_180 : f32 to vector<2x32xf32>
    %647 = arith.addf %646, %645 : vector<2x32xf32>
    %648 = arith.divf %646, %647 : vector<2x32xf32>
    %649 = arith.mulf %640, %595 : vector<2x32xf32>
    %650 = arith.mulf %634, %642 : vector<2x32xf32>
    %651 = arith.addf %649, %650 : vector<2x32xf32>
    %652 = math.tanh %651 : vector<2x32xf32>
    %653 = arith.mulf %648, %652 : vector<2x32xf32>
    %654 = vector.broadcast %596 : vector<2x1xf32> to vector<2x32xf32>
    %655 = arith.mulf %654, %625 : vector<2x32xf32>
    %c12_181 = arith.constant 12 : index
    %c0_182 = arith.constant 0 : index
    %656 = vector.load %arg19[%c12_181, %c0_182] : memref<16x64xf32, #tpu.memory_space<vmem>>, vector<2x32xf32>
    tpu.vector_store %arg19[%c12_181, %c0_182], %655 {strides = array<i32>} : memref<16x64xf32, #tpu.memory_space<vmem>>, vector<2x32xf32>,
    %657 = vector.broadcast %597 : vector<2x1xf32> to vector<2x32xf32>
    %658 = arith.mulf %657, %653 : vector<2x32xf32>
    %c2_183 = arith.constant 2 : index
    %c32_184 = arith.constant 32 : index
    %659 = vector.load %arg19[%c2_183, %c32_184] : memref<16x64xf32, #tpu.memory_space<vmem>>, vector<2x32xf32>
    tpu.vector_store %arg19[%c2_183, %c32_184], %658 {strides = array<i32>} : memref<16x64xf32, #tpu.memory_space<vmem>>, vector<2x32xf32>,
    %660 = vector.broadcast %596 : vector<2x1xf32> to vector<2x32xf32>
    %661 = arith.mulf %660, %625 : vector<2x32xf32>
    %cst_185 = arith.constant 1.000000e+00 : f32
    %662 = vector.broadcast %cst_185 : f32 to vector<2x1xf32>
    %663 = arith.subf %662, %596 : vector<2x1xf32>
    %664 = vector.broadcast %663 : vector<2x1xf32> to vector<2x32xf32>
    %665 = arith.mulf %664, %574 : vector<2x32xf32>
    %666 = arith.addf %661, %665 : vector<2x32xf32>
    %667 = vector.broadcast %596 : vector<2x1xf32> to vector<2x32xf32>
    %668 = arith.mulf %667, %623 : vector<2x32xf32>
    %cst_186 = arith.constant 1.000000e+00 : f32
    %669 = vector.broadcast %cst_186 : f32 to vector<2x1xf32>
    %670 = arith.subf %669, %596 : vector<2x1xf32>
    %671 = vector.broadcast %670 : vector<2x1xf32> to vector<2x32xf32>
    %672 = arith.mulf %671, %581 : vector<2x32xf32>
    %673 = arith.addf %668, %672 : vector<2x32xf32>
    %674 = vector.broadcast %597 : vector<2x1xf32> to vector<2x32xf32>
    %675 = arith.mulf %674, %653 : vector<2x32xf32>
    %cst_187 = arith.constant 1.000000e+00 : f32
    %676 = vector.broadcast %cst_187 : f32 to vector<2x1xf32>
    %677 = arith.subf %676, %597 : vector<2x1xf32>
    %678 = vector.broadcast %677 : vector<2x1xf32> to vector<2x32xf32>
    %679 = arith.mulf %678, %588 : vector<2x32xf32>
    %680 = arith.addf %675, %679 : vector<2x32xf32>
    %681 = vector.broadcast %597 : vector<2x1xf32> to vector<2x32xf32>
    %682 = arith.mulf %681, %651 : vector<2x32xf32>
    %cst_188 = arith.constant 1.000000e+00 : f32
    %683 = vector.broadcast %cst_188 : f32 to vector<2x1xf32>
    %684 = arith.subf %683, %597 : vector<2x1xf32>
    %685 = vector.broadcast %684 : vector<2x1xf32> to vector<2x32xf32>
    %686 = arith.mulf %685, %595 : vector<2x32xf32>
    %687 = arith.addf %682, %686 : vector<2x32xf32>
    %c14_189 = arith.constant 14 : index
    %c0_190 = arith.constant 0 : index
    %688 = vector.load %arg3[%c14_189, %c0_190] : memref<16x1xf32, #tpu.memory_space<vmem>>, vector<2x1xf32>
    %c0_191 = arith.constant 0 : index
    %c0_192 = arith.constant 0 : index
    %689 = vector.load %arg3[%c0_191, %c0_192] : memref<16x1xf32, #tpu.memory_space<vmem>>, vector<2x1xf32>
    %c14_193 = arith.constant 14 : index
    %c0_194 = arith.constant 0 : index
    %690 = vector.load %arg18[%c14_193, %c0_194] : memref<16x256xf32, #tpu.memory_space<vmem>>, vector<2x128xf32>
    %cst_195 = arith.constant dense<0.000000e+00> : vector<2x128xf32>
    %691 = tpu.matmul %666, %41, %cst_195 {dimension_numbers = #tpu.dot_dimension_numbers<[1], [0], [0], [1], [0, 0, 1, 1], [], []>} : vector<2x32xf32>, vector<32x128xf32>, vector<2x128xf32> -> vector<2x128xf32>
    %692 = arith.addf %690, %691 : vector<2x128xf32>
    %693 = vector.extract_strided_slice %692 {offsets = [0, 0], sizes = [2, 32], strides = [1, 1]} : vector<2x128xf32> to vector<2x32xf32>
    %694 = arith.negf %693 : vector<2x32xf32>
    %695 = math.exp %694 : vector<2x32xf32>
    %cst_196 = arith.constant 1.000000e+00 : f32
    %696 = vector.broadcast %cst_196 : f32 to vector<2x32xf32>
    %697 = arith.addf %696, %695 : vector<2x32xf32>
    %698 = arith.divf %696, %697 : vector<2x32xf32>
    %699 = vector.extract_strided_slice %692 {offsets = [0, 32], sizes = [2, 32], strides = [1, 1]} : vector<2x128xf32> to vector<2x32xf32>
    %700 = arith.negf %699 : vector<2x32xf32>
    %701 = math.exp %700 : vector<2x32xf32>
    %cst_197 = arith.constant 1.000000e+00 : f32
    %702 = vector.broadcast %cst_197 : f32 to vector<2x32xf32>
    %703 = arith.addf %702, %701 : vector<2x32xf32>
    %704 = arith.divf %702, %703 : vector<2x32xf32>
    %705 = vector.extract_strided_slice %692 {offsets = [0, 64], sizes = [2, 32], strides = [1, 1]} : vector<2x128xf32> to vector<2x32xf32>
    %706 = math.tanh %705 : vector<2x32xf32>
    %707 = vector.extract_strided_slice %692 {offsets = [0, 96], sizes = [2, 32], strides = [1, 1]} : vector<2x128xf32> to vector<2x32xf32>
    %708 = arith.negf %707 : vector<2x32xf32>
    %709 = math.exp %708 : vector<2x32xf32>
    %cst_198 = arith.constant 1.000000e+00 : f32
    %710 = vector.broadcast %cst_198 : f32 to vector<2x32xf32>
    %711 = arith.addf %710, %709 : vector<2x32xf32>
    %712 = arith.divf %710, %711 : vector<2x32xf32>
    %713 = arith.mulf %704, %673 : vector<2x32xf32>
    %714 = arith.mulf %698, %706 : vector<2x32xf32>
    %715 = arith.addf %713, %714 : vector<2x32xf32>
    %716 = math.tanh %715 : vector<2x32xf32>
    %717 = arith.mulf %712, %716 : vector<2x32xf32>
    %c0_199 = arith.constant 0 : index
    %c128_200 = arith.constant 128 : index
    %718 = vector.load %arg18[%c0_199, %c128_200] : memref<16x256xf32, #tpu.memory_space<vmem>>, vector<2x128xf32>
    %cst_201 = arith.constant dense<0.000000e+00> : vector<2x128xf32>
    %719 = tpu.matmul %680, %42, %cst_201 {dimension_numbers = #tpu.dot_dimension_numbers<[1], [0], [0], [1], [0, 0, 1, 1], [], []>} : vector<2x32xf32>, vector<32x128xf32>, vector<2x128xf32> -> vector<2x128xf32>
    %720 = arith.addf %718, %719 : vector<2x128xf32>
    %721 = vector.extract_strided_slice %720 {offsets = [0, 0], sizes = [2, 32], strides = [1, 1]} : vector<2x128xf32> to vector<2x32xf32>
    %722 = arith.negf %721 : vector<2x32xf32>
    %723 = math.exp %722 : vector<2x32xf32>
    %cst_202 = arith.constant 1.000000e+00 : f32
    %724 = vector.broadcast %cst_202 : f32 to vector<2x32xf32>
    %725 = arith.addf %724, %723 : vector<2x32xf32>
    %726 = arith.divf %724, %725 : vector<2x32xf32>
    %727 = vector.extract_strided_slice %720 {offsets = [0, 32], sizes = [2, 32], strides = [1, 1]} : vector<2x128xf32> to vector<2x32xf32>
    %728 = arith.negf %727 : vector<2x32xf32>
    %729 = math.exp %728 : vector<2x32xf32>
    %cst_203 = arith.constant 1.000000e+00 : f32
    %730 = vector.broadcast %cst_203 : f32 to vector<2x32xf32>
    %731 = arith.addf %730, %729 : vector<2x32xf32>
    %732 = arith.divf %730, %731 : vector<2x32xf32>
    %733 = vector.extract_strided_slice %720 {offsets = [0, 64], sizes = [2, 32], strides = [1, 1]} : vector<2x128xf32> to vector<2x32xf32>
    %734 = math.tanh %733 : vector<2x32xf32>
    %735 = vector.extract_strided_slice %720 {offsets = [0, 96], sizes = [2, 32], strides = [1, 1]} : vector<2x128xf32> to vector<2x32xf32>
    %736 = arith.negf %735 : vector<2x32xf32>
    %737 = math.exp %736 : vector<2x32xf32>
    %cst_204 = arith.constant 1.000000e+00 : f32
    %738 = vector.broadcast %cst_204 : f32 to vector<2x32xf32>
    %739 = arith.addf %738, %737 : vector<2x32xf32>
    %740 = arith.divf %738, %739 : vector<2x32xf32>
    %741 = arith.mulf %732, %687 : vector<2x32xf32>
    %742 = arith.mulf %726, %734 : vector<2x32xf32>
    %743 = arith.addf %741, %742 : vector<2x32xf32>
    %744 = math.tanh %743 : vector<2x32xf32>
    %745 = arith.mulf %740, %744 : vector<2x32xf32>
    %746 = vector.broadcast %688 : vector<2x1xf32> to vector<2x32xf32>
    %747 = arith.mulf %746, %717 : vector<2x32xf32>
    %c14_205 = arith.constant 14 : index
    %c0_206 = arith.constant 0 : index
    %748 = vector.load %arg19[%c14_205, %c0_206] : memref<16x64xf32, #tpu.memory_space<vmem>>, vector<2x32xf32>
    tpu.vector_store %arg19[%c14_205, %c0_206], %747 {strides = array<i32>} : memref<16x64xf32, #tpu.memory_space<vmem>>, vector<2x32xf32>,
    %749 = vector.broadcast %689 : vector<2x1xf32> to vector<2x32xf32>
    %750 = arith.mulf %749, %745 : vector<2x32xf32>
    %c0_207 = arith.constant 0 : index
    %c32_208 = arith.constant 32 : index
    %751 = vector.load %arg19[%c0_207, %c32_208] : memref<16x64xf32, #tpu.memory_space<vmem>>, vector<2x32xf32>
    tpu.vector_store %arg19[%c0_207, %c32_208], %750 {strides = array<i32>} : memref<16x64xf32, #tpu.memory_space<vmem>>, vector<2x32xf32>,
    %c0_209 = arith.constant 0 : index
    %c0_210 = arith.constant 0 : index
    %752 = vector.load %arg19[%c0_209, %c0_210] : memref<16x64xf32, #tpu.memory_space<vmem>>, vector<16x64xf32>
    %c0_211 = arith.constant 0 : index
    %c0_212 = arith.constant 0 : index
    %753 = vector.load %arg13[%c0_211, %c0_212] : memref<64x128xf32, #tpu.memory_space<vmem>>, vector<64x128xf32>
    %cst_213 = arith.constant dense<0.000000e+00> : vector<16x128xf32>
    %754 = tpu.matmul %752, %753, %cst_213 {dimension_numbers = #tpu.dot_dimension_numbers<[1], [0], [0], [1], [0, 0, 1, 1], [], []>} : vector<16x64xf32>, vector<64x128xf32>, vector<16x128xf32> -> vector<16x128xf32>
    %c0_214 = arith.constant 0 : index
    %c0_215 = arith.constant 0 : index
    %755 = vector.load %arg14[%c0_214, %c0_215] : memref<1x128xf32, #tpu.memory_space<vmem>>, vector<1x128xf32>
    %756 = vector.broadcast %755 : vector<1x128xf32> to vector<16x128xf32>
    %757 = arith.addf %754, %756 : vector<16x128xf32>
    %cst_216 = arith.constant 0.000000e+00 : f32
    %758 = vector.broadcast %cst_216 : f32 to vector<16x128xf32>
    %759 = arith.maximumf %757, %758 : vector<16x128xf32>
    %c0_217 = arith.constant 0 : index
    %c0_218 = arith.constant 0 : index
    %760 = vector.load %arg15[%c0_217, %c0_218] : memref<128x16xf32, #tpu.memory_space<vmem>>, vector<128x16xf32>
    %cst_219 = arith.constant dense<0.000000e+00> : vector<16x16xf32>
    %761 = tpu.matmul %759, %760, %cst_219 {dimension_numbers = #tpu.dot_dimension_numbers<[1], [0], [0], [1], [0, 0, 1, 1], [], []>} : vector<16x128xf32>, vector<128x16xf32>, vector<16x16xf32> -> vector<16x16xf32>
    %c0_220 = arith.constant 0 : index
    %c0_221 = arith.constant 0 : index
    %762 = vector.load %arg16[%c0_220, %c0_221] : memref<1x16xf32, #tpu.memory_space<vmem>>, vector<1x16xf32>
    %763 = vector.broadcast %762 : vector<1x16xf32> to vector<16x16xf32>
    %764 = arith.addf %761, %763 : vector<16x16xf32>
    %c0_222 = arith.constant 0 : index
    %c0_223 = arith.constant 0 : index
    %765 = vector.load %arg4[%c0_222, %c0_223] : memref<16x16xf32, #tpu.memory_space<vmem>>, vector<16x16xf32>
    %cst_224 = arith.constant 1.000000e+00 : f32
    %766 = vector.broadcast %cst_224 : f32 to vector<16x16xf32>
    %767 = arith.subf %766, %765 : vector<16x16xf32>
    %cst_225 = arith.constant -1.000000e+05 : f32
    %768 = vector.broadcast %cst_225 : f32 to vector<16x16xf32>
    %769 = arith.mulf %767, %768 : vector<16x16xf32>
    %c0_226 = arith.constant 0 : index
    %c0_227 = arith.constant 0 : index
    %770 = vector.load %arg3[%c0_226, %c0_227] : memref<16x1xf32, #tpu.memory_space<vmem>>, vector<16x1xf32>
    %771 = vector.broadcast %770 : vector<16x1xf32> to vector<16x16xf32>
    %772 = arith.mulf %764, %771 : vector<16x16xf32>
    %773 = arith.addf %772, %769 : vector<16x16xf32>
    %c0_228 = arith.constant 0 : index
    %c0_229 = arith.constant 0 : index
    %774 = vector.load %arg17[%c0_228, %c0_229] : memref<16x16xf32, #tpu.memory_space<vmem>>, vector<16x16xf32>
    tpu.vector_store %arg17[%c0_228, %c0_229], %773 {strides = array<i32>} : memref<16x16xf32, #tpu.memory_space<vmem>>, vector<16x16xf32>,
    return
  }
}

</mosaic_0001>

<bundles_post_ra>
// kernel: tpu_custom_call.1
= control target key start
LH: loop header
LB: loop body
LE: loop exit
PB: predicated region body
PF: predicated region fallthrough
CT: control target
= control target key end

     0   :  { %s4717_s0 = inlined_call_operand.hbm [shape: f32[16,32], index: 0, kind: input, shape index: {}]   ;;  %s4718_s1 = inlined_call_operand.hbm [shape: f32[16,95], index: 1, kind: input, shape index: {}]   ;;  %s4719_s2 = inlined_call_operand.vmem [shape: f32[16,1], index: 2, kind: input, shape index: {}]   ;;  %s4720_s3 = inlined_call_operand.vmem [shape: f32[16,1], index: 3, kind: input, shape index: {}]   ;;  %s4721_s4 = inlined_call_operand.hbm [shape: f32[16,16], index: 4, kind: input, shape index: {}]   ;;  %s4722_s5 = inlined_call_operand.hbm [shape: f32[1,32], index: 5, kind: input, shape index: {}]   ;;  %s4723_s6 = inlined_call_operand.hbm [shape: f32[1,32], index: 6, kind: input, shape index: {}]   ;;  %s4724_s7 = inlined_call_operand.hbm [shape: f32[32,256], index: 7, kind: input, shape index: {}]   ;;  %s4725_s8 = inlined_call_operand.vmem [shape: f32[95,256], index: 8, kind: input, shape index: {}]   ;;  %s4726_s9 = inlined_call_operand.vmem [shape: f32[1,256], index: 9, kind: input, shape index: {}]   ;;  %s4727_s10 = inlined_call_operand.vmem [shape: f32[1,256], index: 10, kind: input, shape index: {}]   ;;  %s4728_s11 = inlined_call_operand.hbm [shape: f32[32,128], index: 11, kind: input, shape index: {}]   ;;  %s4729_s12 = inlined_call_operand.hbm [shape: f32[32,128], index: 12, kind: input, shape index: {}]   ;;  %s4730_s13 = inlined_call_operand.hbm [shape: f32[64,128], index: 13, kind: input, shape index: {}]   ;;  %s4731_s14 = inlined_call_operand.vmem [shape: f32[1,128], index: 14, kind: input, shape index: {}]   ;;  %s4732_s15 = inlined_call_operand.vmem [shape: f32[128,16], index: 15, kind: input, shape index: {}]   ;;  %s4733_s16 = inlined_call_operand.vmem [shape: f32[1,16], index: 16, kind: input, shape index: {}]   ;;  %s4734_s17 = inlined_call_operand.hbm [shape: f32[16,16], index: 17, kind: output, shape index: {}]  }
   0x1   :  { %4741 = sst [smem:[#allocation26_spill]] %s4717_s0 }
   0x2   :  { %4742 = sst [smem:[#allocation27_spill]] %s4718_s1 }
   0x3   :  { %22 = vsyncpa [#allocation5], 0 }
   0x4   :  { %23 = vsyncpa [#allocation8], 0 }
   0x5   :  { %24 = vsyncpa [#allocation11], 0 }
   0x6   :  { %25 = vsyncpa [#allocation14], 0 }
   0x7   :  { %26 = vsyncpa [#allocation17], 0 }
   0x8   :  { %27 = vsyncpa [#allocation6], 0  ;;  %s3847_s24 = smov [#allocation7]   ;;  %s3848_s26 = smov [#allocation10]  }
   0x9   :  { %s45_s25 = sshll.u32 %s3847_s24, 4  ;;  %s74_s27 = sshll.u32 %s3848_s26, 4  ;;  %s46_s25 = int_to_ptr.vmem [resolvable:$true] %s45_s25  ;;  %s3959_s27 = int_to_ptr.vmem [resolvable:$true] %s74_s27 }
   0xa   :  { %s4743_s0 = sld [smem:[#allocation27_spill]] }
  0x10   :  { %s3615_s30 = scalar_lea.hbm %s4743_s0, 256 }
  0x11   :  { %p3616_p0 = scmp.ne.s32.totalorder %s4743_s0, %s3615_s30  ;;  %p3619_p1 = scmp.lt.u32.totalorder %s3615_s30, %s4743_s0 }
  0x13   :  { %p3621_p2 = pnand %p3619_p1, %p3616_p0 }
  0x15   :  { %3624 = shalt.err (!%p3621_p2)
}
  0x16   :  { %s3625_s21 = scalar_lea.vmem %s46_s25, 256  ;;  %p3630_p4 = scmp.lt.s32.totalorder %s46_s25, %s46_s25 }
  0x17   :  { %p3626_p3 = scmp.ne.s32.totalorder %s46_s25, %s3625_s21  ;;  %p3631_p5 = scmp.lt.s32.totalorder %s3625_s21, %s3625_s21 }
  0x19   :  { %p3632_p6 = por %p3631_p5, %p3630_p4 }
  0x1b   :  { %p3633_p7 = pnand %p3632_p6, %p3626_p3 }
  0x1d   :  { %3636 = shalt.err (!%p3633_p7)
}
  0x1e   :  { %s4737_s22 = smov 128   ;;  %s4739_s23 = smov 8  }
  0x1f   :  { %51 = dma.hbm_to_vmem [thread:$0]  %s4743_s0, 256, %s46_s25, [#allocation8], %s4737_s22, %s4737_s22, %s4739_s23  }
  0x20   :  { %s3637_s30 = scalar_lea.hbm %s4722_s5, 16 }
  0x21   :  { %p3638_p8 = scmp.ne.s32.totalorder %s4722_s5, %s3637_s30  ;;  %p3641_p9 = scmp.lt.u32.totalorder %s3637_s30, %s4722_s5 }
  0x23   :  { %p3643_p10 = pnand %p3641_p9, %p3638_p8 }
  0x25   :  { %3646 = shalt.err (!%p3643_p10)
}
  0x26   :  { %s3647_s21 = scalar_lea.vmem %s3959_s27, 16  ;;  %s3651_s25 = scalar_lea.vmem %s3959_s27, 32 }
  0x27   :  { %p3648_p11 = scmp.ne.s32.totalorder %s3959_s27, %s3647_s21  ;;  %p3652_p12 = scmp.lt.s32.totalorder %s3959_s27, %s3959_s27 }
  0x28   :  { %p3653_p13 = scmp.lt.s32.totalorder %s3651_s25, %s3647_s21 }
  0x2a   :  { %p3654_p0 = por %p3653_p13, %p3652_p12 }
  0x2c   :  { %p3655_p1 = pnand %p3654_p0, %p3648_p11 }
  0x2e   :  { %3658 = shalt.err (!%p3655_p1)
}
  0x2f   :  { %77 = dma.hbm_to_vmem [thread:$0]  %s4722_s5, 16, %s3959_s27, [#allocation11]  }
  0x30   :  { %s3851_s26 = smov [#allocation13]   ;;  %s3659_s18 = scalar_lea.hbm %s4724_s7, 1024 }
  0x31   :  { %s93_s28 = sshll.u32 %s3851_s26, 4  ;;  %p3660_p2 = scmp.ne.s32.totalorder %s4724_s7, %s3659_s18  ;;  %s94_s28 = int_to_ptr.vmem [resolvable:$true] %s93_s28 }
  0x32   :  { %p3663_p3 = scmp.lt.u32.totalorder %s3659_s18, %s4724_s7 }
  0x34   :  { %p3665_p4 = pnand %p3663_p3, %p3660_p2 }
  0x36   :  { %3668 = shalt.err (!%p3665_p4)
}
  0x37   :  { %s3669_s25 = scalar_lea.vmem %s94_s28, 1024  ;;  %p3674_p6 = scmp.lt.s32.totalorder %s94_s28, %s94_s28 }
  0x38   :  { %p3670_p5 = scmp.ne.s32.totalorder %s94_s28, %s3669_s25  ;;  %p3675_p7 = scmp.lt.s32.totalorder %s3669_s25, %s3669_s25 }
  0x3a   :  { %p3676_p8 = por %p3675_p7, %p3674_p6 }
  0x3c   :  { %p3677_p9 = pnand %p3676_p8, %p3670_p5 }
  0x3e   :  { %3680 = shalt.err (!%p3677_p9)
}
  0x3f   :  { %s3852_s5 = smov 256   ;;  %s3853_s27 = smov 16  }
  0x40   :  { %99 = dma.hbm_to_vmem [thread:$0]  %s4724_s7, 1024, %s94_s28, [#allocation14], %s3852_s5, %s3852_s5, %s3853_s27  }
  0x41   :  { %s3854_s26 = smov [#allocation16]   ;;  %s3855_s30 = smov [#allocation4]  }
  0x42   :  { %s123_s29 = sshll.u32 %s3854_s26, 4  ;;  %s33_s18 = sshll.u32 %s3855_s30, 4  ;;  %s124_s29 = int_to_ptr.vmem [resolvable:$true] %s123_s29  ;;  %s34_s18 = int_to_ptr.vmem [resolvable:$true] %s33_s18 }
  0x43   :  { %s3681_s20 = scalar_lea.hbm %s4729_s12, 512 }
  0x44   :  { %p3682_p10 = scmp.ne.s32.totalorder %s4729_s12, %s3681_s20  ;;  %p3685_p11 = scmp.lt.u32.totalorder %s3681_s20, %s4729_s12 }
  0x46   :  { %p3687_p12 = pnand %p3685_p11, %p3682_p10 }
  0x48   :  { %3690 = shalt.err (!%p3687_p12)
}
  0x49   :  { %s3691_s7 = scalar_lea.vmem %s124_s29, 512  ;;  %p3696_p0 = scmp.lt.s32.totalorder %s124_s29, %s124_s29 }
  0x4a   :  { %p3692_p13 = scmp.ne.s32.totalorder %s124_s29, %s3691_s7  ;;  %p3697_p1 = scmp.lt.s32.totalorder %s3691_s7, %s3691_s7 }
  0x4c   :  { %p3698_p2 = por %p3697_p1, %p3696_p0 }
  0x4e   :  { %p3699_p3 = pnand %p3698_p2, %p3692_p13 }
  0x50   :  { %3702 = shalt.err (!%p3699_p3)
}
  0x51   :  { %s4744_s28 = smov 8   ;;  %s4745_s5 = smov 128  }
  0x52   :  { %129 = dma.hbm_to_vmem [thread:$0]  %s4729_s12, 512, %s124_s29, [#allocation17], %s4745_s5, %s4745_s5, %s4744_s28  }
  0x53   :  { %s4746_s23 = sld [smem:[#allocation26_spill]] }
  0x59   :  { %s3703_s26 = scalar_lea.hbm %s4746_s23, 256 }
  0x5a   :  { %p3704_p4 = scmp.ne.s32.totalorder %s4746_s23, %s3703_s26  ;;  %p3707_p5 = scmp.lt.u32.totalorder %s3703_s26, %s4746_s23 }
  0x5c   :  { %p3709_p6 = pnand %p3707_p5, %p3704_p4 }
  0x5e   :  { %3712 = shalt.err (!%p3709_p6)
}
  0x5f   :  { %s3713_s21 = scalar_lea.vmem %s34_s18, 256  ;;  %p3718_p8 = scmp.lt.s32.totalorder %s34_s18, %s34_s18 }
  0x60   :  { %p3714_p7 = scmp.ne.s32.totalorder %s34_s18, %s3713_s21  ;;  %p3719_p9 = scmp.lt.s32.totalorder %s3713_s21, %s3713_s21 }
  0x62   :  { %p3720_p10 = por %p3719_p9, %p3718_p8 }
  0x64   :  { %p3721_p11 = pnand %p3720_p10, %p3714_p7 }
  0x66   :  { %3724 = shalt.err (!%p3721_p11)
}
  0x67   :  { %39 = dma.hbm_to_vmem [thread:$0]  %s4746_s23, 256, %s34_s18, [#allocation5], %s4745_s5, %s4745_s5, %s4744_s28  }
  0x68   :  { %s3856_s25 = smov [#allocation9]   ;;  %s3857_s27 = smov [#allocation12]  }
  0x69   :  { %s61_s7 = sshll.u32 %s3856_s25, 4  ;;  %s84_s0 = sshll.u32 %s3857_s27, 4  ;;  %s62_s7 = int_to_ptr.vmem [resolvable:$true] %s61_s7  ;;  %s85_s0 = int_to_ptr.vmem [resolvable:$true] %s84_s0 }
  0x6a   :  { %s3725_s26 = scalar_lea.hbm %s4721_s4, 256 }
  0x6b   :  { %p3726_p12 = scmp.ne.s32.totalorder %s4721_s4, %s3725_s26  ;;  %p3729_p13 = scmp.lt.u32.totalorder %s3725_s26, %s4721_s4 }
  0x6d   :  { %p3731_p0 = pnand %p3729_p13, %p3726_p12 }
  0x6f   :  { %3734 = shalt.err (!%p3731_p0)
}
  0x70   :  { %s3735_s18 = scalar_lea.vmem %s62_s7, 256  ;;  %p3740_p2 = scmp.lt.s32.totalorder %s62_s7, %s62_s7 }
  0x71   :  { %p3736_p1 = scmp.ne.s32.totalorder %s62_s7, %s3735_s18  ;;  %p3741_p3 = scmp.lt.s32.totalorder %s3735_s18, %s3735_s18 }
  0x73   :  { %p3742_p4 = por %p3741_p3, %p3740_p2 }
  0x75   :  { %p3743_p5 = pnand %p3742_p4, %p3736_p1 }
  0x77   :  { %3746 = shalt.err (!%p3743_p5)
}
  0x78   :  { %67 = dma.hbm_to_vmem [thread:$0]  %s4721_s4, 256, %s62_s7, [#allocation8], %s4745_s5, %s4745_s5, %s4744_s28  }
  0x79   :  { %s3747_s25 = scalar_lea.hbm %s4723_s6, 16 }
  0x7a   :  { %p3748_p6 = scmp.ne.s32.totalorder %s4723_s6, %s3747_s25  ;;  %p3751_p7 = scmp.lt.u32.totalorder %s3747_s25, %s4723_s6 }
  0x7c   :  { %p3753_p8 = pnand %p3751_p7, %p3748_p6 }
  0x7e   :  { %3756 = shalt.err (!%p3753_p8)
}
  0x7f   :  { %s3757_s30 = scalar_lea.vmem %s85_s0, 16  ;;  %s3761_s19 = scalar_lea.vmem %s85_s0, 32 }
  0x80   :  { %p3758_p9 = scmp.ne.s32.totalorder %s85_s0, %s3757_s30  ;;  %p3762_p10 = scmp.lt.s32.totalorder %s85_s0, %s85_s0 }
  0x81   :  { %p3763_p11 = scmp.lt.s32.totalorder %s3761_s19, %s3757_s30 }
  0x83   :  { %p3764_p12 = por %p3763_p11, %p3762_p10 }
  0x85   :  { %p3765_p13 = pnand %p3764_p12, %p3758_p9 }
  0x87   :  { %3768 = shalt.err (!%p3765_p13)
}
  0x88   :  { %87 = dma.hbm_to_vmem [thread:$0]  %s4723_s6, 16, %s85_s0, [#allocation11]  }
  0x89   :  { %s3858_s1 = smov [#allocation15]   ;;  %s3859_s18 = smov [#allocation18]  }
  0x8a   :  { %s111_s20 = sshll.u32 %s3858_s1, 4  ;;  %s135_s23 = sshll.u32 %s3859_s18, 4  ;;  %s112_s20 = int_to_ptr.vmem [resolvable:$true] %s111_s20  ;;  %s136_s23 = int_to_ptr.vmem [resolvable:$true] %s135_s23 }
  0x8b   :  { %s3769_s29 = scalar_lea.hbm %s4728_s11, 512 }
  0x8c   :  { %p3770_p0 = scmp.ne.s32.totalorder %s4728_s11, %s3769_s29  ;;  %p3773_p1 = scmp.lt.u32.totalorder %s3769_s29, %s4728_s11 }
  0x8e   :  { %p3775_p2 = pnand %p3773_p1, %p3770_p0 }
  0x90   :  { %3778 = shalt.err (!%p3775_p2)
}
  0x91   :  { %s3779_s6 = scalar_lea.vmem %s112_s20, 512  ;;  %p3784_p4 = scmp.lt.s32.totalorder %s112_s20, %s112_s20 }
  0x92   :  { %p3780_p3 = scmp.ne.s32.totalorder %s112_s20, %s3779_s6  ;;  %p3785_p5 = scmp.lt.s32.totalorder %s3779_s6, %s3779_s6 }
  0x94   :  { %p3786_p6 = por %p3785_p5, %p3784_p4 }
  0x96   :  { %p3787_p7 = pnand %p3786_p6, %p3780_p3 }
  0x98   :  { %3790 = shalt.err (!%p3787_p7)
}
  0x99   :  { %117 = dma.hbm_to_vmem [thread:$0]  %s4728_s11, 512, %s112_s20, [#allocation14], %s4745_s5, %s4745_s5, %s4744_s28  }
  0x9a   :  { %s3791_s4 = scalar_lea.hbm %s4730_s13, 1024 }
  0x9b   :  { %p3792_p8 = scmp.ne.s32.totalorder %s4730_s13, %s3791_s4  ;;  %p3795_p9 = scmp.lt.u32.totalorder %s3791_s4, %s4730_s13 }
  0x9d   :  { %p3797_p10 = pnand %p3795_p9, %p3792_p8 }
  0x9f   :  { %3800 = shalt.err (!%p3797_p10)
}
  0xa0   :  { %s3801_s12 = scalar_lea.vmem %s136_s23, 1024  ;;  %p3806_p12 = scmp.lt.s32.totalorder %s136_s23, %s136_s23 }
  0xa1   :  { %p3802_p11 = scmp.ne.s32.totalorder %s136_s23, %s3801_s12  ;;  %p3807_p13 = scmp.lt.s32.totalorder %s3801_s12, %s3801_s12 }
  0xa3   :  { %p3808_p0 = por %p3807_p13, %p3806_p12 }
  0xa5   :  { %p3809_p1 = pnand %p3808_p0, %p3802_p11 }
  0xa7   :  { %3812 = shalt.err (!%p3809_p1)
}
  0xa8   :  { %141 = dma.hbm_to_vmem [thread:$0]  %s4730_s13, 1024, %s136_s23, [#allocation17], %s4745_s5, %s4745_s5, %s4744_s28  }
  0xa9   :  { %3835 = dma.done.wait [#allocation5], 256  }
  0xaa   :  { %3836 = vsyncadd [#allocation5], 4294967040 }
  0xab   :  { %3837 = dma.done.wait [#allocation8], 512  }
  0xac   :  { %3838 = vsyncadd [#allocation8], 4294966784 }
  0xad   :  { %3839 = dma.done.wait [#allocation11], 32  }
  0xae   :  { %3840 = vsyncadd [#allocation11], 4294967264 }
  0xaf   :  { %3841 = dma.done.wait [#allocation14], 1536  }
  0xb0   :  { %3842 = vsyncadd [#allocation14], 4294965760 }
  0xb1   :  { %3843 = dma.done.wait [#allocation17], 1536  }
  0xb2   :  { %3844 = vsyncadd [#allocation17], 4294965760  ;;  %vm177_vm0 = vcmask 261120   ;;  %v175_v0 = vld [vmem:[#allocation4] sm:$0xff]  ;;  %v176_v1 = vld [vmem:[#allocation4 + $0x8] sm:$0xff]  ;;  %vm264_vm1 = vcmask 1046528  }
  0xb3   :  { %v178_v2 = vsel %vm177_vm0, %v175_v0, 0.0  ;;  %v181_v3 = vsel %vm177_vm0, %v176_v1, 0.0  ;;  %v234_v4 = vld [vmem:[%s4725_s8 + $0x8] sm:$0xff]  ;;  %v236_v5 = vld [vmem:[%s4725_s8 + $0x18] sm:$0xff]  ;;  %v233_v6 = vld [vmem:[%s4725_s8] sm:$0xff]  ;;  %vm3860_vm2 = vmmov 1  }
  0xb4   :  { %179 = vadd.xlane.f32.xlu0 %v178_v2  ;;  %v3277_v7 = vpack.c.bf16 %v236_v5, %v234_v4  ;;  %v235_v8 = vld [vmem:[%s4725_s8 + $0x10] sm:$0xff]  ;;  %v238_v9 = vld [vmem:[%s4725_s8 + $0x28] sm:$0xff]  ;;  %v240_v10 = vld [vmem:[%s4725_s8 + $0x38] sm:$0xff]  ;;  %v3861_v55 = vmov 0.0   ;;  %vm257_vm4 = vcmask 777216   ;;  %vm3863_vm5 = vmmov 0  }
  0xb5   :  { %v3279_v11 = vpack.c.bf16 %v235_v8, %v233_v6  ;;  %v3281_v12 = vpack.c.bf16 %v240_v10, %v238_v9  ;;  %v237_v13 = vld [vmem:[%s4725_s8 + $0x20] sm:$0xff]  ;;  %v239_v14 = vld [vmem:[%s4725_s8 + $0x30] sm:$0xff]  ;;  %v242_v15 = vld [vmem:[%s4725_s8 + $0x48] sm:$0xff]  ;;  %335 = vmatprep.mubr.f32.mxu0 %v3861_v55  ;;  %3066 = vmatprep.mubr.msk.f32.mxu1 %vm3863_vm5, %v3861_v55  ;;  %v3864_v9 = vmov 0   ;;  %s3867_s11 = smov 96   ;;  %vm701_vm6 = vcmask 254976  }
  0xb6   :  { %3278 = vmatprep.subr.bf16.mxu0 %v3277_v7  ;;  %v244_v16 = vld [vmem:[%s4725_s8 + $0x58] sm:$0xff]  ;;  %v3283_v17 = vpack.c.bf16 %v239_v14, %v237_v13  ;;  %v241_v19 = vld [vmem:[%s4725_s8 + $0x40] sm:$0xff]  ;;  %v243_v20 = vld [vmem:[%s4725_s8 + $0x50] sm:$0xff]  ;;  %3481 = vset.pattern.permute.xlu0 %v3864_v9  ;;  %vm718_vm7 = vcmask 517376   ;;  %vm2669_vm8 = vcmask 523264   ;;  %vm2873_vm9 = vcmask 130048  }
  0xb7   :  { %3280 = vmatpush1.bf16.msra.mxu0 %v3279_v11  ;;  %v3285_v18 = vpack.c.bf16 %v244_v16, %v242_v15  ;;  %v3287_v21 = vpack.c.bf16 %v243_v20, %v241_v19  ;;  %v246_v32 = vld [vmem:[%s4725_s8 + $0x68] sm:$0xff]  ;;  %v248_v33 = vld [vmem:[%s4725_s8 + $0x78] sm:$0xff]  ;;  %v245_v35 = vld [vmem:[%s4725_s8 + $0x60] sm:$0xff]  ;;  %3482 = vset.pattern.permute.xlu1 %v3864_v9 }
  0xb8   :  { %182 = vadd.xlane.f32.xlu0 %v181_v3  ;;  %3282 = vmatprep.subr.bf16.mxu0 %v3281_v12  ;;  %v3289_v34 = vpack.c.bf16 %v248_v33, %v246_v32  ;;  %v247_v36 = vld [vmem:[%s4725_s8 + $0x70] sm:$0xff]  ;;  %v250_v38 = vld [vmem:[%s4725_s8 + $0x88] sm:$0xff]  ;;  %v252_v39 = vld [vmem:[%s4725_s8 + $0x98] sm:$0xff] }
  0xb9   :  { %v3291_v37 = vpack.c.bf16 %v247_v36, %v245_v35  ;;  %v3293_v40 = vpack.c.bf16 %v252_v39, %v250_v38  ;;  %v249_v41 = vld [vmem:[%s4725_s8 + $0x80] sm:$0xff]  ;;  %v251_v42 = vld [vmem:[%s4725_s8 + $0x90] sm:$0xff]  ;;  %v254_v44 = vld [vmem:[%s4725_s8 + $0xa8] sm:$0xff]  ;;  %v445_v35 = vlaneseq }
  0xba   :  { %v3295_v43 = vpack.c.bf16 %v251_v42, %v249_v41  ;;  %v256_v45 = vld [vmem:[%s4725_s8 + $0xb8] sm:$0x7f]  ;;  %v253_v47 = vld [vmem:[%s4725_s8 + $0xa0] sm:$0xff]  ;;  %v255_v48 = vld [vmem:[%s4725_s8 + $0xb0] sm:$0x7f] }
  0xbb   :  { %3284 = vmatpush1.bf16.msra.mxu0 %v3283_v17  ;;  %v3297_v46 = vpack.c.bf16 %v256_v45, %v254_v44  ;;  %vm3298_vm3 = vmpackc.low %vm264_vm1, %vm3860_vm2  ;;  %v3300_v49 = vpack.c.bf16 %v255_v48, %v253_v47  ;;  %v224_v50 = vld [vmem:[#allocation13 + $0x8] sm:$0xff]  ;;  %v226_v51 = vld [vmem:[#allocation13 + $0x18] sm:$0xff]  ;;  %v446_v36 = vshrl.u32 %v445_v35, 7 }
  0xbc   :  { %3286 = vmatprep.subr.bf16.mxu0 %v3285_v18  ;;  %v3303_v52 = vpack.c.bf16 %v226_v51, %v224_v50  ;;  %v223_v53 = vld [vmem:[#allocation13] sm:$0xff]  ;;  %v225_v54 = vld [vmem:[#allocation13 + $0x10] sm:$0xff]  ;;  %v228_v58 = vld [vmem:[#allocation13 + $0x28] sm:$0xff] }
  0xbd   :  { %v231_v56 = vld [vmem:[#allocation7] sm:$0xff]  ;;  %v3305_v57 = vpack.c.bf16 %v225_v54, %v223_v53  ;;  %v229_v62 = vld [vmem:[#allocation13 + $0x30] sm:$0xff]  ;;  %v232_v63 = vld [vmem:[#allocation7 + $0x8] sm:$0xff]  ;;  %v451_v39 = vsub.s32 1, %v446_v36 }
  0xbe   :  { %v230_v59 = vld [vmem:[#allocation13 + $0x38] sm:$0xff]  ;;  %v227_v61 = vld [vmem:[#allocation13 + $0x20] sm:$0xff]  ;;  %v488_v3 = vld [vmem:[#allocation16 + $0x8] sm:$0xff] }
  0xbf   :  { %3288 = vmatpush1.bf16.msra.mxu0 %v3287_v21  ;;  %v3307_v60 = vpack.c.bf16 %v230_v59, %v228_v58  ;;  %v487_v2 = vld [vmem:[#allocation16] sm:$0xff]  ;;  %v489_v5 = vld [vmem:[#allocation16 + $0x10] sm:$0xff]  ;;  %v490_v6 = vld [vmem:[#allocation16 + $0x18] sm:$0xff] }
  0xc0   :  { %3290 = vmatprep.subr.bf16.mxu0 %v3289_v34  ;;  %v4182_v4 = vpack.c.bf16 %v488_v3, %v487_v2  ;;  %v431_v7 = vld [vmem:[%s4719_s2] sm:$0xff]  ;;  %v4191_v8 = vpack.c.bf16 %v490_v6, %v489_v5  ;;  %v432_v10 = vld [vmem:[%s4719_s2 + $0x8] sm:$0xff]  ;;  %v485_v14 = vld [vmem:[#allocation15 + $0x10] sm:$0xff] }
  0xc1   :  { %v483_v11 = vld [vmem:[#allocation15] sm:$0xff]  ;;  %v484_v12 = vld [vmem:[#allocation15 + $0x8] sm:$0xff]  ;;  %v486_v15 = vld [vmem:[#allocation15 + $0x18] sm:$0xff] }
  0xc2   :  { %v4198_v13 = vpack.c.bf16 %v484_v12, %v483_v11  ;;  %v4205_v16 = vpack.c.bf16 %v486_v15, %v485_v14  ;;  %v433_v38 = vld [vmem:[%s4726_s9] sm:$0x3]  ;;  %s3865_s9 = smov 64   ;;  %v492_v35 = vld [vmem:[%s4720_s3 + $0xe] sm:$0x3] }
  0xc3   :  { %3292 = vmatpush1.bf16.msra.mxu0 %v3291_v37  ;;  %v447_v37 = vsub.s32 0, %v446_v36  ;;  %v452_v42 = vrot.slane %v433_v38, %v451_v39 }
  0xc4   :  { %3294 = vmatprep.subr.bf16.mxu0 %v3293_v40 }
  0xc5   :  { %v448_v40 = vrot.slane %v433_v38, %v447_v37 }
  0xc7   :  { %3296 = vmatpush1.bf16.msra.mxu0 %v3295_v43  ;;  %v463_v43 = vld [vmem:[%s4727_s10] sm:$0x3]  ;;  %s3866_s10 = smov 32  }
  0xc8   :  { %3299 = vmatprep.subr.msk.bf16.mxu0 %vm3298_vm3, %v3297_v46  ;;  %v468_v47 = vrot.slane %v463_v43, %v447_v37  ;;  %v730_v37 = vsub.f32 1.0, %v492_v35 }
  0xcb   :  { %3302 = vmatpush1.bf16.msk.msra.mxu0 %vm3298_vm3, %v3300_v49  ;;  %v472_v49 = vrot.slane %v463_v43, %v451_v39 }
  0xcc   :  { %3304 = vmatprep.subr.bf16.mxu0 %v3303_v52 }
  0xce   :  { %2901 = vmatmul.mubr.msk.f32.vlgmr.msra.gmra.mrb[0].mxu0 %vm257_vm4, %v231_v56  ;;  %436 = vperm.xlu0 %3481, %v431_v7  }
  0xcf   :  { %3306 = vmatpush1.bf16.msra.mxu0 %v3305_v57  ;;  %341 = vmatprep.mubr.f32.mxu0 %v3861_v55 }
  0xd0   :  { %3308 = vmatprep.subr.bf16.mxu0 %v3307_v60 }
  0xd2   :  { %2902 = vmatmul.mubr.msk.f32.gmra.mrb[2].mxu0 %vm257_vm4, %v232_v63 }
  0xd3   :  { %418 = vmatprep.mubr.f32.mxu0 %v3861_v55 }
 0x141   :  { %v180_v22 = vpop.xlane.xlu0 %179 }
 0x142   :  { %v185_v23 = vmul.f32 0.03125, %v180_v22 }
 0x144   :  { %v4131_v24 = vsub.f32 %v175_v0, %v185_v23  ;;  %v3309_v0 = vpack.c.bf16 %v229_v62, %v227_v61 }
 0x145   :  { %v183_v25 = vpop.xlane.xlu0 %182 }
 0x146   :  { %v186_v26 = vmul.f32 0.03125, %v183_v25  ;;  %v189_v27 = vmul.f32 %v4131_v24, %v4131_v24  ;;  %3310 = vmatpush1.bf16.msra.mxu0 %v3309_v0  ;;  %v2897_v25 = vld [vmem:[#allocation10] ss:$0 sm:$0xff] }
 0x148   :  { %v4135_v28 = vsub.f32 %v176_v1, %v186_v26  ;;  %v191_v29 = vsel %vm177_vm0, %v189_v27, 0.0  ;;  %v3862_v1 = vmov 0.0|0.0   ;;  %v2898_v27 = vld [vmem:[#allocation12] ss:$0 sm:$0xff] }
 0x149   :  { %192 = vadd.xlane.f32.xlu1 %v191_v29  ;;  %3311 = vmatprep.subr.bf16.mxu0 %v3862_v1 }
 0x14a   :  { %v190_v30 = vmul.f32 %v4135_v28, %v4135_v28  ;;  %3317 = vmatprep.subr.bf16.mxu1 %v3862_v1 }
 0x14b   :  { %3319 = vmatpush3.bf16.msra.mxu1 %v4182_v4 }
 0x14c   :  { %v194_v31 = vsel %vm177_vm0, %v190_v30, 0.0  ;;  %3320 = vmatprep.subr.bf16.mxu1 %v3862_v1 }
 0x14d   :  { %195 = vadd.xlane.f32.xlu1 %v194_v31  ;;  %v437_v41 = vpop.permute.xlu0 %436 }
 0x14e   :  { %v455_v44 = vmul.f32 %v448_v40, %v437_v41  ;;  %v456_v45 = vmul.f32 %v452_v42, %v437_v41 }
 0x14f   :  { %3322 = vmatpush3.bf16.msra.mxu1 %v4191_v8 }
 0x150   :  { %3323 = vmatprep.subr.bf16.mxu1 %v3862_v1 }
 0x152   :  { %3067 = vmatmul.mubr.f32.vlgmr.msra.gmra.mrb[0].mxu1 %v3861_v55 }
 0x153   :  { %3325 = vmatpush3.bf16.msra.mxu1 %v4198_v13  ;;  %3077 = vmatprep.mubr.msk.f32.mxu1 %vm3863_vm5, %v3861_v55 }
 0x154   :  { %3326 = vmatprep.subr.bf16.mxu1 %v3862_v1 }
 0x157   :  { %3328 = vmatpush3.bf16.msra.mxu1 %v4205_v16 }
 0x158   :  { %3329 = vmatprep.subr.bf16.mxu1 %v3862_v1 }
 0x15e   :  { %441 = vperm.xlu1 %3482, %v432_v10  }
 0x1d6   :  { %v193_v17 = vpop.xlane.xlu1 %192 }
 0x1d7   :  { %v197_v18 = vmul.f32 0.03125, %v193_v17 }
 0x1d9   :  { %v199_v19 = vadd.f32 1e-05, %v197_v18 }
 0x1da   :  { %v196_v20 = vpop.xlane.xlu1 %195 }
 0x1db   :  { %3483 = vrsqrt.f32 %v199_v19  ;;  %v198_v21 = vmul.f32 0.03125, %v196_v20 }
 0x1dd   :  { %v200_v22 = vadd.f32 1e-05, %v198_v21 }
 0x1de   :  { %v442_v46 = vpop.permute.xlu1 %441 }
 0x1df   :  { %3485 = vrsqrt.f32 %v200_v22  ;;  %v457_v52 = vmul.f32 %v448_v40, %v442_v46  ;;  %v458_v54 = vmul.f32 %v452_v42, %v442_v46 }
 0x1e5   :  { %v3484_v23 = vpop.eup %3483 }
 0x1e6   :  { %v203_v26 = vmul.f32 %v3484_v23, %v4131_v24 }
 0x1e8   :  { %v212_v29 = vmul.f32 %v2897_v25, %v203_v26 }
 0x1e9   :  { %v3486_v30 = vpop.eup %3485 }
 0x1ea   :  { %v221_v31 = vadd.f32 %v2898_v27, %v212_v29  ;;  %v204_v32 = vmul.f32 %v3486_v30, %v4135_v28 }
 0x1ec   :  { %2903 = vmatmul.mubr.msk.f32.vlgmr.msra.gmra.mrb[0].mxu0 %vm177_vm0, %v221_v31  ;;  %v213_v33 = vmul.f32 %v2897_v25, %v204_v32 }
 0x1ed   :  { %424 = vmatprep.mubr.f32.mxu0 %v3861_v55  ;;  %3313 = vmatpush3.bf16.msra.mxu0 %v4198_v13 }
 0x1ee   :  { %v222_v34 = vadd.f32 %v2898_v27, %v213_v33  ;;  %3314 = vmatprep.subr.bf16.mxu0 %v3862_v1  ;;  %v491_v27 = vld [vmem:[%s4720_s3] sm:$0x3] }
 0x1ef   :  { %v720_v29 = vsub.f32 1.0, %v491_v27 }
 0x1f0   :  { %2904 = vmatmul.mubr.msk.f32.gmra.mrb[2].mxu0 %vm177_vm0, %v222_v34 }
 0x1f1   :  { %3316 = vmatpush3.bf16.msra.mxu0 %v4205_v16  ;;  %3055 = vmatprep.mubr.msk.f32.mxu0 %vm3863_vm5, %v3861_v55 }
 0x1f2   :  { %3335 = vmatprep.subr.bf16.mxu0 %v3862_v1 }
 0x1f4   :  { %3056 = vmatmul.mubr.f32.vlgmr.msra.gmra.mrb[4].mxu0 %v3861_v55 }
 0x1f5   :  { %3337 = vmatpush3.bf16.msra.mxu0 %v4198_v13  ;;  %3099 = vmatprep.mubr.msk.f32.mxu0 %vm3863_vm5, %v3861_v55 }
 0x1f6   :  { %3338 = vmatprep.subr.bf16.mxu0 %v3862_v1 }
 0x1f9   :  { %3340 = vmatpush3.bf16.msra.mxu0 %v4205_v16 }
 0x1fa   :  { %3347 = vmatprep.subr.bf16.mxu0 %v3862_v1 }
 0x225   :  { %v659_v24 = vpop.f32.mrb[0].mxu1 }
 0x226   :  { %v3068_v28 = vpop.f32.mrb[1].mxu1  ;;  %v664_v6 = vrot.slane %v659_v24, 2 }
 0x2bf   :  { %v420_v48 = vpop.f32.mrb[0].mxu0 }
 0x2c0   :  { %v459_v50 = vadd.f32 %v455_v44, %v420_v48  ;;  %v422_v51 = vpop.f32.mrb[1].mxu0 }
 0x2c1   :  { %v460_v53 = vadd.f32 %v456_v45, %v422_v51 }
 0x2c2   :  { %v475_v56 = vadd.f32 %v468_v47, %v459_v50 }
 0x2c3   :  { %v476_v57 = vadd.f32 %v472_v49, %v460_v53  ;;  %v426_v58 = vpop.f32.mrb[2].mxu0 }
 0x2c4   :  { %479 = vst [vmem:[#allocation2] sm:$0xff] %v475_v56  ;;  %v461_v59 = vadd.f32 %v457_v52, %v426_v58  ;;  %v428_v60 = vpop.f32.mrb[3].mxu0 }
 0x2c5   :  { %480 = vst [vmem:[#allocation2 + $0x8] sm:$0xff] %v476_v57  ;;  %v462_v61 = vadd.f32 %v458_v54, %v428_v60 }
 0x2c6   :  { %v477_v62 = vadd.f32 %v468_v47, %v461_v59 }
 0x2c7   :  { %v478_v63 = vadd.f32 %v472_v49, %v462_v61  ;;  %v563_v0 = vpop.f32.mrb[4].mxu0 }
 0x2c8   :  { %481 = vst [vmem:[#allocation2 + $0x10] sm:$0xff] %v477_v62  ;;  %v3057_v2 = vpop.f32.mrb[5].mxu0 }
 0x2c9   :  { %482 = vst [vmem:[#allocation2 + $0x18] sm:$0xff] %v478_v63 }
 0x2cb   :  { %v493_v3 = vld [vmem:[#allocation2] sm:$0x3]  ;;  %v747_v60 = vld [vmem:[#allocation2] sm:$0xc] }
 0x2cc   :  { %v567_v5 = vadd.f32 %v563_v0, %v493_v3 }
 0x2ce   :  { %3487 = vtanh.f32 %v567_v5  ;;  %v2905_v12 = vmul.f32 -1.442695, %v567_v5 }
 0x2d0   :  { %v592_v7 = vld [vmem:[#allocation2 + $0x18] sm:$0xc0]  ;;  %v854_v2 = vld [vmem:[#allocation2 + $0x18] sm:$0x30] }
 0x2d1   :  { %v666_v9 = vadd.f32 %v664_v6, %v592_v7 }
 0x2d3   :  { %3489 = vtanh.f32 %v666_v9  ;;  %v2906_v14 = vmul.f32 -1.442695, %v666_v9 }
 0x2d4   :  { %3491 = vpow2.f32 %v2905_v12 }
 0x2d5   :  { %3493 = vpow2.f32 %v2906_v14 }
 0x2d8   :  { %v3488_v10 = vpop.eup %3487 }
 0x2d9   :  { %577 = vrot.lane.b32.xlu1 %v3488_v10, %s3865_s9 }
 0x2dd   :  { %v3490_v11 = vpop.eup %3489 }
 0x2de   :  { %676 = vrot.lane.b32.xlu1 %v3490_v11, %s3865_s9  ;;  %v3492_v15 = vpop.eup %3491  ;;  %v745_v11 = vld [vmem:[%s4720_s3 + $0x2] sm:$0x3] }
 0x2df   :  { %v571_v17 = vadd.f32 1.0, %v3492_v15  ;;  %v3494_v18 = vpop.eup %3493  ;;  %v989_v14 = vsub.f32 1.0, %v745_v11 }
 0x2e0   :  { %v670_v19 = vadd.f32 1.0, %v3494_v18 }
 0x2e1   :  { %3495 = vrcp.f32 %v571_v17 }
 0x2e2   :  { %3497 = vrcp.f32 %v670_v19 }
 0x2eb   :  { %v3496_v20 = vpop.eup %3495 }
 0x2ec   :  { %v3498_v23 = vpop.eup %3497  ;;  %v575_v30 = vmul.f32 0.0, %v3496_v20 }
 0x2ed   :  { %v674_v33 = vmul.f32 0.0, %v3498_v23 }
 0x34b   :  { %v578_v21 = vpop.permute.xlu1 %577 }
 0x34c   :  { %v580_v22 = vmul.f32 %v3496_v20, %v578_v21 }
 0x34e   :  { %582 = vrot.lane.b32.xlu1 %v580_v22, %s3866_s10 }
 0x350   :  { %v677_v25 = vpop.permute.xlu1 %676 }
 0x351   :  { %v679_v26 = vmul.f32 %v3498_v23, %v677_v25 }
 0x353   :  { %681 = vrot.lane.b32.xlu1 %v679_v26, %s3866_s10 }
 0x357   :  { %693 = vperm.xlu1 %3482, %v491_v27  }
 0x35b   :  { %723 = vperm.xlu1 %3482, %v720_v29  }
 0x3c0   :  { %v583_v31 = vpop.permute.xlu1 %582 }
 0x3c1   :  { %v4240_v32 = vadd.f32 %v583_v31, %v575_v30 }
 0x3c3   :  { %3499 = vtanh.f32 %v4240_v32 }
 0x3c5   :  { %v682_v34 = vpop.permute.xlu1 %681 }
 0x3c6   :  { %v684_v24 = vadd.f32 %v682_v34, %v674_v33 }
 0x3c8   :  { %3501 = vtanh.f32 %v684_v24  ;;  %v739_v48 = vrot.slane %v684_v24, 6 }
 0x3cd   :  { %v3500_v28 = vpop.eup %3499 }
 0x3ce   :  { %588 = vrot.lane.b32.xlu1 %v3500_v28, %s3865_s9 }
 0x3d2   :  { %v3502_v36 = vpop.eup %3501  ;;  %705 = vperm.xlu1 %3482, %v492_v35  }
 0x3d3   :  { %687 = vrot.lane.b32.xlu0 %v3502_v36, %s3865_s9 }
 0x3d6   :  { %v4248_v38 = vpop.permute.xlu1 %693 }
 0x3d7   :  { %733 = vperm.xlu0 %3481, %v730_v37   ;;  %v728_v30 = vmul.f32 %v4248_v38, %v4240_v32 }
 0x3da   :  { %v724_v39 = vpop.permute.xlu1 %723 }
 0x3db   :  { %v4250_v42 = vmul.f32 0.0, %v724_v39 }
 0x3dd   :  { %v729_v31 = vadd.f32 %v728_v30, %v4250_v42 }
 0x3df   :  { %v835_v33 = vrot.slane %v729_v31, 6 }
 0x440   :  { %v589_v40 = vpop.permute.xlu1 %588 }
 0x441   :  { %v591_v41 = vmul.f32 %v3496_v20, %v589_v40 }
 0x443   :  { %v4253_v43 = vmul.f32 %v4248_v38, %v591_v41  ;;  %v746_v41 = vld [vmem:[%s4720_s3 + $0xc] sm:$0x3] }
 0x444   :  { %v1013_v32 = vsub.f32 1.0, %v746_v41 }
 0x445   :  { %v688_v44 = vpop.permute.xlu0 %687  ;;  %v4257_v45 = vadd.f32 %v4250_v42, %v4253_v43 }
 0x446   :  { %v690_v46 = vmul.f32 %v3498_v23, %v688_v44 }
 0x447   :  { %749 = vrot.lane.b32.xlu1 %v4257_v45, %s3866_s10 }
 0x448   :  { %v709_v47 = vrot.slane %v690_v46, 6 }
 0x44a   :  { %710 = vrot.lane.b32.xlu0 %v709_v47, %s3866_s10 }
 0x44b   :  { %740 = vrot.lane.b32.xlu1 %v739_v48, %s3867_s11 }
 0x451   :  { %v706_v49 = vpop.permute.xlu1 %705 }
 0x456   :  { %v734_v50 = vpop.permute.xlu0 %733 }
 0x457   :  { %v736_v53 = vmul.f32 0.0, %v734_v50 }
 0x4b9   :  { %v750_v51 = vpop.permute.xlu1 %749 }
 0x4ba   :  { %3078 = vmatmul.mubr.msk.f32.vlgmr.msra.gmra.mrb[2].mxu1 %vm177_vm0, %v750_v51 }
 0x4bb   :  { %3331 = vmatpush3.bf16.msra.mxu1 %v4182_v4  ;;  %3088 = vmatprep.mubr.msk.f32.mxu1 %vm3863_vm5, %v3861_v55 }
 0x4bc   :  { %v711_v52 = vpop.permute.xlu0 %710  ;;  %3332 = vmatprep.subr.bf16.mxu1 %v3862_v1 }
 0x4bd   :  { %v4268_v54 = vmul.f32 %v711_v52, %v706_v49  ;;  %v741_v6 = vpop.permute.xlu1 %740 }
 0x4be   :  { %v743_v7 = vmul.f32 %v741_v6, %v706_v49 }
 0x4bf   :  { %v4271_v56 = vadd.f32 %v736_v53, %v4268_v54  ;;  %3334 = vmatpush3.bf16.msra.mxu1 %v4191_v8 }
 0x4c0   :  { %3341 = vmatprep.subr.bf16.mxu1 %v3862_v1  ;;  %v4284_v9 = vadd.f32 %v743_v7, %v736_v53 }
 0x4c2   :  { %3089 = vmatmul.mubr.msk.f32.vlgmr.msra.gmra.mrb[4].mxu1 %vm177_vm0, %v4271_v56  ;;  %v940_v12 = vrot.slane %v4284_v9, 4 }
 0x4c3   :  { %3343 = vmatpush3.bf16.msra.mxu1 %v4182_v4  ;;  %3110 = vmatprep.mubr.msk.f32.mxu1 %vm3863_vm5, %v3861_v55 }
 0x4c4   :  { %3344 = vmatprep.subr.bf16.mxu1 %v3862_v1 }
 0x4c7   :  { %3346 = vmatpush3.bf16.msra.mxu1 %v4191_v8 }
 0x4c8   :  { %3353 = vmatprep.subr.bf16.mxu1 %v3862_v1 }
 0x58d   :  { %v819_v57 = vpop.f32.mrb[2].mxu1 }
 0x58e   :  { %v824_v58 = vrot.slane %v819_v57, 6  ;;  %v3079_v59 = vpop.f32.mrb[3].mxu1 }
 0x590   :  { %v826_v61 = vadd.f32 %v824_v58, %v747_v60 }
 0x592   :  { %3503 = vtanh.f32 %v826_v61  ;;  %v2908_v15 = vmul.f32 -1.442695, %v826_v61 }
 0x595   :  { %v924_v62 = vpop.f32.mrb[4].mxu1 }
 0x596   :  { %v929_v63 = vrot.slane %v924_v62, 4  ;;  %v3090_v0 = vpop.f32.mrb[5].mxu1 }
 0x598   :  { %v931_v3 = vadd.f32 %v929_v63, %v854_v2 }
 0x59a   :  { %3505 = vtanh.f32 %v931_v3  ;;  %v2910_v17 = vmul.f32 -1.442695, %v931_v3 }
 0x59b   :  { %3507 = vpow2.f32 %v2908_v15 }
 0x59c   :  { %v3504_v5 = vpop.eup %3503  ;;  %3509 = vpow2.f32 %v2910_v17 }
 0x59d   :  { %839 = vrot.lane.b32.xlu0 %v3504_v5, %s3865_s9 }
 0x5a4   :  { %v3506_v10 = vpop.eup %3505 }
 0x5a5   :  { %946 = vrot.lane.b32.xlu1 %v3506_v10, %s3865_s9  ;;  %v3508_v18 = vpop.eup %3507  ;;  %v1031_v10 = vld [vmem:[#allocation2] sm:$0x30] }
 0x5a6   :  { %v830_v19 = vadd.f32 1.0, %v3508_v18  ;;  %v3510_v20 = vpop.eup %3509  ;;  %v1138_v18 = vld [vmem:[#allocation2 + $0x18] sm:$0xc] }
 0x5a7   :  { %v935_v21 = vadd.f32 1.0, %v3510_v20 }
 0x5a8   :  { %3511 = vrcp.f32 %v830_v19 }
 0x5a9   :  { %941 = vrot.lane.b32.xlu1 %v940_v12, %s3866_s10  ;;  %3513 = vrcp.f32 %v935_v21 }
 0x5ad   :  { %992 = vperm.xlu1 %3482, %v989_v14  }
 0x5b2   :  { %v3512_v22 = vpop.eup %3511 }
 0x5b3   :  { %v3514_v26 = vpop.eup %3513  ;;  %v837_v34 = vmul.f32 %v3512_v22, %v835_v33 }
 0x60f   :  { %v840_v23 = vpop.permute.xlu0 %839 }
 0x610   :  { %v842_v25 = vmul.f32 %v3512_v22, %v840_v23 }
 0x612   :  { %844 = vrot.lane.b32.xlu0 %v842_v25, %s3866_s10 }
 0x617   :  { %v947_v27 = vpop.permute.xlu1 %946 }
 0x618   :  { %v949_v29 = vmul.f32 %v3514_v26, %v947_v27 }
 0x61a   :  { %951 = vrot.lane.b32.xlu0 %v949_v29, %s3866_s10 }
 0x61b   :  { %v942_v35 = vpop.permute.xlu1 %941 }
 0x61c   :  { %v944_v36 = vmul.f32 %v3514_v26, %v942_v35 }
 0x62c   :  { %v993_v42 = vpop.permute.xlu1 %992 }
 0x62d   :  { %v995_v44 = vmul.f32 %v993_v42, %v4257_v45  ;;  %v1007_v45 = vmul.f32 %v993_v42, %v729_v31 }
 0x684   :  { %v845_v24 = vpop.permute.xlu0 %844 }
 0x685   :  { %v847_v28 = vadd.f32 %v845_v24, %v837_v34 }
 0x687   :  { %3515 = vtanh.f32 %v847_v28  ;;  %v1002_v46 = vrot.slane %v847_v28, 2 }
 0x68c   :  { %v952_v37 = vpop.permute.xlu0 %951 }
 0x68d   :  { %v954_v39 = vadd.f32 %v952_v37, %v944_v36 }
 0x68f   :  { %3517 = vtanh.f32 %v954_v39  ;;  %v1022_v47 = vrot.slane %v954_v39, 4 }
 0x691   :  { %v3516_v40 = vpop.eup %3515 }
 0x692   :  { %850 = vrot.lane.b32.xlu0 %v3516_v40, %s3865_s9 }
 0x696   :  { %963 = vperm.xlu0 %3481, %v745_v11  }
 0x699   :  { %v3518_v38 = vpop.eup %3517 }
 0x69a   :  { %957 = vrot.lane.b32.xlu1 %v3518_v38, %s3865_s9  ;;  %1016 = vperm.xlu0 %3481, %v1013_v32  }
 0x69e   :  { %975 = vperm.xlu1 %3482, %v746_v41   ;;  %997 = vrot.lane.b32.xlu0 %v995_v44, %s3866_s10 }
 0x6a2   :  { %1003 = vrot.lane.b32.xlu0 %v1002_v46, %s3867_s11 }
 0x6a6   :  { %1023 = vrot.lane.b32.xlu0 %v1022_v47, %s3867_s11 }
 0x704   :  { %v851_v48 = vpop.permute.xlu0 %850 }
 0x705   :  { %v853_v49 = vmul.f32 %v3512_v22, %v851_v48 }
 0x707   :  { %v967_v50 = vrot.slane %v853_v49, 2 }
 0x709   :  { %968 = vrot.lane.b32.xlu1 %v967_v50, %s3866_s10 }
 0x70c   :  { %v958_v51 = vpop.permute.xlu1 %957 }
 0x70d   :  { %v960_v52 = vmul.f32 %v3514_v26, %v958_v51 }
 0x70f   :  { %v979_v53 = vrot.slane %v960_v52, 4 }
 0x711   :  { %980 = vrot.lane.b32.xlu1 %v979_v53, %s3866_s10  ;;  %v1029_v53 = vld [vmem:[%s4720_s3 + $0x4] sm:$0x3] }
 0x715   :  { %1009 = vrot.lane.b32.xlu1 %v1007_v45, %s3867_s11  ;;  %v964_v57 = vpop.permute.xlu0 %963  ;;  %v1030_v45 = vld [vmem:[%s4720_s3 + $0xa] sm:$0x3] }
 0x719   :  { %v1017_v58 = vpop.permute.xlu0 %1016 }
 0x71a   :  { %v1019_v2 = vmul.f32 %v1017_v58, %v4271_v56  ;;  %v1027_v27 = vmul.f32 %v1017_v58, %v4284_v9  ;;  %v1273_v58 = vsub.f32 1.0, %v1029_v53 }
 0x71d   :  { %v976_v59 = vpop.permute.xlu1 %975  ;;  %v998_v62 = vpop.permute.xlu0 %997 }
 0x721   :  { %v1004_v12 = vpop.permute.xlu0 %1003 }
 0x722   :  { %v1006_v22 = vmul.f32 %v1004_v12, %v964_v57 }
 0x725   :  { %v1024_v19 = vpop.permute.xlu0 %1023 }
 0x726   :  { %v1026_v23 = vmul.f32 %v1024_v19, %v976_v59 }
 0x728   :  { %v4338_v29 = vadd.f32 %v1027_v27, %v1026_v23  ;;  %v1307_v27 = vld [vmem:[#allocation2] sm:$0xc0] }
 0x72a   :  { %v1224_v31 = vrot.slane %v4338_v29, 6 }
 0x77b   :  { %v969_v60 = vpop.permute.xlu1 %968 }
 0x77c   :  { %v971_v61 = vmul.f32 %v969_v60, %v964_v57 }
 0x77e   :  { %972 = vst.msk [vmem:[#allocation3 + $0x2] sm:$0x3] %vm701_vm6, %v971_v61  ;;  %v4310_v63 = vadd.f32 %v998_v62, %v971_v61 }
 0x780   :  { %3100 = vmatmul.mubr.msk.f32.vlgmr.msra.gmra.mrb[6].mxu0 %vm177_vm0, %v4310_v63 }
 0x781   :  { %3349 = vmatpush3.bf16.msra.mxu0 %v4198_v13  ;;  %3121 = vmatprep.mubr.msk.f32.mxu0 %vm3863_vm5, %v3861_v55 }
 0x782   :  { %3350 = vmatprep.subr.bf16.mxu0 %v3862_v1 }
 0x783   :  { %v981_v0 = vpop.permute.xlu1 %980 }
 0x784   :  { %v4319_v3 = vmul.f32 %v981_v0, %v976_v59  ;;  %v1289_v59 = vsub.f32 1.0, %v1030_v45 }
 0x785   :  { %3352 = vmatpush3.bf16.msra.mxu0 %v4205_v16 }
 0x786   :  { %v4323_v5 = vadd.f32 %v1019_v2, %v4319_v3  ;;  %3359 = vmatprep.subr.bf16.mxu0 %v3862_v1 }
 0x787   :  { %v1010_v20 = vpop.permute.xlu1 %1009 }
 0x788   :  { %3111 = vmatmul.mubr.msk.f32.vlgmr.msra.gmra.mrb[6].mxu1 %vm177_vm0, %v4323_v5  ;;  %v4334_v25 = vadd.f32 %v1010_v20, %v1006_v22 }
 0x789   :  { %3355 = vmatpush3.bf16.msra.mxu1 %v4182_v4  ;;  %3132 = vmatprep.mubr.msk.f32.mxu1 %vm3863_vm5, %v3861_v55 }
 0x78a   :  { %3356 = vmatprep.subr.bf16.mxu1 %v3862_v1  ;;  %v1117_v30 = vrot.slane %v4334_v25, 4 }
 0x78d   :  { %3358 = vmatpush3.bf16.msra.mxu1 %v4191_v8 }
 0x78e   :  { %3365 = vmatprep.subr.bf16.mxu1 %v3862_v1 }
 0x853   :  { %v1101_v56 = vpop.f32.mrb[6].mxu0 }
 0x854   :  { %v1106_v6 = vrot.slane %v1101_v56, 4  ;;  %v3101_v7 = vpop.f32.mrb[7].mxu0 }
 0x856   :  { %v1108_v11 = vadd.f32 %v1106_v6, %v1031_v10 }
 0x858   :  { %3519 = vtanh.f32 %v1108_v11  ;;  %v2912_v34 = vmul.f32 -1.442695, %v1108_v11 }
 0x85b   :  { %v1208_v14 = vpop.f32.mrb[6].mxu1 }
 0x85c   :  { %v1213_v15 = vrot.slane %v1208_v14, 6  ;;  %v3112_v17 = vpop.f32.mrb[7].mxu1 }
 0x85e   :  { %v1215_v21 = vadd.f32 %v1213_v15, %v1138_v18 }
 0x860   :  { %3521 = vtanh.f32 %v1215_v21  ;;  %v2914_v24 = vmul.f32 -1.442695, %v1215_v21 }
 0x861   :  { %3523 = vpow2.f32 %v2912_v34 }
 0x862   :  { %v3520_v26 = vpop.eup %3519  ;;  %3525 = vpow2.f32 %v2914_v24 }
 0x863   :  { %1123 = vrot.lane.b32.xlu1 %v3520_v26, %s3865_s9 }
 0x867   :  { %1118 = vrot.lane.b32.xlu1 %v1117_v30, %s3866_s10 }
 0x86a   :  { %v3522_v33 = vpop.eup %3521 }
 0x86b   :  { %1230 = vrot.lane.b32.xlu0 %v3522_v33, %s3865_s9  ;;  %1225 = vrot.lane.b32.xlu1 %v1224_v31, %s3866_s10  ;;  %v3524_v9 = vpop.eup %3523  ;;  %v1414_v33 = vld [vmem:[#allocation2 + $0x18] sm:$0x3] }
 0x86c   :  { %v1112_v28 = vadd.f32 1.0, %v3524_v9  ;;  %v3526_v35 = vpop.eup %3525 }
 0x86d   :  { %v1219_v36 = vadd.f32 1.0, %v3526_v35 }
 0x86e   :  { %3527 = vrcp.f32 %v1112_v28 }
 0x86f   :  { %3529 = vrcp.f32 %v1219_v36 }
 0x878   :  { %v3528_v37 = vpop.eup %3527 }
 0x879   :  { %v3530_v41 = vpop.eup %3529 }
 0x8d5   :  { %v1124_v39 = vpop.permute.xlu1 %1123 }
 0x8d6   :  { %v1126_v40 = vmul.f32 %v3528_v37, %v1124_v39 }
 0x8d8   :  { %1128 = vrot.lane.b32.xlu0 %v1126_v40, %s3866_s10 }
 0x8d9   :  { %v1119_v42 = vpop.permute.xlu1 %1118 }
 0x8da   :  { %v1121_v44 = vmul.f32 %v3528_v37, %v1119_v42 }
 0x8dd   :  { %v1231_v32 = vpop.permute.xlu0 %1230  ;;  %v1226_v48 = vpop.permute.xlu1 %1225 }
 0x8de   :  { %v1233_v38 = vmul.f32 %v3530_v41, %v1231_v32  ;;  %v1228_v49 = vmul.f32 %v3530_v41, %v1226_v48 }
 0x8e0   :  { %1235 = vrot.lane.b32.xlu0 %v1233_v38, %s3866_s10 }
 0x94a   :  { %v1129_v46 = vpop.permute.xlu0 %1128 }
 0x94b   :  { %v1131_v47 = vadd.f32 %v1129_v46, %v1121_v44 }
 0x94d   :  { %3531 = vtanh.f32 %v1131_v47  ;;  %v1282_v0 = vrot.slane %v1131_v47, 4 }
 0x952   :  { %v1236_v50 = vpop.permute.xlu0 %1235 }
 0x953   :  { %v1238_v51 = vadd.f32 %v1236_v50, %v1228_v49 }
 0x955   :  { %3533 = vtanh.f32 %v1238_v51  ;;  %v1298_v7 = vrot.slane %v1238_v51, 2 }
 0x957   :  { %v3532_v52 = vpop.eup %3531 }
 0x958   :  { %1134 = vrot.lane.b32.xlu1 %v3532_v52, %s3865_s9 }
 0x95c   :  { %1247 = vperm.xlu1 %3482, %v1029_v53  }
 0x95f   :  { %v3534_v57 = vpop.eup %3533 }
 0x960   :  { %1241 = vrot.lane.b32.xlu0 %v3534_v57, %s3865_s9  ;;  %1259 = vperm.xlu1 %3482, %v1030_v45  }
 0x964   :  { %1276 = vperm.xlu0 %3481, %v1273_v58  }
 0x968   :  { %1292 = vperm.xlu0 %3481, %v1289_v59  }
 0x9ca   :  { %v1135_v60 = vpop.permute.xlu1 %1134 }
 0x9cb   :  { %v1137_v61 = vmul.f32 %v3528_v37, %v1135_v60 }
 0x9cd   :  { %v1251_v62 = vrot.slane %v1137_v61, 4 }
 0x9cf   :  { %1252 = vrot.lane.b32.xlu1 %v1251_v62, %s3866_s10 }
 0x9d2   :  { %v1242_v2 = vpop.permute.xlu0 %1241 }
 0x9d3   :  { %v1244_v56 = vmul.f32 %v3530_v41, %v1242_v2  ;;  %1283 = vrot.lane.b32.xlu1 %v1282_v0, %s3867_s11 }
 0x9d5   :  { %v1263_v6 = vrot.slane %v1244_v56, 2 }
 0x9d7   :  { %1264 = vrot.lane.b32.xlu0 %v1263_v6, %s3866_s10 }
 0x9db   :  { %1299 = vrot.lane.b32.xlu0 %v1298_v7, %s3867_s11  ;;  %v1248_v10 = vpop.permute.xlu1 %1247 }
 0x9df   :  { %v1260_v11 = vpop.permute.xlu1 %1259 }
 0x9e3   :  { %v1277_v12 = vpop.permute.xlu0 %1276 }
 0x9e4   :  { %v1279_v15 = vmul.f32 %v1277_v12, %v4310_v63  ;;  %v1287_v35 = vmul.f32 %v1277_v12, %v4334_v25 }
 0x9e7   :  { %v1293_v19 = vpop.permute.xlu0 %1292 }
 0x9e8   :  { %v1295_v21 = vmul.f32 %v1293_v19, %v4323_v5  ;;  %v1303_v38 = vmul.f32 %v1293_v19, %v4338_v29  ;;  %v1306_v29 = vld [vmem:[%s4720_s3 + $0x8] sm:$0x3] }
 0x9e9   :  { %v1556_v53 = vsub.f32 1.0, %v1306_v29 }
 0xa41   :  { %v1253_v14 = vpop.permute.xlu1 %1252 }
 0xa42   :  { %v1255_v17 = vmul.f32 %v1253_v14, %v1248_v10 }
 0xa44   :  { %1256 = vst.msk [vmem:[#allocation3 + $0x4] sm:$0x3] %vm701_vm6, %v1255_v17  ;;  %v4361_v18 = vadd.f32 %v1279_v15, %v1255_v17 }
 0xa45   :  { %v1284_v31 = vpop.permute.xlu1 %1283 }
 0xa46   :  { %3122 = vmatmul.mubr.msk.f32.vlgmr.msra.gmra.mrb[8].mxu0 %vm177_vm0, %v4361_v18  ;;  %v1286_v28 = vmul.f32 %v1284_v31, %v1248_v10 }
 0xa47   :  { %3361 = vmatpush3.bf16.msra.mxu0 %v4198_v13  ;;  %3143 = vmatprep.mubr.msk.f32.mxu0 %vm3863_vm5, %v3861_v55 }
 0xa48   :  { %3362 = vmatprep.subr.bf16.mxu0 %v3862_v1  ;;  %v4386_v36 = vadd.f32 %v1287_v35, %v1286_v28 }
 0xa49   :  { %v1265_v20 = vpop.permute.xlu0 %1264 }
 0xa4a   :  { %v4370_v63 = vmul.f32 %v1265_v20, %v1260_v11  ;;  %v1393_v40 = vrot.slane %v4386_v36, 2 }
 0xa4b   :  { %3364 = vmatpush3.bf16.msra.mxu0 %v4205_v16 }
 0xa4c   :  { %v4374_v22 = vadd.f32 %v1295_v21, %v4370_v63  ;;  %3371 = vmatprep.subr.bf16.mxu0 %v3862_v1 }
 0xa4d   :  { %v1300_v39 = vpop.permute.xlu0 %1299 }
 0xa4e   :  { %3133 = vmatmul.mubr.msk.f32.vlgmr.msra.gmra.mrb[8].mxu1 %vm177_vm0, %v4374_v22  ;;  %v1302_v41 = vmul.f32 %v1300_v39, %v1260_v11  ;;  %v1305_v11 = vld [vmem:[%s4720_s3 + $0x6] sm:$0x3] }
 0xa4f   :  { %3367 = vmatpush3.bf16.msra.mxu1 %v4182_v4  ;;  %3154 = vmatprep.mubr.msk.f32.mxu1 %vm3863_vm5, %v3861_v55  ;;  %v1540_v15 = vsub.f32 1.0, %v1305_v11 }
 0xa50   :  { %3368 = vmatprep.subr.bf16.mxu1 %v3862_v1  ;;  %v4393_v42 = vadd.f32 %v1303_v38, %v1302_v41 }
 0xa53   :  { %3370 = vmatpush3.bf16.msra.mxu1 %v4191_v8 }
 0xa54   :  { %3377 = vmatprep.subr.bf16.mxu1 %v3862_v1 }
 0xb19   :  { %v1377_v5 = vpop.f32.mrb[8].mxu0 }
 0xb1a   :  { %v1382_v23 = vrot.slane %v1377_v5, 2  ;;  %v3123_v26 = vpop.f32.mrb[9].mxu0 }
 0xb1c   :  { %v1384_v30 = vadd.f32 %v1382_v23, %v1307_v27 }
 0xb1e   :  { %3535 = vtanh.f32 %v1384_v30  ;;  %v2916_v25 = vmul.f32 -1.442695, %v1384_v30 }
 0xb21   :  { %v1484_v34 = vpop.f32.mrb[8].mxu1 }
 0xb22   :  { %v1488_v24 = vadd.f32 %v1484_v34, %v1414_v33  ;;  %v3134_v9 = vpop.f32.mrb[9].mxu1 }
 0xb24   :  { %3537 = vtanh.f32 %v1488_v24  ;;  %v2918_v44 = vmul.f32 -1.442695, %v1488_v24 }
 0xb25   :  { %3539 = vpow2.f32 %v2916_v25  ;;  %v1680_v25 = vld [vmem:[#allocation2 + $0x8] sm:$0xc0] }
 0xb26   :  { %3541 = vpow2.f32 %v2918_v44 }
 0xb28   :  { %v3536_v37 = vpop.eup %3535 }
 0xb29   :  { %1399 = vrot.lane.b32.xlu1 %v3536_v37, %s3865_s9 }
 0xb2d   :  { %1394 = vrot.lane.b32.xlu1 %v1393_v40, %s3866_s10 }
 0xb2e   :  { %v3538_v32 = vpop.eup %3537 }
 0xb2f   :  { %1502 = vrot.lane.b32.xlu0 %v3538_v32, %s3865_s9  ;;  %v3540_v46 = vpop.eup %3539 }
 0xb30   :  { %v1388_v47 = vadd.f32 1.0, %v3540_v46  ;;  %v3542_v48 = vpop.eup %3541 }
 0xb31   :  { %v1492_v49 = vadd.f32 1.0, %v3542_v48 }
 0xb32   :  { %3543 = vrcp.f32 %v1388_v47 }
 0xb33   :  { %1497 = vrot.lane.b32.xlu0 %v4393_v42, %s3866_s10  ;;  %3545 = vrcp.f32 %v1492_v49 }
 0xb3c   :  { %v3544_v50 = vpop.eup %3543 }
 0xb3d   :  { %v3546_v45 = vpop.eup %3545 }
 0xb9b   :  { %v1400_v51 = vpop.permute.xlu1 %1399 }
 0xb9c   :  { %v1402_v52 = vmul.f32 %v3544_v50, %v1400_v51 }
 0xb9e   :  { %1404 = vrot.lane.b32.xlu1 %v1402_v52, %s3866_s10 }
 0xb9f   :  { %v1395_v59 = vpop.permute.xlu1 %1394 }
 0xba0   :  { %v1397_v60 = vmul.f32 %v3544_v50, %v1395_v59 }
 0xba1   :  { %v1503_v57 = vpop.permute.xlu0 %1502 }
 0xba2   :  { %v1505_v58 = vmul.f32 %v3546_v45, %v1503_v57  ;;  %1559 = vperm.xlu1 %3482, %v1556_v53  }
 0xba4   :  { %1507 = vrot.lane.b32.xlu0 %v1505_v58, %s3866_s10 }
 0xba5   :  { %v1498_v0 = vpop.permute.xlu0 %1497 }
 0xba6   :  { %v1500_v2 = vmul.f32 %v3546_v45, %v1498_v0  ;;  %v1576_v0 = vld [vmem:[%s4720_s3 + $0x6] sm:$0x3] }
 0xba8   :  { %1531 = vperm.xlu0 %3481, %v1306_v29  }
 0xc10   :  { %v1405_v61 = vpop.permute.xlu1 %1404 }
 0xc11   :  { %v1407_v62 = vadd.f32 %v1405_v61, %v1397_v60 }
 0xc13   :  { %3547 = vtanh.f32 %v1407_v62  ;;  %v1549_v23 = vrot.slane %v1407_v62, 6 }
 0xc16   :  { %v1508_v56 = vpop.permute.xlu0 %1507 }
 0xc17   :  { %v4402_v6 = vadd.f32 %v1508_v56, %v1500_v2 }
 0xc19   :  { %3549 = vtanh.f32 %v4402_v6 }
 0xc1d   :  { %v3548_v7 = vpop.eup %3547 }
 0xc1e   :  { %1410 = vrot.lane.b32.xlu1 %v3548_v7, %s3865_s9 }
 0xc21   :  { %v1560_v10 = vpop.permute.xlu1 %1559 }
 0xc22   :  { %v1562_v12 = vmul.f32 %v1560_v10, %v4374_v22  ;;  %v1569_v48 = vmul.f32 %v1560_v10, %v4393_v42  ;;  %v1833_v10 = vsub.f32 1.0, %v1576_v0 }
 0xc23   :  { %v3550_v14 = vpop.eup %3549 }
 0xc24   :  { %1513 = vrot.lane.b32.xlu0 %v3550_v14, %s3865_s9  ;;  %1564 = vrot.lane.b32.xlu1 %v1562_v12, %s3867_s11 }
 0xc27   :  { %v4412_v20 = vpop.permute.xlu0 %1531 }
 0xc28   :  { %1519 = vperm.xlu0 %3481, %v1305_v11   ;;  %1543 = vperm.xlu1 %3482, %v1540_v15   ;;  %v1568_v12 = vmul.f32 %v4412_v20, %v4402_v6 }
 0xc90   :  { %v1411_v17 = vpop.permute.xlu1 %1410 }
 0xc91   :  { %v1413_v19 = vmul.f32 %v3544_v50, %v1411_v17 }
 0xc93   :  { %v1523_v21 = vrot.slane %v1413_v19, 6 }
 0xc95   :  { %1524 = vrot.lane.b32.xlu0 %v1523_v21, %s3866_s10 }
 0xc96   :  { %v1514_v5 = vpop.permute.xlu0 %1513  ;;  %v1565_v27 = vpop.permute.xlu1 %1564 }
 0xc97   :  { %v1516_v26 = vmul.f32 %v3546_v45, %v1514_v5 }
 0xc99   :  { %v4416_v22 = vmul.f32 %v4412_v20, %v1516_v26  ;;  %1550 = vrot.lane.b32.xlu0 %v1549_v23, %s3867_s11 }
 0xc9b   :  { %v4420_v30 = vadd.f32 %v1565_v27, %v4416_v22 }
 0xc9d   :  { %1682 = vrot.lane.b32.xlu1 %v4420_v30, %s3866_s10 }
 0xca7   :  { %v1520_v31 = vpop.permute.xlu0 %1519  ;;  %v1544_v33 = vpop.permute.xlu1 %1543 }
 0xca8   :  { %v1546_v24 = vmul.f32 %v1544_v33, %v4361_v18  ;;  %v1577_v18 = vld [vmem:[#allocation2 + $0x10] sm:$0x3]  ;;  %v1554_v51 = vmul.f32 %v1544_v33, %v4386_v36  ;;  %v1575_v36 = vld [vmem:[%s4720_s3 + $0x8] sm:$0x3] }
 0xca9   :  { %v1814_v62 = vsub.f32 1.0, %v1575_v36 }
 0xd07   :  { %v1525_v34 = vpop.permute.xlu0 %1524 }
 0xd08   :  { %v1527_v9 = vmul.f32 %v1525_v34, %v1520_v31 }
 0xd0a   :  { %1528 = vst.msk [vmem:[#allocation3 + $0x6] sm:$0x3] %vm701_vm6, %v1527_v9  ;;  %v4426_v28 = vadd.f32 %v1546_v24, %v1527_v9 }
 0xd0b   :  { %v1551_v47 = vpop.permute.xlu0 %1550 }
 0xd0c   :  { %3144 = vmatmul.mubr.msk.f32.vlgmr.msra.gmra.mrb[10].mxu0 %vm177_vm0, %v4426_v28  ;;  %v1553_v49 = vmul.f32 %v1551_v47, %v1520_v31 }
 0xd0d   :  { %3373 = vmatpush3.bf16.msra.mxu0 %v4198_v13  ;;  %3165 = vmatprep.mubr.msk.f32.mxu0 %vm3863_vm5, %v3861_v55 }
 0xd0e   :  { %3374 = vmatprep.subr.bf16.mxu0 %v3862_v1  ;;  %v4448_v29 = vadd.f32 %v1554_v51, %v1553_v49 }
 0xd0f   :  { %v1683_v35 = vpop.permute.xlu1 %1682 }
 0xd10   :  { %3155 = vmatmul.mubr.msk.f32.vlgmr.msra.gmra.mrb[10].mxu1 %vm177_vm0, %v1683_v35 }
 0xd11   :  { %3376 = vmatpush3.bf16.msra.mxu0 %v4205_v16  ;;  %3379 = vmatpush3.bf16.msra.mxu1 %v4182_v4 }
 0xd12   :  { %3380 = vmatprep.subr.bf16.mxu1 %v3862_v1  ;;  %3176 = vmatprep.mubr.msk.f32.mxu1 %vm3863_vm5, %v3861_v55 }
 0xd13   :  { %3383 = vmatprep.subr.bf16.mxu0 %v3862_v1 }
 0xd15   :  { %3382 = vmatpush3.bf16.msra.mxu1 %v4191_v8 }
 0xd16   :  { %3389 = vmatprep.subr.bf16.mxu1 %v3862_v1 }
 0xddf   :  { %v1647_v37 = vpop.f32.mrb[10].mxu0 }
 0xde0   :  { %v1651_v39 = vadd.f32 %v1647_v37, %v1577_v18  ;;  %v3145_v40 = vpop.f32.mrb[11].mxu0 }
 0xde2   :  { %3551 = vtanh.f32 %v1651_v39  ;;  %v2920_v52 = vmul.f32 -1.442695, %v1651_v39 }
 0xde3   :  { %v1752_v41 = vpop.f32.mrb[10].mxu1 }
 0xde4   :  { %v1757_v32 = vrot.slane %v1752_v41, 2  ;;  %v3156_v38 = vpop.f32.mrb[11].mxu1 }
 0xde6   :  { %v1759_v44 = vadd.f32 %v1757_v32, %v1680_v25 }
 0xde8   :  { %3553 = vtanh.f32 %v1759_v44  ;;  %v2922_v53 = vmul.f32 -1.442695, %v1759_v44 }
 0xde9   :  { %3555 = vpow2.f32 %v2920_v52 }
 0xdea   :  { %3557 = vpow2.f32 %v2922_v53  ;;  %v1859_v53 = vld [vmem:[#allocation2 + $0x10] sm:$0xc] }
 0xdec   :  { %v3552_v46 = vpop.eup %3551 }
 0xded   :  { %1665 = vrot.lane.b32.xlu1 %v3552_v46, %s3865_s9 }
 0xdf1   :  { %1571 = vrot.lane.b32.xlu1 %v1569_v48, %s3866_s10 }
 0xdf2   :  { %v3554_v50 = vpop.eup %3553 }
 0xdf3   :  { %1772 = vrot.lane.b32.xlu0 %v3554_v50, %s3865_s9  ;;  %v3556_v45 = vpop.eup %3555 }
 0xdf4   :  { %v1655_v57 = vadd.f32 1.0, %v3556_v45  ;;  %v3558_v42 = vpop.eup %3557 }
 0xdf5   :  { %v1763_v58 = vadd.f32 1.0, %v3558_v42 }
 0xdf6   :  { %3559 = vrcp.f32 %v1655_v57 }
 0xdf7   :  { %1660 = vrot.lane.b32.xlu0 %v4448_v29, %s3866_s10  ;;  %3561 = vrcp.f32 %v1763_v58 }
 0xe00   :  { %v3560_v59 = vpop.eup %3559 }
 0xe01   :  { %v3562_v2 = vpop.eup %3561 }
 0xe5f   :  { %v1666_v60 = vpop.permute.xlu1 %1665 }
 0xe60   :  { %v1668_v61 = vmul.f32 %v3560_v59, %v1666_v60 }
 0xe62   :  { %1670 = vrot.lane.b32.xlu1 %v1668_v61, %s3866_s10 }
 0xe63   :  { %v1572_v11 = vpop.permute.xlu1 %1571 }
 0xe64   :  { %v1574_v15 = vadd.f32 %v1572_v11, %v1568_v12 }
 0xe65   :  { %v1773_v56 = vpop.permute.xlu0 %1772 }
 0xe66   :  { %v1775_v7 = vmul.f32 %v3562_v2, %v1773_v56  ;;  %1817 = vperm.xlu1 %3482, %v1814_v62   ;;  %v1768_v21 = vrot.slane %v1574_v15, 2 }
 0xe68   :  { %1777 = vrot.lane.b32.xlu0 %v1775_v7, %s3866_s10  ;;  %v1770_v23 = vmul.f32 %v3562_v2, %v1768_v21  ;;  %v1857_v7 = vld [vmem:[%s4720_s3 + $0xa] sm:$0x3] }
 0xe69   :  { %v1661_v14 = vpop.permute.xlu0 %1660  ;;  %v2101_v12 = vsub.f32 1.0, %v1857_v7 }
 0xe6a   :  { %1836 = vperm.xlu1 %3482, %v1833_v10   ;;  %v1663_v17 = vmul.f32 %v3560_v59, %v1661_v14 }
 0xe6c   :  { %1789 = vperm.xlu0 %3481, %v1575_v36  }
 0xed4   :  { %v1671_v19 = vpop.permute.xlu1 %1670 }
 0xed5   :  { %v4462_v5 = vadd.f32 %v1671_v19, %v1663_v17 }
 0xed7   :  { %3563 = vtanh.f32 %v4462_v5 }
 0xeda   :  { %v1778_v26 = vpop.permute.xlu0 %1777 }
 0xedb   :  { %v1780_v27 = vadd.f32 %v1778_v26, %v1770_v23 }
 0xedd   :  { %3565 = vtanh.f32 %v1780_v27  ;;  %v1846_v32 = vrot.slane %v1780_v27, 6 }
 0xee1   :  { %v3564_v31 = vpop.eup %3563 }
 0xee2   :  { %1676 = vrot.lane.b32.xlu0 %v3564_v31, %s3865_s9 }
 0xee5   :  { %v1818_v33 = vpop.permute.xlu1 %1817 }
 0xee6   :  { %v1820_v34 = vmul.f32 %v1818_v33, %v4426_v28 }
 0xee7   :  { %v3566_v6 = vpop.eup %3565 }
 0xee8   :  { %1783 = vrot.lane.b32.xlu1 %v3566_v6, %s3865_s9  ;;  %1822 = vrot.lane.b32.xlu0 %v1820_v34, %s3867_s11 }
 0xee9   :  { %v1837_v35 = vpop.permute.xlu1 %1836 }
 0xeea   :  { %v1839_v38 = vmul.f32 %v1837_v35, %v4420_v30  ;;  %v1851_v25 = vmul.f32 %v1837_v35, %v1574_v15 }
 0xeeb   :  { %v4469_v20 = vpop.permute.xlu0 %1789 }
 0xeec   :  { %1800 = vperm.xlu1 %3482, %v1576_v0  }
 0xf54   :  { %v1677_v24 = vpop.permute.xlu0 %1676 }
 0xf55   :  { %v1679_v9 = vmul.f32 %v3560_v59, %v1677_v24  ;;  %v1966_v59 = vld [vmem:[#allocation2 + $0x8] sm:$0x30]  ;;  %v1826_v24 = vmul.f32 %v4469_v20, %v4462_v5 }
 0xf57   :  { %v4472_v18 = vmul.f32 %v4469_v20, %v1679_v9 }
 0xf5a   :  { %v1784_v37 = vpop.permute.xlu1 %1783  ;;  %v1823_v39 = vpop.permute.xlu0 %1822 }
 0xf5b   :  { %v1786_v40 = vmul.f32 %v3562_v2, %v1784_v37  ;;  %v4475_v41 = vadd.f32 %v1823_v39, %v4472_v18  ;;  %v1827_v2 = vmul.f32 %v1818_v33, %v4448_v29 }
 0xf5d   :  { %v1804_v28 = vrot.slane %v1786_v40, 6  ;;  %1861 = vrot.lane.b32.xlu1 %v4475_v41, %s3866_s10 }
 0xf5f   :  { %1805 = vrot.lane.b32.xlu0 %v1804_v28, %s3866_s10 }
 0xf61   :  { %1847 = vrot.lane.b32.xlu1 %v1846_v32, %s3867_s11 }
 0xf63   :  { %1841 = vrot.lane.b32.xlu0 %v1839_v38, %s3866_s10 }
 0xf67   :  { %1853 = vrot.lane.b32.xlu0 %v1851_v25, %s3867_s11 }
 0xf6b   :  { %v1801_v44 = vpop.permute.xlu1 %1800 }
 0xfcf   :  { %v1862_v46 = vpop.permute.xlu1 %1861 }
 0xfd0   :  { %3166 = vmatmul.mubr.msk.f32.vlgmr.msra.gmra.mrb[12].mxu0 %vm177_vm0, %v1862_v46  ;;  %v1858_v46 = vld [vmem:[%s4720_s3 + $0x4] sm:$0x3] }
 0xfd1   :  { %v1806_v47 = vpop.permute.xlu0 %1805  ;;  %3385 = vmatpush3.bf16.msra.mxu0 %v4198_v13  ;;  %3187 = vmatprep.mubr.msk.f32.mxu0 %vm3863_vm5, %v3861_v55  ;;  %v2125_v5 = vsub.f32 1.0, %v1858_v46 }
 0xfd2   :  { %3386 = vmatprep.subr.bf16.mxu0 %v3862_v1  ;;  %v4489_v30 = vmul.f32 %v1806_v47, %v1801_v44 }
 0xfd3   :  { %v1848_v36 = vpop.permute.xlu1 %1847 }
 0xfd4   :  { %v1850_v0 = vmul.f32 %v1848_v36, %v1801_v44 }
 0xfd5   :  { %v1842_v48 = vpop.permute.xlu0 %1841  ;;  %3388 = vmatpush3.bf16.msra.mxu0 %v4205_v16 }
 0xfd6   :  { %v4493_v49 = vadd.f32 %v1842_v48, %v4489_v30  ;;  %3395 = vmatprep.subr.bf16.mxu0 %v3862_v1 }
 0xfd8   :  { %3177 = vmatmul.mubr.msk.f32.vlgmr.msra.gmra.mrb[12].mxu1 %vm177_vm0, %v4493_v49 }
 0xfd9   :  { %3391 = vmatpush3.bf16.msra.mxu1 %v4182_v4  ;;  %3198 = vmatprep.mubr.msk.f32.mxu1 %vm3863_vm5, %v3861_v55  ;;  %v1854_v62 = vpop.permute.xlu0 %1853 }
 0xfda   :  { %3392 = vmatprep.subr.bf16.mxu1 %v3862_v1  ;;  %v4506_v56 = vadd.f32 %v1854_v62, %v1850_v0 }
 0xfdc   :  { %v2052_v10 = vrot.slane %v4506_v56, 4 }
 0xfdd   :  { %3394 = vmatpush3.bf16.msra.mxu1 %v4191_v8 }
 0xfde   :  { %3401 = vmatprep.subr.bf16.mxu1 %v3862_v1 }
0x10a3   :  { %v1931_v50 = vpop.f32.mrb[12].mxu0 }
0x10a4   :  { %v1936_v51 = vrot.slane %v1931_v50, 6  ;;  %v3167_v52 = vpop.f32.mrb[13].mxu0 }
0x10a6   :  { %v1938_v45 = vadd.f32 %v1936_v51, %v1859_v53 }
0x10a8   :  { %3567 = vtanh.f32 %v1938_v45  ;;  %v2924_v14 = vmul.f32 -1.442695, %v1938_v45 }
0x10ab   :  { %v2036_v57 = vpop.f32.mrb[12].mxu1 }
0x10ac   :  { %v2041_v42 = vrot.slane %v2036_v57, 4  ;;  %v3178_v58 = vpop.f32.mrb[13].mxu1 }
0x10ae   :  { %v2043_v60 = vadd.f32 %v2041_v42, %v1966_v59 }
0x10b0   :  { %3569 = vtanh.f32 %v2043_v60  ;;  %v2926_v29 = vmul.f32 -1.442695, %v2043_v60 }
0x10b1   :  { %3571 = vpow2.f32 %v2924_v14 }
0x10b2   :  { %v3568_v61 = vpop.eup %3567  ;;  %3573 = vpow2.f32 %v2926_v29  ;;  %v2143_v29 = vld [vmem:[#allocation2 + $0x10] sm:$0x30] }
0x10b3   :  { %1951 = vrot.lane.b32.xlu1 %v3568_v61, %s3865_s9 }
0x10b7   :  { %1829 = vrot.lane.b32.xlu1 %v1827_v2, %s3866_s10 }
0x10ba   :  { %v3570_v11 = vpop.eup %3569 }
0x10bb   :  { %2058 = vrot.lane.b32.xlu0 %v3570_v11, %s3865_s9  ;;  %2053 = vrot.lane.b32.xlu1 %v2052_v10, %s3866_s10  ;;  %v3572_v15 = vpop.eup %3571 }
0x10bc   :  { %v1942_v17 = vadd.f32 1.0, %v3572_v15  ;;  %v3574_v19 = vpop.eup %3573 }
0x10bd   :  { %v2047_v21 = vadd.f32 1.0, %v3574_v19 }
0x10be   :  { %3575 = vrcp.f32 %v1942_v17 }
0x10bf   :  { %2104 = vperm.xlu1 %3482, %v2101_v12   ;;  %3577 = vrcp.f32 %v2047_v21 }
0x10c8   :  { %v3576_v23 = vpop.eup %3575 }
0x10c9   :  { %v3578_v31 = vpop.eup %3577 }
0x1125   :  { %v1952_v26 = vpop.permute.xlu1 %1951 }
0x1126   :  { %v1954_v27 = vmul.f32 %v3576_v23, %v1952_v26 }
0x1128   :  { %1956 = vrot.lane.b32.xlu0 %v1954_v27, %s3866_s10 }
0x1129   :  { %v1830_v6 = vpop.permute.xlu1 %1829 }
0x112a   :  { %v1832_v9 = vadd.f32 %v1830_v6, %v1826_v24 }
0x112c   :  { %v1947_v35 = vrot.slane %v1832_v9, 6 }
0x112d   :  { %v2059_v33 = vpop.permute.xlu0 %2058  ;;  %v2054_v28 = vpop.permute.xlu1 %2053 }
0x112e   :  { %v2061_v34 = vmul.f32 %v3578_v31, %v2059_v33  ;;  %v1949_v37 = vmul.f32 %v3576_v23, %v1947_v35  ;;  %v2056_v32 = vmul.f32 %v3578_v31, %v2054_v28 }
0x1130   :  { %2063 = vrot.lane.b32.xlu0 %v2061_v34, %s3866_s10 }
0x113e   :  { %v2105_v47 = vpop.permute.xlu1 %2104 }
0x113f   :  { %v2107_v48 = vmul.f32 %v2105_v47, %v4475_v41  ;;  %v2119_v41 = vmul.f32 %v2105_v47, %v1832_v9 }
0x119a   :  { %v1957_v39 = vpop.permute.xlu0 %1956 }
0x119b   :  { %v1959_v40 = vadd.f32 %v1957_v39, %v1949_v37 }
0x119d   :  { %3579 = vtanh.f32 %v1959_v40  ;;  %v2114_v50 = vrot.slane %v1959_v40, 2 }
0x11a2   :  { %v2064_v38 = vpop.permute.xlu0 %2063 }
0x11a3   :  { %v2066_v25 = vadd.f32 %v2064_v38, %v2056_v32 }
0x11a5   :  { %3581 = vtanh.f32 %v2066_v25  ;;  %v2134_v51 = vrot.slane %v2066_v25, 4 }
0x11a7   :  { %v3580_v44 = vpop.eup %3579 }
0x11a8   :  { %1962 = vrot.lane.b32.xlu0 %v3580_v44, %s3865_s9 }
0x11ac   :  { %2075 = vperm.xlu0 %3481, %v1857_v7  }
0x11af   :  { %v3582_v20 = vpop.eup %3581 }
0x11b0   :  { %2069 = vrot.lane.b32.xlu1 %v3582_v20, %s3865_s9  ;;  %2128 = vperm.xlu0 %3481, %v2125_v5  }
0x11b4   :  { %2087 = vperm.xlu1 %3482, %v1858_v46   ;;  %2109 = vrot.lane.b32.xlu0 %v2107_v48, %s3866_s10 }
0x11b8   :  { %2115 = vrot.lane.b32.xlu0 %v2114_v50, %s3867_s11 }
0x11bc   :  { %2135 = vrot.lane.b32.xlu0 %v2134_v51, %s3867_s11 }
0x121a   :  { %v1963_v52 = vpop.permute.xlu0 %1962 }
0x121b   :  { %v1965_v53 = vmul.f32 %v3576_v23, %v1963_v52  ;;  %v2250_v23 = vld [vmem:[#allocation2 + $0x8] sm:$0xc] }
0x121d   :  { %v2079_v45 = vrot.slane %v1965_v53, 2 }
0x121f   :  { %2080 = vrot.lane.b32.xlu1 %v2079_v45, %s3866_s10 }
0x1222   :  { %v2070_v57 = vpop.permute.xlu1 %2069 }
0x1223   :  { %v2072_v42 = vmul.f32 %v3578_v31, %v2070_v57 }
0x1225   :  { %v2091_v58 = vrot.slane %v2072_v42, 4  ;;  %v2141_v42 = vld [vmem:[%s4720_s3 + $0xc] sm:$0x3] }
0x1227   :  { %2092 = vrot.lane.b32.xlu1 %v2091_v58, %s3866_s10  ;;  %v2142_v58 = vld [vmem:[%s4720_s3 + $0x2] sm:$0x3] }
0x122b   :  { %2121 = vrot.lane.b32.xlu1 %v2119_v41, %s3867_s11  ;;  %v2076_v59 = vpop.permute.xlu0 %2075 }
0x122f   :  { %v2129_v60 = vpop.permute.xlu0 %2128 }
0x1230   :  { %v2131_v10 = vmul.f32 %v2129_v60, %v4493_v49  ;;  %v2139_v33 = vmul.f32 %v2129_v60, %v4506_v56  ;;  %v2401_v60 = vsub.f32 1.0, %v2142_v58 }
0x1233   :  { %v2088_v36 = vpop.permute.xlu1 %2087  ;;  %v2110_v0 = vpop.permute.xlu0 %2109 }
0x1237   :  { %v2116_v15 = vpop.permute.xlu0 %2115 }
0x1238   :  { %v2118_v31 = vmul.f32 %v2116_v15, %v2076_v59 }
0x123b   :  { %v2136_v26 = vpop.permute.xlu0 %2135 }
0x1291   :  { %v2081_v61 = vpop.permute.xlu1 %2080 }
0x1292   :  { %v4531_v62 = vmul.f32 %v2081_v61, %v2076_v59  ;;  %v2385_v59 = vsub.f32 1.0, %v2141_v42 }
0x1294   :  { %v4534_v2 = vadd.f32 %v2110_v0, %v4531_v62 }
0x1296   :  { %3188 = vmatmul.mubr.msk.f32.vlgmr.msra.gmra.mrb[14].mxu0 %vm177_vm0, %v4534_v2 }
0x1297   :  { %3397 = vmatpush3.bf16.msra.mxu0 %v4198_v13  ;;  %3209 = vmatprep.mubr.msk.f32.mxu0 %vm3863_vm5, %v3861_v55 }
0x1298   :  { %3398 = vmatprep.subr.bf16.mxu0 %v3862_v1 }
0x1299   :  { %v2093_v7 = vpop.permute.xlu1 %2092 }
0x129a   :  { %v4543_v11 = vmul.f32 %v2093_v7, %v2088_v36 }
0x129b   :  { %3400 = vmatpush3.bf16.msra.mxu0 %v4205_v16 }
0x129c   :  { %v4547_v12 = vadd.f32 %v2131_v10, %v4543_v11 }
0x129e   :  { %3199 = vmatmul.mubr.msk.f32.vlgmr.msra.gmra.mrb[14].mxu1 %vm177_vm0, %v4547_v12 }
0x129f   :  { %3403 = vmatpush3.bf16.msra.mxu1 %v4182_v4  ;;  %3220 = vmatprep.mubr.msk.f32.mxu1 %vm3863_vm5, %v3861_v55  ;;  %v2122_v4 = vpop.permute.xlu1 %2121  ;;  %v2138_v55 = vmul.f32 %v2136_v26, %v2088_v36 }
0x12a0   :  { %3404 = vmatprep.subr.bf16.mxu1 %v3862_v1  ;;  %v4556_v1 = vadd.f32 %v2122_v4, %v2118_v31 }
0x12a1   :  { %v4560_v34 = vadd.f32 %v2139_v33, %v2138_v55 }
0x12a2   :  { %v2229_v6 = vrot.slane %v4556_v1, 4 }
0x12a3   :  { %3406 = vmatpush3.bf16.msra.mxu1 %v4191_v8  ;;  %v2336_v24 = vrot.slane %v4560_v34, 6 }
0x1369   :  { %v2213_v13 = vpop.f32.mrb[14].mxu0 }
0x136a   :  { %v2218_v49 = vrot.slane %v2213_v13, 4  ;;  %v3189_v14 = vpop.f32.mrb[15].mxu0 }
0x136c   :  { %v2220_v16 = vadd.f32 %v2218_v49, %v2143_v29 }
0x136e   :  { %3583 = vtanh.f32 %v2220_v16  ;;  %v2928_v35 = vmul.f32 -1.442695, %v2220_v16 }
0x1371   :  { %v2320_v17 = vpop.f32.mrb[14].mxu1 }
0x1372   :  { %v2325_v19 = vrot.slane %v2320_v17, 6  ;;  %v3200_v21 = vpop.f32.mrb[15].mxu1 }
0x1374   :  { %v2327_v27 = vadd.f32 %v2325_v19, %v2250_v23 }
0x1376   :  { %3585 = vtanh.f32 %v2327_v27  ;;  %v2930_v37 = vmul.f32 -1.442695, %v2327_v27 }
0x1377   :  { %3587 = vpow2.f32 %v2928_v35  ;;  %v2526_v35 = vld [vmem:[#allocation2 + $0x8] sm:$0x3] }
0x1378   :  { %v3584_v8 = vpop.eup %3583  ;;  %3589 = vpow2.f32 %v2930_v37 }
0x1379   :  { %2235 = vrot.lane.b32.xlu1 %v3584_v8, %s3865_s9 }
0x137d   :  { %2230 = vrot.lane.b32.xlu1 %v2229_v6, %s3866_s10 }
0x1380   :  { %v3586_v9 = vpop.eup %3585 }
0x1381   :  { %2342 = vrot.lane.b32.xlu0 %v3586_v9, %s3865_s9  ;;  %2337 = vrot.lane.b32.xlu1 %v2336_v24, %s3866_s10  ;;  %v3588_v56 = vpop.eup %3587 }
0x1382   :  { %v2224_v39 = vadd.f32 1.0, %v3588_v56  ;;  %v3590_v40 = vpop.eup %3589 }
0x1383   :  { %v2331_v28 = vadd.f32 1.0, %v3590_v40 }
0x1384   :  { %3591 = vrcp.f32 %v2224_v39 }
0x1385   :  { %3593 = vrcp.f32 %v2331_v28 }
0x138e   :  { %v3592_v32 = vpop.eup %3591 }
0x138f   :  { %v3594_v44 = vpop.eup %3593 }
0x13eb   :  { %v2236_v38 = vpop.permute.xlu1 %2235 }
0x13ec   :  { %v2238_v25 = vmul.f32 %v3592_v32, %v2236_v38 }
0x13ee   :  { %2240 = vrot.lane.b32.xlu0 %v2238_v25, %s3866_s10 }
0x13ef   :  { %v2231_v20 = vpop.permute.xlu1 %2230 }
0x13f0   :  { %v2233_v47 = vmul.f32 %v3592_v32, %v2231_v20 }
0x13f3   :  { %v2343_v46 = vpop.permute.xlu0 %2342  ;;  %v2338_v51 = vpop.permute.xlu1 %2337 }
0x13f4   :  { %v2345_v5 = vmul.f32 %v3594_v44, %v2343_v46  ;;  %v2340_v52 = vmul.f32 %v3594_v44, %v2338_v51 }
0x13f6   :  { %2347 = vrot.lane.b32.xlu0 %v2345_v5, %s3866_s10 }
0x1460   :  { %v2241_v48 = vpop.permute.xlu0 %2240 }
0x1461   :  { %v2243_v50 = vadd.f32 %v2241_v48, %v2233_v47 }
0x1463   :  { %3595 = vtanh.f32 %v2243_v50  ;;  %v2394_v7 = vrot.slane %v2243_v50, 4 }
0x1468   :  { %v2348_v53 = vpop.permute.xlu0 %2347 }
0x1469   :  { %v2350_v45 = vadd.f32 %v2348_v53, %v2340_v52 }
0x146b   :  { %3597 = vtanh.f32 %v2350_v45  ;;  %v2410_v14 = vrot.slane %v2350_v45, 2 }
0x146d   :  { %v3596_v57 = vpop.eup %3595 }
0x146e   :  { %2246 = vrot.lane.b32.xlu1 %v3596_v57, %s3865_s9 }
0x1472   :  { %2359 = vperm.xlu1 %3482, %v2141_v42  }
0x1475   :  { %v3598_v41 = vpop.eup %3597 }
0x1476   :  { %2353 = vrot.lane.b32.xlu0 %v3598_v41, %s3865_s9  ;;  %2371 = vperm.xlu1 %3482, %v2142_v58  }
0x147a   :  { %2388 = vperm.xlu0 %3481, %v2385_v59  }
0x147e   :  { %2404 = vperm.xlu0 %3481, %v2401_v60  }
0x14e0   :  { %v2247_v36 = vpop.permute.xlu1 %2246 }
0x14e1   :  { %v2249_v61 = vmul.f32 %v3592_v32, %v2247_v36 }
0x14e3   :  { %v2363_v0 = vrot.slane %v2249_v61, 4 }
0x14e5   :  { %2364 = vrot.lane.b32.xlu1 %v2363_v0, %s3866_s10 }
0x14e8   :  { %v2354_v10 = vpop.permute.xlu0 %2353 }
0x14e9   :  { %v2356_v13 = vmul.f32 %v3594_v44, %v2354_v10  ;;  %2395 = vrot.lane.b32.xlu1 %v2394_v7, %s3867_s11 }
0x14eb   :  { %v2375_v49 = vrot.slane %v2356_v13, 2 }
0x14ed   :  { %2376 = vrot.lane.b32.xlu0 %v2375_v49, %s3866_s10 }
0x14f1   :  { %2411 = vrot.lane.b32.xlu0 %v2410_v14, %s3867_s11  ;;  %v2360_v29 = vpop.permute.xlu1 %2359  ;;  %v2417_v14 = vld [vmem:[%s4720_s3 + $0xe] sm:$0x3] }
0x14f5   :  { %v2372_v16 = vpop.permute.xlu1 %2371 }
0x14f9   :  { %v2389_v15 = vpop.permute.xlu0 %2388 }
0x14fa   :  { %v2391_v19 = vmul.f32 %v2389_v15, %v4534_v2  ;;  %v2419_v2 = vld [vmem:[#allocation2 + $0x10] sm:$0xc0] }
0x14fd   :  { %v2405_v26 = vpop.permute.xlu0 %2404 }
0x14fe   :  { %v2407_v27 = vmul.f32 %v2405_v26, %v4547_v12  ;;  %v2399_v12 = vmul.f32 %v2389_v15, %v4556_v1  ;;  %v2415_v5 = vmul.f32 %v2405_v26, %v4560_v34  ;;  %v2418_v34 = vld [vmem:[%s4720_s3] sm:$0x3]  ;;  %v2659_v15 = vld [vmem:[#allocation18 + $0x28] sm:$0xff] }
0x1557   :  { %v2365_v17 = vpop.permute.xlu1 %2364 }
0x1558   :  { %v4582_v21 = vmul.f32 %v2365_v17, %v2360_v29 }
0x155a   :  { %v2392_v23 = vadd.f32 %v2391_v19, %v4582_v21  ;;  %v2660_v19 = vld [vmem:[#allocation18 + $0x30] sm:$0xff] }
0x155b   :  { %v2396_v9 = vpop.permute.xlu1 %2395 }
0x155c   :  { %3210 = vmatmul.mubr.msk.f32.vlgmr.msra.gmra.mrb[16].mxu0 %vm177_vm0, %v2392_v23  ;;  %v2398_v40 = vmul.f32 %v2396_v9, %v2360_v29  ;;  %v2753_v9 = vld [vmem:[%s4732_s15] sm:$0xff] }
0x155e   :  { %v2400_v28 = vadd.f32 %v2399_v12, %v2398_v40  ;;  %v2757_v12 = vld [vmem:[%s4732_s15 + $0x20] sm:$0xff] }
0x155f   :  { %v2377_v4 = vpop.permute.xlu0 %2376 }
0x1560   :  { %v4587_v31 = vmul.f32 %v2377_v4, %v2372_v16  ;;  %v2505_v25 = vrot.slane %v2400_v28, 2  ;;  %v2758_v28 = vld [vmem:[%s4732_s15 + $0x28] sm:$0xff] }
0x1562   :  { %v2408_v55 = vadd.f32 %v2407_v27, %v4587_v31 }
0x1563   :  { %v2412_v38 = vpop.permute.xlu0 %2411 }
0x1564   :  { %3221 = vmatmul.mubr.msk.f32.vlgmr.msra.gmra.mrb[16].mxu1 %vm177_vm0, %v2408_v55  ;;  %v2414_v44 = vmul.f32 %v2412_v38, %v2372_v16 }
0x1566   :  { %v2416_v20 = vadd.f32 %v2415_v5, %v2414_v44  ;;  %v2759_v44 = vld [vmem:[%s4732_s15 + $0x30] sm:$0xff] }
0x162f   :  { %v2489_v8 = vpop.f32.mrb[16].mxu0 }
0x1630   :  { %v2494_v33 = vrot.slane %v2489_v8, 2  ;;  %v3211_v6 = vpop.f32.mrb[17].mxu0 }
0x1632   :  { %v2496_v24 = vadd.f32 %v2494_v33, %v2419_v2  ;;  %v2857_v2 = vld [vmem:[%s4720_s3] sm:$0xff] }
0x1634   :  { %3599 = vtanh.f32 %v2496_v24  ;;  %v2932_v47 = vmul.f32 -1.442695, %v2496_v24 }
0x1637   :  { %v2596_v37 = vpop.f32.mrb[16].mxu1 }
0x1638   :  { %v2600_v56 = vadd.f32 %v2596_v37, %v2526_v35  ;;  %v3222_v39 = vpop.f32.mrb[17].mxu1  ;;  %v2754_v35 = vld [vmem:[%s4732_s15 + $0x8] sm:$0xff]  ;;  %v2755_v37 = vld [vmem:[%s4732_s15 + $0x10] sm:$0xff] }
0x1639   :  { %v2756_v39 = vld [vmem:[%s4732_s15 + $0x18] sm:$0xff] }
0x163a   :  { %3601 = vtanh.f32 %v2600_v56  ;;  %v2934_v1 = vmul.f32 -1.442695, %v2600_v56  ;;  %v3423_v56 = vpack.c.bf16 %v2754_v35, %v2753_v9  ;;  %v3427_v40 = vpack.c.bf16 %v2756_v39, %v2755_v37 }
0x163b   :  { %3603 = vpow2.f32 %v2932_v47  ;;  %v2761_v47 = vld [vmem:[%s4732_s15 + $0x40] sm:$0xff] }
0x163c   :  { %3605 = vpow2.f32 %v2934_v1  ;;  %3424 = vmatprep.subr.bf16.mxu1 %v3423_v56  ;;  %v2762_v1 = vld [vmem:[%s4732_s15 + $0x48] sm:$0xff] }
0x163d   :  { %3426 = vmatpush3.bf16.msra.mxu1 %v3423_v56 }
0x163e   :  { %v3600_v32 = vpop.eup %3599  ;;  %3428 = vmatprep.subr.bf16.mxu1 %v3427_v40 }
0x163f   :  { %2511 = vrot.lane.b32.xlu1 %v3600_v32, %s3865_s9 }
0x1641   :  { %3430 = vmatpush3.bf16.msra.mxu1 %v3427_v40 }
0x1643   :  { %2506 = vrot.lane.b32.xlu1 %v2505_v25, %s3866_s10  ;;  %v3431_v25 = vpack.c.bf16 %v2758_v28, %v2757_v12 }
0x1644   :  { %v3602_v46 = vpop.eup %3601 }
0x1645   :  { %2614 = vrot.lane.b32.xlu0 %v3602_v46, %s3865_s9  ;;  %v3604_v48 = vpop.eup %3603  ;;  %v2760_v46 = vld [vmem:[%s4732_s15 + $0x38] sm:$0xff]  ;;  %3432 = vmatprep.subr.bf16.mxu1 %v3431_v25 }
0x1646   :  { %v2500_v50 = vadd.f32 1.0, %v3604_v48  ;;  %v3606_v51 = vpop.eup %3605  ;;  %3434 = vmatpush3.bf16.msra.mxu1 %v3431_v25 }
0x1647   :  { %v2604_v52 = vadd.f32 1.0, %v3606_v51  ;;  %v2763_v51 = vld [vmem:[%s4732_s15 + $0x50] sm:$0xff] }
0x1648   :  { %3607 = vrcp.f32 %v2500_v50 }
0x1649   :  { %2609 = vrot.lane.b32.xlu0 %v2416_v20, %s3866_s10  ;;  %3609 = vrcp.f32 %v2604_v52  ;;  %v2764_v52 = vld [vmem:[%s4732_s15 + $0x58] sm:$0xff] }
0x1652   :  { %v3608_v53 = vpop.eup %3607 }
0x1653   :  { %v3610_v42 = vpop.eup %3609 }
0x16b1   :  { %v2512_v45 = vpop.permute.xlu1 %2511 }
0x16b2   :  { %v2514_v57 = vmul.f32 %v3608_v53, %v2512_v45 }
0x16b4   :  { %2516 = vrot.lane.b32.xlu1 %v2514_v57, %s3866_s10  ;;  %v3443_v57 = vpack.c.bf16 %v2764_v52, %v2763_v51 }
0x16b5   :  { %v2507_v59 = vpop.permute.xlu1 %2506 }
0x16b6   :  { %v2509_v60 = vmul.f32 %v3608_v53, %v2507_v59 }
0x16b7   :  { %v2615_v58 = vpop.permute.xlu0 %2614 }
0x16b8   :  { %v2617_v41 = vmul.f32 %v3610_v42, %v2615_v58  ;;  %2643 = vperm.xlu1 %3482, %v2418_v34   ;;  %v2765_v34 = vld [vmem:[%s4732_s15 + $0x60] sm:$0xff] }
0x16ba   :  { %2619 = vrot.lane.b32.xlu0 %v2617_v41, %s3866_s10 }
0x16bb   :  { %v2610_v0 = vpop.permute.xlu0 %2609 }
0x16bc   :  { %v2612_v7 = vmul.f32 %v3610_v42, %v2610_v0  ;;  %v2767_v0 = vld [vmem:[%s4732_s15 + $0x70] sm:$0xff] }
0x1726   :  { %v2517_v36 = vpop.permute.xlu1 %2516 }
0x1727   :  { %v2519_v61 = vadd.f32 %v2517_v36, %v2509_v60 }
0x1729   :  { %3611 = vtanh.f32 %v2519_v61 }
0x172c   :  { %v2620_v10 = vpop.permute.xlu0 %2619 }
0x172d   :  { %v2622_v13 = vadd.f32 %v2620_v10, %v2612_v7  ;;  %v2768_v7 = vld [vmem:[%s4732_s15 + $0x78] sm:$0xff] }
0x172e   :  { %v3451_v10 = vpack.c.bf16 %v2768_v7, %v2767_v0 }
0x172f   :  { %3613 = vtanh.f32 %v2622_v13  ;;  %v2935_v13 = vld [vmem:[%s4731_s14] ss:$0 sm:$0xff]  ;;  %s3868_s14 = smov [#allocation19]  }
0x1730   :  { %s2881_s1 = sshll.u32 %s3868_s14, 4  ;;  %s2882_s1 = int_to_ptr.vmem [resolvable:$true] %s2881_s1 }
0x1731   :  { %p3818_p3 = scmp.lt.s32.totalorder %s2882_s1, %s2882_s1 }
0x1733   :  { %v3612_v49 = vpop.eup %3611 }
0x1734   :  { %2522 = vrot.lane.b32.xlu0 %v3612_v49, %s3865_s9 }
0x1737   :  { %v2644_v27 = vpop.permute.xlu1 %2643 }
0x1738   :  { %2631 = vperm.xlu0 %3481, %v2417_v14  }
0x1739   :  { %v3614_v29 = vpop.eup %3613 }
0x173a   :  { %2625 = vrot.lane.b32.xlu1 %v3614_v29, %s3865_s9 }
0x173c   :  { %985 = vrot.lane.b32.xlu0 %v4319_v3, %s3866_s10  ;;  %v2655_v3 = vld [vmem:[#allocation18 + $0x8] sm:$0xff] }
0x173e   :  { %698 = vrot.lane.b32.xlu1 %v4253_v43, %s3866_s10  ;;  %v2858_v43 = vld [vmem:[%s4720_s3 + $0x8] sm:$0xff] }
0x1740   :  { %1536 = vrot.lane.b32.xlu0 %v4416_v22, %s3865_s9 }
0x1742   :  { %715 = vrot.lane.b32.xlu1 %v4268_v54, %s3866_s10  ;;  %v2654_v54 = vld [vmem:[#allocation18] sm:$0xff] }
0x1743   :  { %v3407_v22 = vpack.c.bf16 %v2655_v3, %v2654_v54 }
0x1744   :  { %2097 = vrot.lane.b32.xlu0 %v4543_v11, %s3866_s10  ;;  %v2657_v11 = vld [vmem:[#allocation18 + $0x18] sm:$0xff] }
0x1745   :  { %3408 = vmatprep.subr.bf16.mxu0 %v3407_v22 }
0x1746   :  { %1269 = vrot.lane.b32.xlu1 %v4370_v63, %s3866_s10  ;;  %3410 = vmatpush3.bf16.msra.mxu0 %v3407_v22  ;;  %v2656_v63 = vld [vmem:[#allocation18 + $0x10] sm:$0xff] }
0x1747   :  { %v3411_v16 = vpack.c.bf16 %v2657_v11, %v2656_v63  ;;  %v2852_v22 = vld [vmem:[#allocation9 + $0x8] sm:$0xff]  ;;  %v2851_v63 = vld [vmem:[#allocation9] sm:$0xff] }
0x1748   :  { %v2854_v11 = vsub.f32 1.0, %v2852_v22 }
0x1749   :  { %3412 = vmatprep.subr.bf16.mxu0 %v3411_v16 }
0x174a   :  { %1810 = vrot.lane.b32.xlu1 %v4489_v30, %s3866_s10  ;;  %3414 = vmatpush3.bf16.msra.mxu0 %v3411_v16  ;;  %v2658_v30 = vld [vmem:[#allocation18 + $0x20] sm:$0xff]  ;;  %v2938_v16 = vld [vmem:[%s4733_s16] ss:$0 sm:$0xff]  ;;  %s3813_s16 = scalar_lea.vmem %s2882_s1, 256 }
0x174b   :  { %v3415_v17 = vpack.c.bf16 %v2659_v15, %v2658_v30  ;;  %v2853_v30 = vsub.f32 1.0, %v2851_v63  ;;  %p3814_p2 = scmp.ne.s32.totalorder %s2882_s1, %s3813_s16  ;;  %p3819_p4 = scmp.lt.s32.totalorder %s3813_s16, %s3813_s16 }
0x174d   :  { %3416 = vmatprep.subr.bf16.mxu0 %v3415_v17  ;;  %p3820_p5 = por %p3819_p4, %p3818_p3 }
0x174e   :  { %2381 = vrot.lane.b32.xlu1 %v4587_v31, %s3866_s10  ;;  %3418 = vmatpush3.bf16.msra.mxu0 %v3415_v17 }
0x174f   :  { %p3821_p6 = pnand %p3820_p5, %p3814_p2 }
0x1752   :  { %1794 = vrot.lane.b32.xlu1 %v4472_v18, %s3866_s10  ;;  %v2661_v18 = vld [vmem:[#allocation18 + $0x38] sm:$0xff] }
0x1753   :  { %v3419_v23 = vpack.c.bf16 %v2661_v18, %v2660_v19  ;;  %v2856_v19 = vmul.f32 -100000.0, %v2854_v11 }
0x1755   :  { %3420 = vmatprep.subr.bf16.mxu0 %v3419_v23 }
0x1756   :  { %2866 = vperm.xlu1 %3482, %v2858_v43   ;;  %3422 = vmatpush3.bf16.msra.mxu0 %v3419_v23 }
0x17a6   :  { %v2523_v26 = vpop.permute.xlu0 %2522 }
0x17a7   :  { %v2525_v4 = vmul.f32 %v3608_v53, %v2523_v26 }
0x17a9   :  { %v2635_v31 = vrot.slane %v2525_v4, 6  ;;  %v2855_v4 = vmul.f32 -100000.0, %v2853_v30 }
0x17ab   :  { %2636 = vrot.lane.b32.xlu0 %v2635_v31, %s3866_s10 }
0x17ac   :  { %v2626_v55 = vpop.permute.xlu1 %2625 }
0x17ad   :  { %v2628_v8 = vmul.f32 %v3610_v42, %v2626_v55  ;;  %v2766_v42 = vld [vmem:[%s4732_s15 + $0x68] sm:$0xff] }
0x17ae   :  { %v3447_v58 = vpack.c.bf16 %v2766_v42, %v2765_v34 }
0x17af   :  { %v2646_v33 = vmul.f32 %v2644_v27, %v2628_v8 }
0x17b0   :  { %v699_v6 = vpop.permute.xlu1 %698 }
0x17b1   :  { %702 = vst.msk [vmem:[#allocation3] sm:$0x3] %vm701_vm6, %v699_v6  ;;  %2648 = vrot.lane.b32.xlu0 %v2646_v33, %s3865_s9 }
0x17b4   :  { %v716_v24 = vpop.permute.xlu1 %715 }
0x17b5   :  { %719 = vst.msk [vmem:[#allocation3 + $0xe] sm:$0x3] %vm718_vm7, %v716_v24  ;;  %2861 = vperm.xlu0 %3481, %v2857_v2  }
0x17b7   :  { %v2632_v32 = vpop.permute.xlu0 %2631 }
0x17b8   :  { %v1270_v38 = vpop.permute.xlu1 %1269 }
0x17b9   :  { %1272 = vst.msk [vmem:[#allocation3 + $0xa] sm:$0x3] %vm718_vm7, %v1270_v38 }
0x17ba   :  { %2084 = vst.msk [vmem:[#allocation3 + $0xa] sm:$0x3] %vm701_vm6, %v4531_v62  ;;  %v3435_v62 = vpack.c.bf16 %v2760_v46, %v2759_v44 }
0x17bb   :  { %v986_v5 = vpop.permute.xlu0 %985 }
0x17bc   :  { %988 = vst.msk [vmem:[#allocation3 + $0xc] sm:$0x3] %vm718_vm7, %v986_v5  ;;  %v1811_v20 = vpop.permute.xlu1 %1810  ;;  %3436 = vmatprep.subr.bf16.mxu1 %v3435_v62 }
0x17bd   :  { %2368 = vst.msk [vmem:[#allocation3 + $0xc] sm:$0x3] %vm701_vm6, %v4582_v21  ;;  %v3439_v21 = vpack.c.bf16 %v2762_v1, %v2761_v47  ;;  %3438 = vmatpush3.bf16.msra.mxu1 %v3435_v62 }
0x17be   :  { %1813 = vst.msk [vmem:[#allocation3 + $0x6] sm:$0x3] %vm718_vm7, %v1811_v20 }
0x17bf   :  { %v1537_v48 = vpop.permute.xlu0 %1536  ;;  %3440 = vmatprep.subr.bf16.mxu1 %v3439_v21 }
0x17c0   :  { %1539 = vst.msk [vmem:[#allocation3 + $0x8] sm:$0x3] %vm718_vm7, %v1537_v48  ;;  %v2382_v50 = vpop.permute.xlu1 %2381 }
0x17c1   :  { %2384 = vst.msk [vmem:[#allocation3 + $0x2] sm:$0x3] %vm718_vm7, %v2382_v50  ;;  %3442 = vmatpush3.bf16.msra.mxu1 %v3439_v21 }
0x17c2   :  { %3444 = vmatprep.subr.bf16.mxu1 %v3443_v57 }
0x17c3   :  { %v2098_v53 = vpop.permute.xlu0 %2097 }
0x17c4   :  { %2100 = vst.msk [vmem:[#allocation3 + $0x4] sm:$0x3] %vm718_vm7, %v2098_v53  ;;  %v1795_v45 = vpop.permute.xlu1 %1794 }
0x17c5   :  { %1797 = vst.msk [vmem:[#allocation3 + $0x8] sm:$0x3] %vm701_vm6, %v1795_v45  ;;  %3446 = vmatpush3.bf16.msra.mxu1 %v3443_v57 }
0x17c6   :  { %3448 = vmatprep.subr.bf16.mxu1 %v3447_v58 }
0x17c9   :  { %3450 = vmatpush3.bf16.msra.mxu1 %v3447_v58 }
0x17ca   :  { %3452 = vmatprep.subr.bf16.mxu1 %v3451_v10 }
0x17cd   :  { %3454 = vmatpush3.bf16.msra.mxu1 %v3451_v10 }
0x17d5   :  { %v2867_v23 = vpop.permute.xlu1 %2866 }
0x181d   :  { %v2637_v41 = vpop.permute.xlu0 %2636 }
0x181e   :  { %v2639_v59 = vmul.f32 %v2637_v41, %v2632_v32 }
0x1820   :  { %2640 = vst.msk [vmem:[#allocation3 + $0xe] sm:$0x3] %vm701_vm6, %v2639_v59 }
0x1823   :  { %v2649_v60 = vpop.permute.xlu0 %2648 }
0x1824   :  { %2651 = vst.msk [vmem:[#allocation3] sm:$0x3] %vm718_vm7, %v2649_v60 }
0x1827   :  { %v2653_v61 = vld [vmem:[#allocation3 + $0x8] sm:$0xff] }
0x182b   :  { %v2652_v36 = vld [vmem:[#allocation3] sm:$0xff] }
0x182c   :  { %3239 = vmatprep.mubr.msk.f32.mxu0 %vm2669_vm8, %v2652_v36 }
0x182d   :  { %3240 = vmatmul.mubr.msk.f32.vlgmr.msra.gmra.mrb[18].mxu0 %vm2669_vm8, %v2653_v61 }
0x1834   :  { %v2862_v27 = vpop.permute.xlu0 %2861 }
0x1900   :  { %v3241_v49 = vpop.f32.mrb[18].mxu0 }
0x1901   :  { %v2748_v14 = vadd.f32 %v3241_v49, %v2935_v13  ;;  %v2742_v29 = vpop.f32.mrb[19].mxu0 }
0x1902   :  { %v2743_v43 = vadd.f32 %v2935_v13, %v2742_v29 }
0x1903   :  { %v2752_v3 = vmax.f32 %v2748_v14, 0.0 }
0x1904   :  { %v2751_v54 = vmax.f32 %v2743_v43, 0.0 }
0x1906   :  { %3274 = vmatprep.mubr.f32.mxu1 %v2751_v54 }
0x1907   :  { %3275 = vmatmul.mubr.f32.vlgmr.msra.gmra.mrb[18].mxu1 %v2752_v3 }
0x19da   :  { %v3276_v15 = vpop.f32.mrb[18].mxu1 }
0x19db   :  { %v2848_v17 = vadd.f32 %v3276_v15, %v2938_v16  ;;  %v2842_v18 = vpop.f32.mrb[19].mxu1 }
0x19dc   :  { %v2843_v26 = vadd.f32 %v2938_v16, %v2842_v18 }
0x19dd   :  { %v2870_v31 = vmul.f32 %v2867_v23, %v2848_v17 }
0x19de   :  { %v2869_v55 = vmul.f32 %v2862_v27, %v2843_v26 }
0x19df   :  { %v2872_v8 = vadd.f32 %v2870_v31, %v2856_v19 }
0x19e0   :  { %v2871_v33 = vadd.f32 %v2869_v55, %v2855_v4 }
0x19e1   :  { %2875 = vst.msk [vmem:[#allocation19 + $0x8] sm:$0xff] %vm2873_vm9, %v2872_v8 }
0x19e2   :  { %2874 = vst.msk [vmem:[#allocation19] sm:$0xff] %vm2873_vm9, %v2871_v33 }
0x19e3   :  { %3824 = shalt.err (!%p3821_p6)
}
0x19e4   :  { %s3825_s12 = scalar_lea.hbm %s4734_s17, 256 }
0x19e5   :  { %p3826_p7 = scmp.ne.s32.totalorder %s4734_s17, %s3825_s12  ;;  %p3829_p8 = scmp.lt.u32.totalorder %s3825_s12, %s4734_s17 }
0x19e7   :  { %p3831_p9 = pnand %p3829_p8, %p3826_p7 }
0x19e9   :  { %3834 = shalt.err (!%p3831_p9)
}
0x19ea   :  { %2887 = dma.vmem_to_hbm [thread:$0]  %s2882_s1, 256, %s4734_s17, [#allocation6], %s4745_s5, %s4745_s5, %s4744_s28  }
0x19eb   :  { %3845 = dma.done.wait [#allocation6], 256  }
0x19ec   :  { %3846 = vsyncadd [#allocation6], 4294967040 }
0x19ed   :  { %2891 = vsyncpa [#allocation5], 1 }
0x19ee   :  { %2892 = vsyncpa [#allocation8], 1 }
0x19ef   :  { %2893 = vsyncpa [#allocation11], 1 }
0x19f0   :  { %2894 = vsyncpa [#allocation14], 1 }
0x19f1   :  { %2895 = vsyncpa [#allocation17], 1 }
0x19f2   :  { %2896 = vsyncpa [#allocation6], 1 }

</bundles_post_ra>
